<compile_context>
chip_gen: v5e
topology: v5e:2x2
jax: 0.10.0
libtpu: 0.0.40
codegen_flags: <defaults>
</compile_context>

<pallas_src>
import functools

import jax
import jax.numpy as jnp
from jax.experimental import pallas as pl
from jax.experimental.pallas import tpu as pltpu

_VMEM_LIMIT = 40 * 1024 * 1024   # above default scoped limits, safely below v7x's 64 MiB


def _cp(sem):
    return pltpu.CompilerParams(dimension_semantics=sem,
                                vmem_limit_bytes=_VMEM_LIMIT)


# ----------------------------------------------------------------------------
# In-kernel helpers
# ----------------------------------------------------------------------------
def _row_mod(rows, seq_len):
    """Per-row position within its own sequence (blocks always hold whole sequences)."""
    r = jax.lax.broadcasted_iota(jnp.int32, (rows, 1), 0)
    return r if rows == seq_len else r % seq_len


def _shift_rows(x, off, tmod, seq_len):
    """y[r] = x[r+off] within each length-`seq_len` segment; rows from outside -> 0."""
    if off == 0:
        return x
    rows = x.shape[0]
    rolled = pltpu.roll(x, shift=(-off) % rows, axis=0)          # XLU sublane rotate
    keep = tmod < (seq_len - off) if off > 0 else tmod >= (-off)
    return jnp.where(keep, rolled, jnp.zeros_like(rolled))


def _mm(a_bf16, w_bf16):
    return jnp.dot(a_bf16, w_bf16, preferred_element_type=jnp.float32)


def _conv3_body(x_bf16, x_f32, w0, w1, w2, b, tmod, seq_len, dil=1):
    """Dilated k=3 conv with zero padding; bf16 MXU operands, f32 accumulation."""
    acc = _mm(x_bf16, w1) + b                                    # center tap + bias
    acc += _mm(_shift_rows(x_f32, -dil, tmod, seq_len).astype(jnp.bfloat16), w0)
    acc += _mm(_shift_rows(x_f32, dil, tmod, seq_len).astype(jnp.bfloat16), w2)
    return acc


def _resnet_body(h_f32, w1_ref, b1_ref, w2_ref, b2_ref, tmod, seq_len, dilations):
    """depth x (ReLU -> dilated k3 conv -> ReLU -> k1 conv -> residual); residual in f32."""
    for d, dil in enumerate(dilations):
        xr = jnp.maximum(h_f32, 0.0)
        acc = _conv3_body(xr.astype(jnp.bfloat16), xr,
                          w1_ref[3 * d], w1_ref[3 * d + 1], w1_ref[3 * d + 2],
                          b1_ref[d], tmod, seq_len, dil=dil)
        acc = jnp.maximum(acc, 0.0).astype(jnp.bfloat16)
        h_f32 = h_f32 + _mm(acc, w2_ref[d]) + b2_ref[d]
    return h_f32


# ----------------------------------------------------------------------------
# Kernels
# ----------------------------------------------------------------------------
def _conv3_kernel(x_ref, w_ref, b_ref, o_ref, *, seq_len, post_relu):
    """Conv1d(k=3, s=1, p=1), optional trailing ReLU."""
    x = x_ref[...]                                               # (rows, Cin) bf16
    tmod = _row_mod(x.shape[0], seq_len)
    acc = _conv3_body(x, x.astype(jnp.float32),
                      w_ref[0], w_ref[1], w_ref[2], b_ref[...], tmod, seq_len)
    if post_relu:
        acc = jnp.maximum(acc, 0.0)
    o_ref[...] = acc.astype(o_ref.dtype)


def _enc_stage_kernel(x_ref, wd_ref, bd_ref, w1_ref, b1_ref, w2_ref, b2_ref, o_ref,
                      *, seq_len, dilations):
    """Fused encoder stage: Conv1d(k=4, s=2, p=1) (phase-decomposed) + Resnet1D stack."""
    xp = x_ref[...]                                              # (rows, 2*Cin) [even|odd]
    cin = xp.shape[-1] // 2
    x_even = xp[:, :cin]                                         # x[2t]
    x_odd = xp[:, cin:]                                          # x[2t+1]
    tmod = _row_mod(xp.shape[0], seq_len)
    xpf = xp.astype(jnp.float32)
    xm1 = _shift_rows(xpf, -1, tmod, seq_len)                    # phases at t-1
    xp1 = _shift_rows(xpf, 1, tmod, seq_len)                     # phases at t+1
    # y[t] = x[2t-1]w0 + x[2t]w1 + x[2t+1]w2 + x[2t+2]w3
    h = _mm(x_even, wd_ref[1]) + bd_ref[...]
    h += _mm(x_odd, wd_ref[2])
    h += _mm(xm1[:, cin:].astype(jnp.bfloat16), wd_ref[0])       # x[2t-1] = odd[t-1]
    h += _mm(xp1[:, :cin].astype(jnp.bfloat16), wd_ref[3])       # x[2t+2] = even[t+1]
    h = _resnet_body(h, w1_ref, b1_ref, w2_ref, b2_ref, tmod, seq_len, dilations)
    o_ref[...] = h.astype(o_ref.dtype)


def _dec_stage_kernel(x_ref, w1_ref, b1_ref, w2_ref, b2_ref, we_ref, wo_ref, bu_ref,
                      o_ref, *, seq_len, dilations):
    """Fused decoder stage: Resnet1D stack + nearest-x2 upsample folded into Conv1d(k=3)."""
    h = x_ref[...].astype(jnp.float32)
    tmod = _row_mod(h.shape[0], seq_len)
    h = _resnet_body(h, w1_ref, b1_ref, w2_ref, b2_ref, tmod, seq_len, dilations)
    hb = h.astype(jnp.bfloat16)
    hm = _shift_rows(h, -1, tmod, seq_len).astype(jnp.bfloat16)  # x[t-1]
    hp = _shift_rows(h, 1, tmod, seq_len).astype(jnp.bfloat16)   # x[t+1]
    cout = we_ref.shape[-1]
    b = bu_ref[...]
    y_even = _mm(hm, we_ref[0]) + _mm(hb, we_ref[1]) + b         # y[2t]
    y_odd = _mm(hb, wo_ref[0]) + _mm(hp, wo_ref[1]) + b          # y[2t+1]
    # (rows, 2*Cout) = [even | odd]; a free row-major reshape outside interleaves to 2T.
    o_ref[:, :cout] = y_even.astype(o_ref.dtype)
    o_ref[:, cout:] = y_odd.astype(o_ref.dtype)


def _dec_tail_kernel(x_ref, wm_ref, bm_ref, wo_ref, bo_ref, o_ref, *, seq_len):
    """Fused decoder tail: Conv1d(k=3) -> ReLU -> Conv1d(k=3)."""
    x = x_ref[...]
    tmod = _row_mod(x.shape[0], seq_len)
    h = _conv3_body(x, x.astype(jnp.float32),
                    wm_ref[0], wm_ref[1], wm_ref[2], bm_ref[...], tmod, seq_len)
    h = jnp.maximum(h, 0.0)
    y = _conv3_body(h.astype(jnp.bfloat16), h,
                    wo_ref[0], wo_ref[1], wo_ref[2], bo_ref[...], tmod, seq_len)
    o_ref[...] = y.astype(o_ref.dtype)


def _nearest_code_kernel(x_ref, cb_ref, c2_ref, idx_ref, dmin_s, idx_s, *, cb_block):
    """Streaming nearest-code search; running (min, argmin) live in scratch."""
    c = pl.program_id(1)
    x = x_ref[...].astype(jnp.bfloat16)                          # (tm, C)
    cb = cb_ref[...]                                             # (cbb, C) bf16
    xc = jax.lax.dot_general(x, cb, (((1,), (1,)), ((), ())),
                             preferred_element_type=jnp.float32)
    # ||x||^2 is constant per row and cannot change the argmin -> dropped.
    dist = c2_ref[...] - 2.0 * xc                                # (tm, cbb)
    loc_min = jnp.min(dist, axis=-1, keepdims=True)
    col = jax.lax.broadcasted_iota(jnp.int32, dist.shape, 1)
    loc_idx = jnp.min(jnp.where(dist <= loc_min, col, cb_block),
                      axis=-1, keepdims=True) + c * cb_block     # first index on ties

    @pl.when(c == 0)
    def _():
        dmin_s[...] = loc_min
        idx_s[...] = loc_idx

    @pl.when(c > 0)
    def _():
        better = loc_min < dmin_s[...]                           # strict: earlier code wins ties
        dmin_s[...] = jnp.where(better, loc_min, dmin_s[...])
        idx_s[...] = jnp.where(better, loc_idx, idx_s[...])

    @pl.when(c == pl.num_programs(1) - 1)
    def _():
        idx_ref[...] = idx_s[...]


# ----------------------------------------------------------------------------
# Block-size helpers
# ----------------------------------------------------------------------------
def _pick_rows_per_block(n_seq, seq_len, target_rows=1024):
    """Sequences per row-block: whole sequences only, rows % 8 (or full), prefer grid >= 2."""
    cands = [b for b in range(1, n_seq + 1)
             if n_seq % b == 0 and ((b * seq_len) % 8 == 0 or b == n_seq)]
    small = [b for b in cands if b * seq_len <= target_rows]
    pref = [b for b in small if n_seq // b >= 2]
    if pref:
        return max(pref)
    if small:
        return max(small)
    return min(cands)


def _pick_tile(n, max_tile, mult=8):
    for t in range(min(n, max_tile), 0, -1):
        if n % t == 0 and t % mult == 0:
            return t
    return n          # block == full dim is always layout-legal


# ----------------------------------------------------------------------------
# pallas_call wrappers (activations are flattened (N*T, C) matrices)
# ----------------------------------------------------------------------------
def conv3(h, seq_len, n_seq, p, *, post_relu=False, out_dtype=jnp.bfloat16):
    rows, cin = h.shape
    cout = p["w"].shape[-1]
    blk = _pick_rows_per_block(n_seq, seq_len) * seq_len
    return pl.pallas_call(
        functools.partial(_conv3_kernel, seq_len=seq_len, post_relu=post_relu),
        grid=(rows // blk,),
        in_specs=[pl.BlockSpec((blk, cin), lambda i: (i, 0)),
                  pl.BlockSpec((3, cin, cout), lambda i: (0, 0, 0)),
                  pl.BlockSpec((1, cout), lambda i: (0, 0))],
        out_specs=pl.BlockSpec((blk, cout), lambda i: (i, 0)),
        out_shape=jax.ShapeDtypeStruct((rows, cout), out_dtype),
        compiler_params=_cp(("parallel",)),
    )(h, p["w"], p["b"])


def encoder_stage(h, seq_len, n_seq, st, *, growth):
    rows, w_ch = h.shape
    seq_half = seq_len // 2
    hp = h.reshape(rows // 2, 2 * w_ch)       # free reshape: even/odd phases on lanes
    depth = st["resnet"]["w2"].shape[0]
    dilations = tuple(growth ** d for d in range(depth))[::-1]   # reverse_dilation=True
    blk = _pick_rows_per_block(n_seq, seq_half) * seq_half
    out = pl.pallas_call(
        functools.partial(_enc_stage_kernel, seq_len=seq_half, dilations=dilations),
        grid=(hp.shape[0] // blk,),
        in_specs=[pl.BlockSpec((blk, 2 * w_ch), lambda i: (i, 0)),
                  pl.BlockSpec((4, w_ch, w_ch), lambda i: (0, 0, 0)),
                  pl.BlockSpec((1, w_ch), lambda i: (0, 0)),
                  pl.BlockSpec((3 * depth, w_ch, w_ch), lambda i: (0, 0, 0)),
                  pl.BlockSpec((depth, 1, w_ch), lambda i: (0, 0, 0)),
                  pl.BlockSpec((depth, w_ch, w_ch), lambda i: (0, 0, 0)),
                  pl.BlockSpec((depth, 1, w_ch), lambda i: (0, 0, 0))],
        out_specs=pl.BlockSpec((blk, w_ch), lambda i: (i, 0)),
        out_shape=jax.ShapeDtypeStruct((rows // 2, w_ch), jnp.bfloat16),
        compiler_params=_cp(("parallel",)),
    )(hp, st["down"]["w"], st["down"]["b"],
      st["resnet"]["w1"], st["resnet"]["b1"], st["resnet"]["w2"], st["resnet"]["b2"])
    return out, seq_half


def decoder_stage(h, seq_len, n_seq, st, *, growth):
    rows, w_ch = h.shape
    depth = st["resnet"]["w2"].shape[0]
    dilations = tuple(growth ** d for d in range(depth))[::-1]
    cout = st["up_conv"]["we"].shape[-1]
    blk = _pick_rows_per_block(n_seq, seq_len) * seq_len
    out = pl.pallas_call(
        functools.partial(_dec_stage_kernel, seq_len=seq_len, dilations=dilations),
        grid=(rows // blk,),
        in_specs=[pl.BlockSpec((blk, w_ch), lambda i: (i, 0)),
                  pl.BlockSpec((3 * depth, w_ch, w_ch), lambda i: (0, 0, 0)),
                  pl.BlockSpec((depth, 1, w_ch), lambda i: (0, 0, 0)),
                  pl.BlockSpec((depth, w_ch, w_ch), lambda i: (0, 0, 0)),
                  pl.BlockSpec((depth, 1, w_ch), lambda i: (0, 0, 0)),
                  pl.BlockSpec((2, w_ch, cout), lambda i: (0, 0, 0)),
                  pl.BlockSpec((2, w_ch, cout), lambda i: (0, 0, 0)),
                  pl.BlockSpec((1, cout), lambda i: (0, 0))],
        out_specs=pl.BlockSpec((blk, 2 * cout), lambda i: (i, 0)),
        out_shape=jax.ShapeDtypeStruct((rows, 2 * cout), jnp.bfloat16),
        compiler_params=_cp(("parallel",)),
    )(h, st["resnet"]["w1"], st["resnet"]["b1"], st["resnet"]["w2"], st["resnet"]["b2"],
      st["up_conv"]["we"], st["up_conv"]["wo"], st["up_conv"]["b"])
    return out.reshape(rows * 2, cout), seq_len * 2   # interleave even/odd rows (free)


def decoder_tail(h, seq_len, n_seq, pm, po):
    rows, w_ch = h.shape
    out_dim = po["w"].shape[-1]
    blk = _pick_rows_per_block(n_seq, seq_len) * seq_len
    return pl.pallas_call(
        functools.partial(_dec_tail_kernel, seq_len=seq_len),
        grid=(rows // blk,),
        in_specs=[pl.BlockSpec((blk, w_ch), lambda i: (i, 0)),
                  pl.BlockSpec((3, w_ch, w_ch), lambda i: (0, 0, 0)),
                  pl.BlockSpec((1, w_ch), lambda i: (0, 0)),
                  pl.BlockSpec((3, w_ch, out_dim), lambda i: (0, 0, 0)),
                  pl.BlockSpec((1, out_dim), lambda i: (0, 0))],
        out_specs=pl.BlockSpec((blk, out_dim), lambda i: (i, 0)),
        out_shape=jax.ShapeDtypeStruct((rows, out_dim), jnp.float32),
        compiler_params=_cp(("parallel",)),
    )(h, pm["w"], pm["b"], po["w"], po["b"])


def quantize_ema_reset(x_flat, cb):
    """Eval forward of QuantizeEMAReset: returns (x_d value, loss, perplexity)."""
    M, C = x_flat.shape
    codebook = cb["w"]
    nb_code = codebook.shape[0]
    tm = _pick_tile(M, 512)
    # Keep the bf16 codebook VMEM-resident (grid-invariant block) whenever it fits.
    if nb_code * C * 2 <= 8 * 1024 * 1024:
        cbb = nb_code
    else:
        cbb = _pick_tile(nb_code, 2048, mult=128)
    idx = pl.pallas_call(
        functools.partial(_nearest_code_kernel, cb_block=cbb),
        grid=(M // tm, nb_code // cbb),
        in_specs=[pl.BlockSpec((tm, C), lambda m, c: (m, 0)),
                  pl.BlockSpec((cbb, C), lambda m, c: (c, 0)),
                  pl.BlockSpec((1, cbb), lambda m, c: (0, c))],
        out_specs=pl.BlockSpec((tm, 1), lambda m, c: (m, 0)),
        out_shape=jax.ShapeDtypeStruct((M, 1), jnp.int32),
        scratch_shapes=[pltpu.VMEM((tm, 1), jnp.float32),
                        pltpu.VMEM((tm, 1), jnp.int32)],
        compiler_params=_cp(("parallel", "arbitrary")),
    )(x_flat, cb["w_bf16"], cb["sqnorm"])
    code_idx = idx[:, 0]
    # Tiny O(M*C)/O(M) epilogue (row gather, MSE, code-usage stats) left to XLA.
    x_d = jnp.take(codebook, code_idx, axis=0)
    xf = x_flat.astype(jnp.float32)
    loss = jnp.mean((xf - x_d) ** 2)                             # F.mse_loss(x, x_d.detach())
    counts = jnp.zeros((nb_code,), jnp.float32).at[code_idx].add(1.0)
    prob = counts / jnp.sum(counts)
    perplexity = jnp.exp(-jnp.sum(prob * jnp.log(prob + 1e-7)))
    return x_d, loss, perplexity


# ----------------------------------------------------------------------------
# Parameter init (deterministic Conv1d-style uniform fan-in init; weights bf16,
# biases stored pre-reshaped (1, C) f32, fused upsample weights precomputed).
# ----------------------------------------------------------------------------
def _conv_init(key, cin, cout, k):
    kw, kb = jax.random.split(key)
    bound = 1.0 / float(cin * k) ** 0.5
    w = jax.random.uniform(kw, (k, cin, cout), jnp.float32, -bound, bound)
    b = jax.random.uniform(kb, (1, cout), jnp.float32, -bound, bound)
    return w, b


def init_conv(key, cin, cout, k):
    w, b = _conv_init(key, cin, cout, k)
    return {"w": w.astype(jnp.bfloat16), "b": b}


def init_up_conv(key, cin, cout):
    w, b = _conv_init(key, cin, cout, 3)
    # nearest-x2 upsample folded into the conv: even rows see (w0, w1+w2), odd (w0+w1, w2).
    return {"we": jnp.stack([w[0], w[1] + w[2]]).astype(jnp.bfloat16),
            "wo": jnp.stack([w[0] + w[1], w[2]]).astype(jnp.bfloat16),
            "b": b}


def init_resnet(key, width, depth):
    w1, b1, w2, b2 = [], [], [], []
    for _ in range(depth):
        key, k1, k2 = jax.random.split(key, 3)
        wa, ba = _conv_init(k1, width, width, 3)
        wb, bb = _conv_init(k2, width, width, 1)
        w1.append(wa); b1.append(ba); w2.append(wb[0]); b2.append(bb)
    return {"w1": jnp.concatenate(w1, axis=0).astype(jnp.bfloat16),   # (3*depth, C, C)
            "b1": jnp.stack(b1),                                      # (depth, 1, C) f32
            "w2": jnp.stack(w2).astype(jnp.bfloat16),                 # (depth, C, C)
            "b2": jnp.stack(b2)}                                      # (depth, 1, C) f32


def init_encoder(key, in_dim, out_dim, down_t, stride_t, width, depth):
    keys = jax.random.split(key, 2 + 2 * down_t)
    p = {"conv_in": init_conv(keys[0], in_dim, width, 3), "stages": []}
    ki = 1
    for _ in range(down_t):
        p["stages"].append({"down": init_conv(keys[ki], width, width, stride_t * 2),
                            "resnet": init_resnet(keys[ki + 1], width, depth)})
        ki += 2
    p["conv_out"] = init_conv(keys[ki], width, out_dim, 3)
    return p


def init_decoder(key, out_dim, emb_width, down_t, width, depth):
    keys = jax.random.split(key, 3 + 2 * down_t)
    p = {"conv_in": init_conv(keys[0], emb_width, width, 3), "stages": []}
    ki = 1
    for _ in range(down_t):
        p["stages"].append({"resnet": init_resnet(keys[ki], width, depth),
                            "up_conv": init_up_conv(keys[ki + 1], width, width)})
        ki += 2
    p["conv_mid"] = init_conv(keys[ki], width, width, 3)
    p["conv_out"] = init_conv(keys[ki + 1], width, out_dim, 3)
    return p


def init_vqvae(key, output_dim, nb_code, code_dim, emb_width, down_t, stride_t,
               width, depth):
    ke, kd, kq = jax.random.split(key, 3)
    cb = jax.random.normal(kq, (nb_code, code_dim), jnp.float32)
    return {
        "encoder": init_encoder(ke, output_dim, emb_width, down_t, stride_t, width, depth),
        "decoder": init_decoder(kd, output_dim, emb_width, down_t, width, depth),
        "codebook": {"w": cb,
                     "w_bf16": cb.astype(jnp.bfloat16),
                     "sqnorm": jnp.sum(cb * cb, axis=-1).reshape(1, nb_code)},
    }


# ----------------------------------------------------------------------------
# Forward (eval) - mirrors VQVAE_251.forward.
# ----------------------------------------------------------------------------
def vqvae_forward(params, x, *, stride_t=2, growth=3):
    # PyTorch preprocess() permutes (N,T,J)->(N,J,T); we keep channels-last and carry
    # activations as a flattened (N*T, C) matrix so batch folds into the MXU M dim
    # (postprocess() becomes the identity).
    assert stride_t == 2  # TODO(synk): only stride_t == 2 has a fused phase-decomposed kernel.
    N, T, _ = x.shape
    enc, dec = params["encoder"], params["decoder"]

    h = x.astype(jnp.bfloat16).reshape(N * T, -1)
    seq = T
    h = conv3(h, seq, N, enc["conv_in"], post_relu=True)
    for st in enc["stages"]:
        h, seq = encoder_stage(h, seq, N, st, growth=growth)
    x_enc = conv3(h, seq, N, enc["conv_out"], out_dtype=jnp.float32)   # (N*Tq, code_dim)

    x_d, loss, perplexity = quantize_ema_reset(x_enc, params["codebook"])
    # straight-through x + (x_d - x).detach() equals x_d in value (eval path)

    h = conv3(x_d.astype(jnp.bfloat16), seq, N, dec["conv_in"], post_relu=True)
    for st in dec["stages"]:
        h, seq = decoder_stage(h, seq, N, st, growth=growth)
    x_out = decoder_tail(h, seq, N, dec["conv_mid"], dec["conv_out"])
    return x_out.reshape(N, seq, -1), loss, perplexity


# TODO(synk): training-only paths (EMA codebook update / reset, init_codebook) and the
# 'orig'/'ema'/'reset' quantizer variants are not part of the eval forward pass.

if __name__ == "__main__":
    key = jax.random.PRNGKey(0)
    kp, kx = jax.random.split(key)

    # Small config consistent with VQVAE_251's constructor (scaled down).
    output_dim = 16      # motion feature dim (263 in the original)
    nb_code = 64         # 8192 in the original
    code_dim = 8         # == output_emb_width (32 in the original)
    emb_width = 8
    down_t, stride_t = 2, 2
    width, depth, growth = 16, 2, 3

    params = init_vqvae(kp, output_dim, nb_code, code_dim, emb_width,
                        down_t, stride_t, width, depth)

    N, T = 2, 16         # T divisible by stride_t**down_t
    x = jax.random.normal(kx, (N, T, output_dim), jnp.float32)

    fwd = jax.jit(functools.partial(vqvae_forward, stride_t=stride_t, growth=growth))
    x_out, loss, perplexity = fwd(params, x)
    jax.block_until_ready((x_out, loss, perplexity))

    assert x_out.shape == (N, T, output_dim)
    assert loss.shape == () and perplexity.shape == ()
    assert bool(jnp.all(jnp.isfinite(x_out)))
    assert bool(jnp.isfinite(loss)) and bool(jnp.isfinite(perplexity))
    print("KERNEL_OK")
</pallas_src>

<mosaic_0001>
module attributes {stable_mosaic.version = 11 : i64} {
  func.func @_conv3_kernel(%arg0: i32, %arg1: memref<16x16xbf16, #tpu.memory_space<vmem>>, %arg2: memref<3x16x16xbf16, #tpu.memory_space<vmem>>, %arg3: memref<1x16xf32, #tpu.memory_space<vmem>>, %arg4: memref<16x16xbf16, #tpu.memory_space<vmem>>) attributes {dimension_semantics = [#tpu.dimension_semantics<parallel>], iteration_bounds = array<i64: 2>, scalar_prefetch = 0 : i64, scratch_operands = 0 : i64, tpu.core_type = #tpu.core_type<tc>, window_params = [{transform_indices = @transform_0, window_bounds = array<i64: 16, 16>}, {pipeline_mode = #tpu.pipeline_mode<synchronous>, transform_indices = @transform_1, window_bounds = array<i64: 3, 16, 16>}, {pipeline_mode = #tpu.pipeline_mode<synchronous>, transform_indices = @transform_2, window_bounds = array<i64: 1, 16>}, {transform_indices = @transform_3, window_bounds = array<i64: 16, 16>}]} {
    %c0 = arith.constant 0 : index
    %c0_0 = arith.constant 0 : index
    %0 = vector.load %arg1[%c0, %c0_0] : memref<16x16xbf16, #tpu.memory_space<vmem>>, vector<16x16xbf16>
    %1 = tpu.iota {dimensions = array<i32: 0>} : vector<16x1xi32>
    %2 = arith.extf %0 : vector<16x16xbf16> to vector<16x16xf32>
    %c0_1 = arith.constant 0 : index
    %c0_2 = arith.constant 0 : index
    %c0_3 = arith.constant 0 : index
    %3 = vector.load %arg2[%c0_1, %c0_2, %c0_3] : memref<3x16x16xbf16, #tpu.memory_space<vmem>>, vector<1x16x16xbf16>
    %4 = vector.shape_cast %3 : vector<1x16x16xbf16> to vector<16x16xbf16>
    %c1 = arith.constant 1 : index
    %c0_4 = arith.constant 0 : index
    %c0_5 = arith.constant 0 : index
    %5 = vector.load %arg2[%c1, %c0_4, %c0_5] : memref<3x16x16xbf16, #tpu.memory_space<vmem>>, vector<1x16x16xbf16>
    %6 = vector.shape_cast %5 : vector<1x16x16xbf16> to vector<16x16xbf16>
    %c2 = arith.constant 2 : index
    %c0_6 = arith.constant 0 : index
    %c0_7 = arith.constant 0 : index
    %7 = vector.load %arg2[%c2, %c0_6, %c0_7] : memref<3x16x16xbf16, #tpu.memory_space<vmem>>, vector<1x16x16xbf16>
    %8 = vector.shape_cast %7 : vector<1x16x16xbf16> to vector<16x16xbf16>
    %c0_8 = arith.constant 0 : index
    %c0_9 = arith.constant 0 : index
    %9 = vector.load %arg3[%c0_8, %c0_9] : memref<1x16xf32, #tpu.memory_space<vmem>>, vector<1x16xf32>
    %cst = arith.constant dense<0.000000e+00> : vector<16x16xf32>
    %10 = tpu.matmul %0, %6, %cst {dimension_numbers = #tpu.dot_dimension_numbers<[1], [0], [0], [1], [0, 0, 1, 1], [], []>} : vector<16x16xbf16>, vector<16x16xbf16>, vector<16x16xf32> -> vector<16x16xf32>
    %11 = vector.broadcast %9 : vector<1x16xf32> to vector<16x16xf32>
    %12 = arith.addf %10, %11 : vector<16x16xf32>
    %c1_i32 = arith.constant 1 : i32
    %13 = tpu.dynamic_rotate %2 by %c1_i32 dim 0 : vector<16x16xf32>, i32 -> vector<16x16xf32>
    %c1_i32_10 = arith.constant 1 : i32
    %14 = vector.broadcast %c1_i32_10 : i32 to vector<16x1xi32>
    %15 = arith.cmpi sge, %1, %14 : vector<16x1xi32>
    %cst_11 = arith.constant 0.000000e+00 : f32
    %16 = vector.broadcast %cst_11 : f32 to vector<16x16xf32>
    %17 = vector.shape_cast %15 : vector<16x1xi1> to vector<16x1xi1>
    %18 = vector.broadcast %17 : vector<16x1xi1> to vector<16x16xi1>
    %19 = arith.select %18, %13, %16 : vector<16x16xi1>, vector<16x16xf32>
    %20 = arith.truncf %19 : vector<16x16xf32> to vector<16x16xbf16>
    %cst_12 = arith.constant dense<0.000000e+00> : vector<16x16xf32>
    %21 = tpu.matmul %20, %4, %cst_12 {dimension_numbers = #tpu.dot_dimension_numbers<[1], [0], [0], [1], [0, 0, 1, 1], [], []>} : vector<16x16xbf16>, vector<16x16xbf16>, vector<16x16xf32> -> vector<16x16xf32>
    %22 = arith.addf %12, %21 : vector<16x16xf32>
    %c15_i32 = arith.constant 15 : i32
    %23 = tpu.dynamic_rotate %2 by %c15_i32 dim 0 : vector<16x16xf32>, i32 -> vector<16x16xf32>
    %c15_i32_13 = arith.constant 15 : i32
    %24 = vector.broadcast %c15_i32_13 : i32 to vector<16x1xi32>
    %25 = arith.cmpi slt, %1, %24 : vector<16x1xi32>
    %cst_14 = arith.constant 0.000000e+00 : f32
    %26 = vector.broadcast %cst_14 : f32 to vector<16x16xf32>
    %27 = vector.shape_cast %25 : vector<16x1xi1> to vector<16x1xi1>
    %28 = vector.broadcast %27 : vector<16x1xi1> to vector<16x16xi1>
    %29 = arith.select %28, %23, %26 : vector<16x16xi1>, vector<16x16xf32>
    %30 = arith.truncf %29 : vector<16x16xf32> to vector<16x16xbf16>
    %cst_15 = arith.constant dense<0.000000e+00> : vector<16x16xf32>
    %31 = tpu.matmul %30, %8, %cst_15 {dimension_numbers = #tpu.dot_dimension_numbers<[1], [0], [0], [1], [0, 0, 1, 1], [], []>} : vector<16x16xbf16>, vector<16x16xbf16>, vector<16x16xf32> -> vector<16x16xf32>
    %32 = arith.addf %22, %31 : vector<16x16xf32>
    %cst_16 = arith.constant 0.000000e+00 : f32
    %33 = vector.broadcast %cst_16 : f32 to vector<16x16xf32>
    %34 = arith.maximumf %32, %33 : vector<16x16xf32>
    %35 = arith.truncf %34 : vector<16x16xf32> to vector<16x16xbf16>
    %c0_17 = arith.constant 0 : index
    %c0_18 = arith.constant 0 : index
    %36 = vector.load %arg4[%c0_17, %c0_18] : memref<16x16xbf16, #tpu.memory_space<vmem>>, vector<16x16xbf16>
    tpu.vector_store %arg4[%c0_17, %c0_18], %35 {strides = array<i32>} : memref<16x16xbf16, #tpu.memory_space<vmem>>, vector<16x16xbf16>,
    return
  }
  func.func @transform_0(%arg0: i32) -> (i32, i32) {
    %c0_i32 = arith.constant 0 : i32
    %c0_i32_0 = arith.constant 0 : i32
    return %arg0, %c0_i32 : i32, i32
  }
  func.func @transform_1(%arg0: i32) -> (i32, i32, i32) {
    %c0_i32 = arith.constant 0 : i32
    %c0_i32_0 = arith.constant 0 : i32
    %c0_i32_1 = arith.constant 0 : i32
    %c0_i32_2 = arith.constant 0 : i32
    return %c0_i32, %c0_i32_0, %c0_i32_1 : i32, i32, i32
  }
  func.func @transform_2(%arg0: i32) -> (i32, i32) {
    %c0_i32 = arith.constant 0 : i32
    %c0_i32_0 = arith.constant 0 : i32
    %c0_i32_1 = arith.constant 0 : i32
    return %c0_i32, %c0_i32_0 : i32, i32
  }
  func.func @transform_3(%arg0: i32) -> (i32, i32) {
    %c0_i32 = arith.constant 0 : i32
    %c0_i32_0 = arith.constant 0 : i32
    return %arg0, %c0_i32 : i32, i32
  }
}

module attributes {stable_mosaic.version = 11 : i64} {
  func.func @_enc_stage_kernel(%arg0: i32, %arg1: memref<8x32xbf16, #tpu.memory_space<vmem>>, %arg2: memref<4x16x16xbf16, #tpu.memory_space<vmem>>, %arg3: memref<1x16xf32, #tpu.memory_space<vmem>>, %arg4: memref<6x16x16xbf16, #tpu.memory_space<vmem>>, %arg5: memref<2x1x16xf32, #tpu.memory_space<vmem>>, %arg6: memref<2x16x16xbf16, #tpu.memory_space<vmem>>, %arg7: memref<2x1x16xf32, #tpu.memory_space<vmem>>, %arg8: memref<8x16xbf16, #tpu.memory_space<vmem>>) attributes {dimension_semantics = [#tpu.dimension_semantics<parallel>], iteration_bounds = array<i64: 2>, scalar_prefetch = 0 : i64, scratch_operands = 0 : i64, tpu.core_type = #tpu.core_type<tc>, window_params = [{transform_indices = @transform_0, window_bounds = array<i64: 8, 32>}, {pipeline_mode = #tpu.pipeline_mode<synchronous>, transform_indices = @transform_1, window_bounds = array<i64: 4, 16, 16>}, {pipeline_mode = #tpu.pipeline_mode<synchronous>, transform_indices = @transform_2, window_bounds = array<i64: 1, 16>}, {pipeline_mode = #tpu.pipeline_mode<synchronous>, transform_indices = @transform_3, window_bounds = array<i64: 6, 16, 16>}, {pipeline_mode = #tpu.pipeline_mode<synchronous>, transform_indices = @transform_4, window_bounds = array<i64: 2, 1, 16>}, {pipeline_mode = #tpu.pipeline_mode<synchronous>, transform_indices = @transform_5, window_bounds = array<i64: 2, 16, 16>}, {pipeline_mode = #tpu.pipeline_mode<synchronous>, transform_indices = @transform_6, window_bounds = array<i64: 2, 1, 16>}, {transform_indices = @transform_7, window_bounds = array<i64: 8, 16>}]} {
    %c0 = arith.constant 0 : index
    %c0_0 = arith.constant 0 : index
    %0 = vector.load %arg1[%c0, %c0_0] : memref<8x32xbf16, #tpu.memory_space<vmem>>, vector<8x32xbf16>
    %1 = vector.extract_strided_slice %0 {offsets = [0, 0], sizes = [8, 16], strides = [1, 1]} : vector<8x32xbf16> to vector<8x16xbf16>
    %2 = vector.extract_strided_slice %0 {offsets = [0, 16], sizes = [8, 16], strides = [1, 1]} : vector<8x32xbf16> to vector<8x16xbf16>
    %3 = tpu.iota {dimensions = array<i32: 0>} : vector<8x1xi32>
    %4 = arith.extf %0 : vector<8x32xbf16> to vector<8x32xf32>
    %c1_i32 = arith.constant 1 : i32
    %5 = tpu.dynamic_rotate %4 by %c1_i32 dim 0 : vector<8x32xf32>, i32 -> vector<8x32xf32>
    %c1_i32_1 = arith.constant 1 : i32
    %6 = vector.broadcast %c1_i32_1 : i32 to vector<8x1xi32>
    %7 = arith.cmpi sge, %3, %6 : vector<8x1xi32>
    %cst = arith.constant 0.000000e+00 : f32
    %8 = vector.broadcast %cst : f32 to vector<8x32xf32>
    %9 = vector.shape_cast %7 : vector<8x1xi1> to vector<8x1xi1>
    %10 = vector.broadcast %9 : vector<8x1xi1> to vector<8x32xi1>
    %11 = arith.select %10, %5, %8 : vector<8x32xi1>, vector<8x32xf32>
    %c7_i32 = arith.constant 7 : i32
    %12 = tpu.dynamic_rotate %4 by %c7_i32 dim 0 : vector<8x32xf32>, i32 -> vector<8x32xf32>
    %c7_i32_2 = arith.constant 7 : i32
    %13 = vector.broadcast %c7_i32_2 : i32 to vector<8x1xi32>
    %14 = arith.cmpi slt, %3, %13 : vector<8x1xi32>
    %cst_3 = arith.constant 0.000000e+00 : f32
    %15 = vector.broadcast %cst_3 : f32 to vector<8x32xf32>
    %16 = vector.shape_cast %14 : vector<8x1xi1> to vector<8x1xi1>
    %17 = vector.broadcast %16 : vector<8x1xi1> to vector<8x32xi1>
    %18 = arith.select %17, %12, %15 : vector<8x32xi1>, vector<8x32xf32>
    %c1 = arith.constant 1 : index
    %c0_4 = arith.constant 0 : index
    %c0_5 = arith.constant 0 : index
    %19 = vector.load %arg2[%c1, %c0_4, %c0_5] : memref<4x16x16xbf16, #tpu.memory_space<vmem>>, vector<1x16x16xbf16>
    %20 = vector.shape_cast %19 : vector<1x16x16xbf16> to vector<16x16xbf16>
    %cst_6 = arith.constant dense<0.000000e+00> : vector<8x16xf32>
    %21 = tpu.matmul %1, %20, %cst_6 {dimension_numbers = #tpu.dot_dimension_numbers<[1], [0], [0], [1], [0, 0, 1, 1], [], []>} : vector<8x16xbf16>, vector<16x16xbf16>, vector<8x16xf32> -> vector<8x16xf32>
    %c0_7 = arith.constant 0 : index
    %c0_8 = arith.constant 0 : index
    %22 = vector.load %arg3[%c0_7, %c0_8] : memref<1x16xf32, #tpu.memory_space<vmem>>, vector<1x16xf32>
    %23 = vector.broadcast %22 : vector<1x16xf32> to vector<8x16xf32>
    %24 = arith.addf %21, %23 : vector<8x16xf32>
    %c2 = arith.constant 2 : index
    %c0_9 = arith.constant 0 : index
    %c0_10 = arith.constant 0 : index
    %25 = vector.load %arg2[%c2, %c0_9, %c0_10] : memref<4x16x16xbf16, #tpu.memory_space<vmem>>, vector<1x16x16xbf16>
    %26 = vector.shape_cast %25 : vector<1x16x16xbf16> to vector<16x16xbf16>
    %cst_11 = arith.constant dense<0.000000e+00> : vector<8x16xf32>
    %27 = tpu.matmul %2, %26, %cst_11 {dimension_numbers = #tpu.dot_dimension_numbers<[1], [0], [0], [1], [0, 0, 1, 1], [], []>} : vector<8x16xbf16>, vector<16x16xbf16>, vector<8x16xf32> -> vector<8x16xf32>
    %28 = arith.addf %24, %27 : vector<8x16xf32>
    %29 = vector.extract_strided_slice %11 {offsets = [0, 16], sizes = [8, 16], strides = [1, 1]} : vector<8x32xf32> to vector<8x16xf32>
    %30 = arith.truncf %29 : vector<8x16xf32> to vector<8x16xbf16>
    %c0_12 = arith.constant 0 : index
    %c0_13 = arith.constant 0 : index
    %c0_14 = arith.constant 0 : index
    %31 = vector.load %arg2[%c0_12, %c0_13, %c0_14] : memref<4x16x16xbf16, #tpu.memory_space<vmem>>, vector<1x16x16xbf16>
    %32 = vector.shape_cast %31 : vector<1x16x16xbf16> to vector<16x16xbf16>
    %cst_15 = arith.constant dense<0.000000e+00> : vector<8x16xf32>
    %33 = tpu.matmul %30, %32, %cst_15 {dimension_numbers = #tpu.dot_dimension_numbers<[1], [0], [0], [1], [0, 0, 1, 1], [], []>} : vector<8x16xbf16>, vector<16x16xbf16>, vector<8x16xf32> -> vector<8x16xf32>
    %34 = arith.addf %28, %33 : vector<8x16xf32>
    %35 = vector.extract_strided_slice %18 {offsets = [0, 0], sizes = [8, 16], strides = [1, 1]} : vector<8x32xf32> to vector<8x16xf32>
    %36 = arith.truncf %35 : vector<8x16xf32> to vector<8x16xbf16>
    %c3 = arith.constant 3 : index
    %c0_16 = arith.constant 0 : index
    %c0_17 = arith.constant 0 : index
    %37 = vector.load %arg2[%c3, %c0_16, %c0_17] : memref<4x16x16xbf16, #tpu.memory_space<vmem>>, vector<1x16x16xbf16>
    %38 = vector.shape_cast %37 : vector<1x16x16xbf16> to vector<16x16xbf16>
    %cst_18 = arith.constant dense<0.000000e+00> : vector<8x16xf32>
    %39 = tpu.matmul %36, %38, %cst_18 {dimension_numbers = #tpu.dot_dimension_numbers<[1], [0], [0], [1], [0, 0, 1, 1], [], []>} : vector<8x16xbf16>, vector<16x16xbf16>, vector<8x16xf32> -> vector<8x16xf32>
    %40 = arith.addf %34, %39 : vector<8x16xf32>
    %cst_19 = arith.constant 0.000000e+00 : f32
    %41 = vector.broadcast %cst_19 : f32 to vector<8x16xf32>
    %42 = arith.maximumf %40, %41 : vector<8x16xf32>
    %43 = arith.truncf %42 : vector<8x16xf32> to vector<8x16xbf16>
    %c0_20 = arith.constant 0 : index
    %c0_21 = arith.constant 0 : index
    %c0_22 = arith.constant 0 : index
    %44 = vector.load %arg4[%c0_20, %c0_21, %c0_22] : memref<6x16x16xbf16, #tpu.memory_space<vmem>>, vector<1x16x16xbf16>
    %45 = vector.shape_cast %44 : vector<1x16x16xbf16> to vector<16x16xbf16>
    %c1_23 = arith.constant 1 : index
    %c0_24 = arith.constant 0 : index
    %c0_25 = arith.constant 0 : index
    %46 = vector.load %arg4[%c1_23, %c0_24, %c0_25] : memref<6x16x16xbf16, #tpu.memory_space<vmem>>, vector<1x16x16xbf16>
    %47 = vector.shape_cast %46 : vector<1x16x16xbf16> to vector<16x16xbf16>
    %c2_26 = arith.constant 2 : index
    %c0_27 = arith.constant 0 : index
    %c0_28 = arith.constant 0 : index
    %48 = vector.load %arg4[%c2_26, %c0_27, %c0_28] : memref<6x16x16xbf16, #tpu.memory_space<vmem>>, vector<1x16x16xbf16>
    %49 = vector.shape_cast %48 : vector<1x16x16xbf16> to vector<16x16xbf16>
    %c0_29 = arith.constant 0 : index
    %c0_30 = arith.constant 0 : index
    %c0_31 = arith.constant 0 : index
    %50 = vector.load %arg5[%c0_29, %c0_30, %c0_31] : memref<2x1x16xf32, #tpu.memory_space<vmem>>, vector<1x1x16xf32>
    %51 = vector.shape_cast %50 : vector<1x1x16xf32> to vector<1x16xf32>
    %cst_32 = arith.constant dense<0.000000e+00> : vector<8x16xf32>
    %52 = tpu.matmul %43, %47, %cst_32 {dimension_numbers = #tpu.dot_dimension_numbers<[1], [0], [0], [1], [0, 0, 1, 1], [], []>} : vector<8x16xbf16>, vector<16x16xbf16>, vector<8x16xf32> -> vector<8x16xf32>
    %53 = vector.broadcast %51 : vector<1x16xf32> to vector<8x16xf32>
    %54 = arith.addf %52, %53 : vector<8x16xf32>
    %c3_i32 = arith.constant 3 : i32
    %55 = tpu.dynamic_rotate %42 by %c3_i32 dim 0 : vector<8x16xf32>, i32 -> vector<8x16xf32>
    %c3_i32_33 = arith.constant 3 : i32
    %56 = vector.broadcast %c3_i32_33 : i32 to vector<8x1xi32>
    %57 = arith.cmpi sge, %3, %56 : vector<8x1xi32>
    %cst_34 = arith.constant 0.000000e+00 : f32
    %58 = vector.broadcast %cst_34 : f32 to vector<8x16xf32>
    %59 = vector.shape_cast %57 : vector<8x1xi1> to vector<8x1xi1>
    %60 = vector.broadcast %59 : vector<8x1xi1> to vector<8x16xi1>
    %61 = arith.select %60, %55, %58 : vector<8x16xi1>, vector<8x16xf32>
    %62 = arith.truncf %61 : vector<8x16xf32> to vector<8x16xbf16>
    %cst_35 = arith.constant dense<0.000000e+00> : vector<8x16xf32>
    %63 = tpu.matmul %62, %45, %cst_35 {dimension_numbers = #tpu.dot_dimension_numbers<[1], [0], [0], [1], [0, 0, 1, 1], [], []>} : vector<8x16xbf16>, vector<16x16xbf16>, vector<8x16xf32> -> vector<8x16xf32>
    %64 = arith.addf %54, %63 : vector<8x16xf32>
    %c5_i32 = arith.constant 5 : i32
    %65 = tpu.dynamic_rotate %42 by %c5_i32 dim 0 : vector<8x16xf32>, i32 -> vector<8x16xf32>
    %c5_i32_36 = arith.constant 5 : i32
    %66 = vector.broadcast %c5_i32_36 : i32 to vector<8x1xi32>
    %67 = arith.cmpi slt, %3, %66 : vector<8x1xi32>
    %cst_37 = arith.constant 0.000000e+00 : f32
    %68 = vector.broadcast %cst_37 : f32 to vector<8x16xf32>
    %69 = vector.shape_cast %67 : vector<8x1xi1> to vector<8x1xi1>
    %70 = vector.broadcast %69 : vector<8x1xi1> to vector<8x16xi1>
    %71 = arith.select %70, %65, %68 : vector<8x16xi1>, vector<8x16xf32>
    %72 = arith.truncf %71 : vector<8x16xf32> to vector<8x16xbf16>
    %cst_38 = arith.constant dense<0.000000e+00> : vector<8x16xf32>
    %73 = tpu.matmul %72, %49, %cst_38 {dimension_numbers = #tpu.dot_dimension_numbers<[1], [0], [0], [1], [0, 0, 1, 1], [], []>} : vector<8x16xbf16>, vector<16x16xbf16>, vector<8x16xf32> -> vector<8x16xf32>
    %74 = arith.addf %64, %73 : vector<8x16xf32>
    %cst_39 = arith.constant 0.000000e+00 : f32
    %75 = vector.broadcast %cst_39 : f32 to vector<8x16xf32>
    %76 = arith.maximumf %74, %75 : vector<8x16xf32>
    %77 = arith.truncf %76 : vector<8x16xf32> to vector<8x16xbf16>
    %c0_40 = arith.constant 0 : index
    %c0_41 = arith.constant 0 : index
    %c0_42 = arith.constant 0 : index
    %78 = vector.load %arg6[%c0_40, %c0_41, %c0_42] : memref<2x16x16xbf16, #tpu.memory_space<vmem>>, vector<1x16x16xbf16>
    %79 = vector.shape_cast %78 : vector<1x16x16xbf16> to vector<16x16xbf16>
    %cst_43 = arith.constant dense<0.000000e+00> : vector<8x16xf32>
    %80 = tpu.matmul %77, %79, %cst_43 {dimension_numbers = #tpu.dot_dimension_numbers<[1], [0], [0], [1], [0, 0, 1, 1], [], []>} : vector<8x16xbf16>, vector<16x16xbf16>, vector<8x16xf32> -> vector<8x16xf32>
    %81 = arith.addf %40, %80 : vector<8x16xf32>
    %c0_44 = arith.constant 0 : index
    %c0_45 = arith.constant 0 : index
    %c0_46 = arith.constant 0 : index
    %82 = vector.load %arg7[%c0_44, %c0_45, %c0_46] : memref<2x1x16xf32, #tpu.memory_space<vmem>>, vector<1x1x16xf32>
    %83 = vector.shape_cast %82 : vector<1x1x16xf32> to vector<1x16xf32>
    %84 = vector.broadcast %83 : vector<1x16xf32> to vector<8x16xf32>
    %85 = arith.addf %81, %84 : vector<8x16xf32>
    %cst_47 = arith.constant 0.000000e+00 : f32
    %86 = vector.broadcast %cst_47 : f32 to vector<8x16xf32>
    %87 = arith.maximumf %85, %86 : vector<8x16xf32>
    %88 = arith.truncf %87 : vector<8x16xf32> to vector<8x16xbf16>
    %c3_48 = arith.constant 3 : index
    %c0_49 = arith.constant 0 : index
    %c0_50 = arith.constant 0 : index
    %89 = vector.load %arg4[%c3_48, %c0_49, %c0_50] : memref<6x16x16xbf16, #tpu.memory_space<vmem>>, vector<1x16x16xbf16>
    %90 = vector.shape_cast %89 : vector<1x16x16xbf16> to vector<16x16xbf16>
    %c4 = arith.constant 4 : index
    %c0_51 = arith.constant 0 : index
    %c0_52 = arith.constant 0 : index
    %91 = vector.load %arg4[%c4, %c0_51, %c0_52] : memref<6x16x16xbf16, #tpu.memory_space<vmem>>, vector<1x16x16xbf16>
    %92 = vector.shape_cast %91 : vector<1x16x16xbf16> to vector<16x16xbf16>
    %c5 = arith.constant 5 : index
    %c0_53 = arith.constant 0 : index
    %c0_54 = arith.constant 0 : index
    %93 = vector.load %arg4[%c5, %c0_53, %c0_54] : memref<6x16x16xbf16, #tpu.memory_space<vmem>>, vector<1x16x16xbf16>
    %94 = vector.shape_cast %93 : vector<1x16x16xbf16> to vector<16x16xbf16>
    %c1_55 = arith.constant 1 : index
    %c0_56 = arith.constant 0 : index
    %c0_57 = arith.constant 0 : index
    %95 = vector.load %arg5[%c1_55, %c0_56, %c0_57] : memref<2x1x16xf32, #tpu.memory_space<vmem>>, vector<1x1x16xf32>
    %96 = vector.shape_cast %95 : vector<1x1x16xf32> to vector<1x16xf32>
    %cst_58 = arith.constant dense<0.000000e+00> : vector<8x16xf32>
    %97 = tpu.matmul %88, %92, %cst_58 {dimension_numbers = #tpu.dot_dimension_numbers<[1], [0], [0], [1], [0, 0, 1, 1], [], []>} : vector<8x16xbf16>, vector<16x16xbf16>, vector<8x16xf32> -> vector<8x16xf32>
    %98 = vector.broadcast %96 : vector<1x16xf32> to vector<8x16xf32>
    %99 = arith.addf %97, %98 : vector<8x16xf32>
    %c1_i32_59 = arith.constant 1 : i32
    %100 = tpu.dynamic_rotate %87 by %c1_i32_59 dim 0 : vector<8x16xf32>, i32 -> vector<8x16xf32>
    %c1_i32_60 = arith.constant 1 : i32
    %101 = vector.broadcast %c1_i32_60 : i32 to vector<8x1xi32>
    %102 = arith.cmpi sge, %3, %101 : vector<8x1xi32>
    %cst_61 = arith.constant 0.000000e+00 : f32
    %103 = vector.broadcast %cst_61 : f32 to vector<8x16xf32>
    %104 = vector.shape_cast %102 : vector<8x1xi1> to vector<8x1xi1>
    %105 = vector.broadcast %104 : vector<8x1xi1> to vector<8x16xi1>
    %106 = arith.select %105, %100, %103 : vector<8x16xi1>, vector<8x16xf32>
    %107 = arith.truncf %106 : vector<8x16xf32> to vector<8x16xbf16>
    %cst_62 = arith.constant dense<0.000000e+00> : vector<8x16xf32>
    %108 = tpu.matmul %107, %90, %cst_62 {dimension_numbers = #tpu.dot_dimension_numbers<[1], [0], [0], [1], [0, 0, 1, 1], [], []>} : vector<8x16xbf16>, vector<16x16xbf16>, vector<8x16xf32> -> vector<8x16xf32>
    %109 = arith.addf %99, %108 : vector<8x16xf32>
    %c7_i32_63 = arith.constant 7 : i32
    %110 = tpu.dynamic_rotate %87 by %c7_i32_63 dim 0 : vector<8x16xf32>, i32 -> vector<8x16xf32>
    %c7_i32_64 = arith.constant 7 : i32
    %111 = vector.broadcast %c7_i32_64 : i32 to vector<8x1xi32>
    %112 = arith.cmpi slt, %3, %111 : vector<8x1xi32>
    %cst_65 = arith.constant 0.000000e+00 : f32
    %113 = vector.broadcast %cst_65 : f32 to vector<8x16xf32>
    %114 = vector.shape_cast %112 : vector<8x1xi1> to vector<8x1xi1>
    %115 = vector.broadcast %114 : vector<8x1xi1> to vector<8x16xi1>
    %116 = arith.select %115, %110, %113 : vector<8x16xi1>, vector<8x16xf32>
    %117 = arith.truncf %116 : vector<8x16xf32> to vector<8x16xbf16>
    %cst_66 = arith.constant dense<0.000000e+00> : vector<8x16xf32>
    %118 = tpu.matmul %117, %94, %cst_66 {dimension_numbers = #tpu.dot_dimension_numbers<[1], [0], [0], [1], [0, 0, 1, 1], [], []>} : vector<8x16xbf16>, vector<16x16xbf16>, vector<8x16xf32> -> vector<8x16xf32>
    %119 = arith.addf %109, %118 : vector<8x16xf32>
    %cst_67 = arith.constant 0.000000e+00 : f32
    %120 = vector.broadcast %cst_67 : f32 to vector<8x16xf32>
    %121 = arith.maximumf %119, %120 : vector<8x16xf32>
    %122 = arith.truncf %121 : vector<8x16xf32> to vector<8x16xbf16>
    %c1_68 = arith.constant 1 : index
    %c0_69 = arith.constant 0 : index
    %c0_70 = arith.constant 0 : index
    %123 = vector.load %arg6[%c1_68, %c0_69, %c0_70] : memref<2x16x16xbf16, #tpu.memory_space<vmem>>, vector<1x16x16xbf16>
    %124 = vector.shape_cast %123 : vector<1x16x16xbf16> to vector<16x16xbf16>
    %cst_71 = arith.constant dense<0.000000e+00> : vector<8x16xf32>
    %125 = tpu.matmul %122, %124, %cst_71 {dimension_numbers = #tpu.dot_dimension_numbers<[1], [0], [0], [1], [0, 0, 1, 1], [], []>} : vector<8x16xbf16>, vector<16x16xbf16>, vector<8x16xf32> -> vector<8x16xf32>
    %126 = arith.addf %85, %125 : vector<8x16xf32>
    %c1_72 = arith.constant 1 : index
    %c0_73 = arith.constant 0 : index
    %c0_74 = arith.constant 0 : index
    %127 = vector.load %arg7[%c1_72, %c0_73, %c0_74] : memref<2x1x16xf32, #tpu.memory_space<vmem>>, vector<1x1x16xf32>
    %128 = vector.shape_cast %127 : vector<1x1x16xf32> to vector<1x16xf32>
    %129 = vector.broadcast %128 : vector<1x16xf32> to vector<8x16xf32>
    %130 = arith.addf %126, %129 : vector<8x16xf32>
    %131 = arith.truncf %130 : vector<8x16xf32> to vector<8x16xbf16>
    %c0_75 = arith.constant 0 : index
    %c0_76 = arith.constant 0 : index
    %132 = vector.load %arg8[%c0_75, %c0_76] : memref<8x16xbf16, #tpu.memory_space<vmem>>, vector<8x16xbf16>
    tpu.vector_store %arg8[%c0_75, %c0_76], %131 {strides = array<i32>} : memref<8x16xbf16, #tpu.memory_space<vmem>>, vector<8x16xbf16>,
    return
  }
  func.func @transform_0(%arg0: i32) -> (i32, i32) {
    %c0_i32 = arith.constant 0 : i32
    %c0_i32_0 = arith.constant 0 : i32
    return %arg0, %c0_i32 : i32, i32
  }
  func.func @transform_1(%arg0: i32) -> (i32, i32, i32) {
    %c0_i32 = arith.constant 0 : i32
    %c0_i32_0 = arith.constant 0 : i32
    %c0_i32_1 = arith.constant 0 : i32
    %c0_i32_2 = arith.constant 0 : i32
    return %c0_i32, %c0_i32_0, %c0_i32_1 : i32, i32, i32
  }
  func.func @transform_2(%arg0: i32) -> (i32, i32) {
    %c0_i32 = arith.constant 0 : i32
    %c0_i32_0 = arith.constant 0 : i32
    %c0_i32_1 = arith.constant 0 : i32
    return %c0_i32, %c0_i32_0 : i32, i32
  }
  func.func @transform_3(%arg0: i32) -> (i32, i32, i32) {
    %c0_i32 = arith.constant 0 : i32
    %c0_i32_0 = arith.constant 0 : i32
    %c0_i32_1 = arith.constant 0 : i32
    %c0_i32_2 = arith.constant 0 : i32
    return %c0_i32, %c0_i32_0, %c0_i32_1 : i32, i32, i32
  }
  func.func @transform_4(%arg0: i32) -> (i32, i32, i32) {
    %c0_i32 = arith.constant 0 : i32
    %c0_i32_0 = arith.constant 0 : i32
    %c0_i32_1 = arith.constant 0 : i32
    %c0_i32_2 = arith.constant 0 : i32
    return %c0_i32, %c0_i32_0, %c0_i32_1 : i32, i32, i32
  }
  func.func @transform_5(%arg0: i32) -> (i32, i32, i32) {
    %c0_i32 = arith.constant 0 : i32
    %c0_i32_0 = arith.constant 0 : i32
    %c0_i32_1 = arith.constant 0 : i32
    %c0_i32_2 = arith.constant 0 : i32
    return %c0_i32, %c0_i32_0, %c0_i32_1 : i32, i32, i32
  }
  func.func @transform_6(%arg0: i32) -> (i32, i32, i32) {
    %c0_i32 = arith.constant 0 : i32
    %c0_i32_0 = arith.constant 0 : i32
    %c0_i32_1 = arith.constant 0 : i32
    %c0_i32_2 = arith.constant 0 : i32
    return %c0_i32, %c0_i32_0, %c0_i32_1 : i32, i32, i32
  }
  func.func @transform_7(%arg0: i32) -> (i32, i32) {
    %c0_i32 = arith.constant 0 : i32
    %c0_i32_0 = arith.constant 0 : i32
    return %arg0, %c0_i32 : i32, i32
  }
}

module attributes {stable_mosaic.version = 11 : i64} {
  func.func @_enc_stage_kernel(%arg0: i32, %arg1: memref<8x32xbf16, #tpu.memory_space<vmem>>, %arg2: memref<4x16x16xbf16, #tpu.memory_space<vmem>>, %arg3: memref<1x16xf32, #tpu.memory_space<vmem>>, %arg4: memref<6x16x16xbf16, #tpu.memory_space<vmem>>, %arg5: memref<2x1x16xf32, #tpu.memory_space<vmem>>, %arg6: memref<2x16x16xbf16, #tpu.memory_space<vmem>>, %arg7: memref<2x1x16xf32, #tpu.memory_space<vmem>>, %arg8: memref<8x16xbf16, #tpu.memory_space<vmem>>) attributes {dimension_semantics = [#tpu.dimension_semantics<parallel>], iteration_bounds = array<i64: 1>, scalar_prefetch = 0 : i64, scratch_operands = 0 : i64, tpu.core_type = #tpu.core_type<tc>, window_params = [{transform_indices = @transform_0, window_bounds = array<i64: 8, 32>}, {pipeline_mode = #tpu.pipeline_mode<synchronous>, transform_indices = @transform_1, window_bounds = array<i64: 4, 16, 16>}, {pipeline_mode = #tpu.pipeline_mode<synchronous>, transform_indices = @transform_2, window_bounds = array<i64: 1, 16>}, {pipeline_mode = #tpu.pipeline_mode<synchronous>, transform_indices = @transform_3, window_bounds = array<i64: 6, 16, 16>}, {pipeline_mode = #tpu.pipeline_mode<synchronous>, transform_indices = @transform_4, window_bounds = array<i64: 2, 1, 16>}, {pipeline_mode = #tpu.pipeline_mode<synchronous>, transform_indices = @transform_5, window_bounds = array<i64: 2, 16, 16>}, {pipeline_mode = #tpu.pipeline_mode<synchronous>, transform_indices = @transform_6, window_bounds = array<i64: 2, 1, 16>}, {transform_indices = @transform_7, window_bounds = array<i64: 8, 16>}]} {
    %c0 = arith.constant 0 : index
    %c0_0 = arith.constant 0 : index
    %0 = vector.load %arg1[%c0, %c0_0] : memref<8x32xbf16, #tpu.memory_space<vmem>>, vector<8x32xbf16>
    %1 = vector.extract_strided_slice %0 {offsets = [0, 0], sizes = [8, 16], strides = [1, 1]} : vector<8x32xbf16> to vector<8x16xbf16>
    %2 = vector.extract_strided_slice %0 {offsets = [0, 16], sizes = [8, 16], strides = [1, 1]} : vector<8x32xbf16> to vector<8x16xbf16>
    %3 = tpu.iota {dimensions = array<i32: 0>} : vector<8x1xi32>
    %c4_i32 = arith.constant 4 : i32
    %c0_i32 = arith.constant 0 : i32
    %4 = arith.cmpi eq, %c4_i32, %c0_i32 : i32
    %c1_i32 = arith.constant 1 : i32
    %5 = arith.select %4, %c1_i32, %c4_i32 : i32
    %6 = vector.broadcast %5 : i32 to vector<8x1xi32>
    %7 = arith.remsi %3, %6 : vector<8x1xi32>
    %c0_i32_1 = arith.constant 0 : i32
    %8 = vector.broadcast %c0_i32_1 : i32 to vector<8x1xi32>
    %9 = arith.cmpi ne, %7, %8 : vector<8x1xi32>
    %c0_i32_2 = arith.constant 0 : i32
    %10 = vector.broadcast %c0_i32_2 : i32 to vector<8x1xi32>
    %11 = arith.cmpi slt, %7, %10 : vector<8x1xi32>
    %c0_i32_3 = arith.constant 0 : i32
    %12 = arith.cmpi slt, %5, %c0_i32_3 : i32
    %13 = vector.broadcast %12 : i1 to vector<8x1xi1>
    %14 = vector.broadcast %13 : vector<8x1xi1> to vector<8x1xi1>
    %15 = arith.xori %11, %14 : vector<8x1xi1>
    %16 = arith.andi %15, %9 : vector<8x1xi1>
    %17 = vector.broadcast %5 : i32 to vector<8x1xi32>
    %18 = arith.addi %7, %17 : vector<8x1xi32>
    %19 = arith.select %16, %18, %7 : vector<8x1xi1>, vector<8x1xi32>
    %20 = arith.extf %0 : vector<8x32xbf16> to vector<8x32xf32>
    %c1_i32_4 = arith.constant 1 : i32
    %21 = tpu.dynamic_rotate %20 by %c1_i32_4 dim 0 : vector<8x32xf32>, i32 -> vector<8x32xf32>
    %c1_i32_5 = arith.constant 1 : i32
    %22 = vector.broadcast %c1_i32_5 : i32 to vector<8x1xi32>
    %23 = arith.cmpi sge, %19, %22 : vector<8x1xi32>
    %cst = arith.constant 0.000000e+00 : f32
    %24 = vector.broadcast %cst : f32 to vector<8x32xf32>
    %25 = vector.shape_cast %23 : vector<8x1xi1> to vector<8x1xi1>
    %26 = vector.broadcast %25 : vector<8x1xi1> to vector<8x32xi1>
    %27 = arith.select %26, %21, %24 : vector<8x32xi1>, vector<8x32xf32>
    %c7_i32 = arith.constant 7 : i32
    %28 = tpu.dynamic_rotate %20 by %c7_i32 dim 0 : vector<8x32xf32>, i32 -> vector<8x32xf32>
    %c3_i32 = arith.constant 3 : i32
    %29 = vector.broadcast %c3_i32 : i32 to vector<8x1xi32>
    %30 = arith.cmpi slt, %19, %29 : vector<8x1xi32>
    %cst_6 = arith.constant 0.000000e+00 : f32
    %31 = vector.broadcast %cst_6 : f32 to vector<8x32xf32>
    %32 = vector.shape_cast %30 : vector<8x1xi1> to vector<8x1xi1>
    %33 = vector.broadcast %32 : vector<8x1xi1> to vector<8x32xi1>
    %34 = arith.select %33, %28, %31 : vector<8x32xi1>, vector<8x32xf32>
    %c1 = arith.constant 1 : index
    %c0_7 = arith.constant 0 : index
    %c0_8 = arith.constant 0 : index
    %35 = vector.load %arg2[%c1, %c0_7, %c0_8] : memref<4x16x16xbf16, #tpu.memory_space<vmem>>, vector<1x16x16xbf16>
    %36 = vector.shape_cast %35 : vector<1x16x16xbf16> to vector<16x16xbf16>
    %cst_9 = arith.constant dense<0.000000e+00> : vector<8x16xf32>
    %37 = tpu.matmul %1, %36, %cst_9 {dimension_numbers = #tpu.dot_dimension_numbers<[1], [0], [0], [1], [0, 0, 1, 1], [], []>} : vector<8x16xbf16>, vector<16x16xbf16>, vector<8x16xf32> -> vector<8x16xf32>
    %c0_10 = arith.constant 0 : index
    %c0_11 = arith.constant 0 : index
    %38 = vector.load %arg3[%c0_10, %c0_11] : memref<1x16xf32, #tpu.memory_space<vmem>>, vector<1x16xf32>
    %39 = vector.broadcast %38 : vector<1x16xf32> to vector<8x16xf32>
    %40 = arith.addf %37, %39 : vector<8x16xf32>
    %c2 = arith.constant 2 : index
    %c0_12 = arith.constant 0 : index
    %c0_13 = arith.constant 0 : index
    %41 = vector.load %arg2[%c2, %c0_12, %c0_13] : memref<4x16x16xbf16, #tpu.memory_space<vmem>>, vector<1x16x16xbf16>
    %42 = vector.shape_cast %41 : vector<1x16x16xbf16> to vector<16x16xbf16>
    %cst_14 = arith.constant dense<0.000000e+00> : vector<8x16xf32>
    %43 = tpu.matmul %2, %42, %cst_14 {dimension_numbers = #tpu.dot_dimension_numbers<[1], [0], [0], [1], [0, 0, 1, 1], [], []>} : vector<8x16xbf16>, vector<16x16xbf16>, vector<8x16xf32> -> vector<8x16xf32>
    %44 = arith.addf %40, %43 : vector<8x16xf32>
    %45 = vector.extract_strided_slice %27 {offsets = [0, 16], sizes = [8, 16], strides = [1, 1]} : vector<8x32xf32> to vector<8x16xf32>
    %46 = arith.truncf %45 : vector<8x16xf32> to vector<8x16xbf16>
    %c0_15 = arith.constant 0 : index
    %c0_16 = arith.constant 0 : index
    %c0_17 = arith.constant 0 : index
    %47 = vector.load %arg2[%c0_15, %c0_16, %c0_17] : memref<4x16x16xbf16, #tpu.memory_space<vmem>>, vector<1x16x16xbf16>
    %48 = vector.shape_cast %47 : vector<1x16x16xbf16> to vector<16x16xbf16>
    %cst_18 = arith.constant dense<0.000000e+00> : vector<8x16xf32>
    %49 = tpu.matmul %46, %48, %cst_18 {dimension_numbers = #tpu.dot_dimension_numbers<[1], [0], [0], [1], [0, 0, 1, 1], [], []>} : vector<8x16xbf16>, vector<16x16xbf16>, vector<8x16xf32> -> vector<8x16xf32>
    %50 = arith.addf %44, %49 : vector<8x16xf32>
    %51 = vector.extract_strided_slice %34 {offsets = [0, 0], sizes = [8, 16], strides = [1, 1]} : vector<8x32xf32> to vector<8x16xf32>
    %52 = arith.truncf %51 : vector<8x16xf32> to vector<8x16xbf16>
    %c3 = arith.constant 3 : index
    %c0_19 = arith.constant 0 : index
    %c0_20 = arith.constant 0 : index
    %53 = vector.load %arg2[%c3, %c0_19, %c0_20] : memref<4x16x16xbf16, #tpu.memory_space<vmem>>, vector<1x16x16xbf16>
    %54 = vector.shape_cast %53 : vector<1x16x16xbf16> to vector<16x16xbf16>
    %cst_21 = arith.constant dense<0.000000e+00> : vector<8x16xf32>
    %55 = tpu.matmul %52, %54, %cst_21 {dimension_numbers = #tpu.dot_dimension_numbers<[1], [0], [0], [1], [0, 0, 1, 1], [], []>} : vector<8x16xbf16>, vector<16x16xbf16>, vector<8x16xf32> -> vector<8x16xf32>
    %56 = arith.addf %50, %55 : vector<8x16xf32>
    %cst_22 = arith.constant 0.000000e+00 : f32
    %57 = vector.broadcast %cst_22 : f32 to vector<8x16xf32>
    %58 = arith.maximumf %56, %57 : vector<8x16xf32>
    %59 = arith.truncf %58 : vector<8x16xf32> to vector<8x16xbf16>
    %c0_23 = arith.constant 0 : index
    %c0_24 = arith.constant 0 : index
    %c0_25 = arith.constant 0 : index
    %60 = vector.load %arg4[%c0_23, %c0_24, %c0_25] : memref<6x16x16xbf16, #tpu.memory_space<vmem>>, vector<1x16x16xbf16>
    %61 = vector.shape_cast %60 : vector<1x16x16xbf16> to vector<16x16xbf16>
    %c1_26 = arith.constant 1 : index
    %c0_27 = arith.constant 0 : index
    %c0_28 = arith.constant 0 : index
    %62 = vector.load %arg4[%c1_26, %c0_27, %c0_28] : memref<6x16x16xbf16, #tpu.memory_space<vmem>>, vector<1x16x16xbf16>
    %63 = vector.shape_cast %62 : vector<1x16x16xbf16> to vector<16x16xbf16>
    %c2_29 = arith.constant 2 : index
    %c0_30 = arith.constant 0 : index
    %c0_31 = arith.constant 0 : index
    %64 = vector.load %arg4[%c2_29, %c0_30, %c0_31] : memref<6x16x16xbf16, #tpu.memory_space<vmem>>, vector<1x16x16xbf16>
    %65 = vector.shape_cast %64 : vector<1x16x16xbf16> to vector<16x16xbf16>
    %c0_32 = arith.constant 0 : index
    %c0_33 = arith.constant 0 : index
    %c0_34 = arith.constant 0 : index
    %66 = vector.load %arg5[%c0_32, %c0_33, %c0_34] : memref<2x1x16xf32, #tpu.memory_space<vmem>>, vector<1x1x16xf32>
    %67 = vector.shape_cast %66 : vector<1x1x16xf32> to vector<1x16xf32>
    %cst_35 = arith.constant dense<0.000000e+00> : vector<8x16xf32>
    %68 = tpu.matmul %59, %63, %cst_35 {dimension_numbers = #tpu.dot_dimension_numbers<[1], [0], [0], [1], [0, 0, 1, 1], [], []>} : vector<8x16xbf16>, vector<16x16xbf16>, vector<8x16xf32> -> vector<8x16xf32>
    %69 = vector.broadcast %67 : vector<1x16xf32> to vector<8x16xf32>
    %70 = arith.addf %68, %69 : vector<8x16xf32>
    %c3_i32_36 = arith.constant 3 : i32
    %71 = tpu.dynamic_rotate %58 by %c3_i32_36 dim 0 : vector<8x16xf32>, i32 -> vector<8x16xf32>
    %c3_i32_37 = arith.constant 3 : i32
    %72 = vector.broadcast %c3_i32_37 : i32 to vector<8x1xi32>
    %73 = arith.cmpi sge, %19, %72 : vector<8x1xi32>
    %cst_38 = arith.constant 0.000000e+00 : f32
    %74 = vector.broadcast %cst_38 : f32 to vector<8x16xf32>
    %75 = vector.shape_cast %73 : vector<8x1xi1> to vector<8x1xi1>
    %76 = vector.broadcast %75 : vector<8x1xi1> to vector<8x16xi1>
    %77 = arith.select %76, %71, %74 : vector<8x16xi1>, vector<8x16xf32>
    %78 = arith.truncf %77 : vector<8x16xf32> to vector<8x16xbf16>
    %cst_39 = arith.constant dense<0.000000e+00> : vector<8x16xf32>
    %79 = tpu.matmul %78, %61, %cst_39 {dimension_numbers = #tpu.dot_dimension_numbers<[1], [0], [0], [1], [0, 0, 1, 1], [], []>} : vector<8x16xbf16>, vector<16x16xbf16>, vector<8x16xf32> -> vector<8x16xf32>
    %80 = arith.addf %70, %79 : vector<8x16xf32>
    %c5_i32 = arith.constant 5 : i32
    %81 = tpu.dynamic_rotate %58 by %c5_i32 dim 0 : vector<8x16xf32>, i32 -> vector<8x16xf32>
    %c1_i32_40 = arith.constant 1 : i32
    %82 = vector.broadcast %c1_i32_40 : i32 to vector<8x1xi32>
    %83 = arith.cmpi slt, %19, %82 : vector<8x1xi32>
    %cst_41 = arith.constant 0.000000e+00 : f32
    %84 = vector.broadcast %cst_41 : f32 to vector<8x16xf32>
    %85 = vector.shape_cast %83 : vector<8x1xi1> to vector<8x1xi1>
    %86 = vector.broadcast %85 : vector<8x1xi1> to vector<8x16xi1>
    %87 = arith.select %86, %81, %84 : vector<8x16xi1>, vector<8x16xf32>
    %88 = arith.truncf %87 : vector<8x16xf32> to vector<8x16xbf16>
    %cst_42 = arith.constant dense<0.000000e+00> : vector<8x16xf32>
    %89 = tpu.matmul %88, %65, %cst_42 {dimension_numbers = #tpu.dot_dimension_numbers<[1], [0], [0], [1], [0, 0, 1, 1], [], []>} : vector<8x16xbf16>, vector<16x16xbf16>, vector<8x16xf32> -> vector<8x16xf32>
    %90 = arith.addf %80, %89 : vector<8x16xf32>
    %cst_43 = arith.constant 0.000000e+00 : f32
    %91 = vector.broadcast %cst_43 : f32 to vector<8x16xf32>
    %92 = arith.maximumf %90, %91 : vector<8x16xf32>
    %93 = arith.truncf %92 : vector<8x16xf32> to vector<8x16xbf16>
    %c0_44 = arith.constant 0 : index
    %c0_45 = arith.constant 0 : index
    %c0_46 = arith.constant 0 : index
    %94 = vector.load %arg6[%c0_44, %c0_45, %c0_46] : memref<2x16x16xbf16, #tpu.memory_space<vmem>>, vector<1x16x16xbf16>
    %95 = vector.shape_cast %94 : vector<1x16x16xbf16> to vector<16x16xbf16>
    %cst_47 = arith.constant dense<0.000000e+00> : vector<8x16xf32>
    %96 = tpu.matmul %93, %95, %cst_47 {dimension_numbers = #tpu.dot_dimension_numbers<[1], [0], [0], [1], [0, 0, 1, 1], [], []>} : vector<8x16xbf16>, vector<16x16xbf16>, vector<8x16xf32> -> vector<8x16xf32>
    %97 = arith.addf %56, %96 : vector<8x16xf32>
    %c0_48 = arith.constant 0 : index
    %c0_49 = arith.constant 0 : index
    %c0_50 = arith.constant 0 : index
    %98 = vector.load %arg7[%c0_48, %c0_49, %c0_50] : memref<2x1x16xf32, #tpu.memory_space<vmem>>, vector<1x1x16xf32>
    %99 = vector.shape_cast %98 : vector<1x1x16xf32> to vector<1x16xf32>
    %100 = vector.broadcast %99 : vector<1x16xf32> to vector<8x16xf32>
    %101 = arith.addf %97, %100 : vector<8x16xf32>
    %cst_51 = arith.constant 0.000000e+00 : f32
    %102 = vector.broadcast %cst_51 : f32 to vector<8x16xf32>
    %103 = arith.maximumf %101, %102 : vector<8x16xf32>
    %104 = arith.truncf %103 : vector<8x16xf32> to vector<8x16xbf16>
    %c3_52 = arith.constant 3 : index
    %c0_53 = arith.constant 0 : index
    %c0_54 = arith.constant 0 : index
    %105 = vector.load %arg4[%c3_52, %c0_53, %c0_54] : memref<6x16x16xbf16, #tpu.memory_space<vmem>>, vector<1x16x16xbf16>
    %106 = vector.shape_cast %105 : vector<1x16x16xbf16> to vector<16x16xbf16>
    %c4 = arith.constant 4 : index
    %c0_55 = arith.constant 0 : index
    %c0_56 = arith.constant 0 : index
    %107 = vector.load %arg4[%c4, %c0_55, %c0_56] : memref<6x16x16xbf16, #tpu.memory_space<vmem>>, vector<1x16x16xbf16>
    %108 = vector.shape_cast %107 : vector<1x16x16xbf16> to vector<16x16xbf16>
    %c5 = arith.constant 5 : index
    %c0_57 = arith.constant 0 : index
    %c0_58 = arith.constant 0 : index
    %109 = vector.load %arg4[%c5, %c0_57, %c0_58] : memref<6x16x16xbf16, #tpu.memory_space<vmem>>, vector<1x16x16xbf16>
    %110 = vector.shape_cast %109 : vector<1x16x16xbf16> to vector<16x16xbf16>
    %c1_59 = arith.constant 1 : index
    %c0_60 = arith.constant 0 : index
    %c0_61 = arith.constant 0 : index
    %111 = vector.load %arg5[%c1_59, %c0_60, %c0_61] : memref<2x1x16xf32, #tpu.memory_space<vmem>>, vector<1x1x16xf32>
    %112 = vector.shape_cast %111 : vector<1x1x16xf32> to vector<1x16xf32>
    %cst_62 = arith.constant dense<0.000000e+00> : vector<8x16xf32>
    %113 = tpu.matmul %104, %108, %cst_62 {dimension_numbers = #tpu.dot_dimension_numbers<[1], [0], [0], [1], [0, 0, 1, 1], [], []>} : vector<8x16xbf16>, vector<16x16xbf16>, vector<8x16xf32> -> vector<8x16xf32>
    %114 = vector.broadcast %112 : vector<1x16xf32> to vector<8x16xf32>
    %115 = arith.addf %113, %114 : vector<8x16xf32>
    %c1_i32_63 = arith.constant 1 : i32
    %116 = tpu.dynamic_rotate %103 by %c1_i32_63 dim 0 : vector<8x16xf32>, i32 -> vector<8x16xf32>
    %c1_i32_64 = arith.constant 1 : i32
    %117 = vector.broadcast %c1_i32_64 : i32 to vector<8x1xi32>
    %118 = arith.cmpi sge, %19, %117 : vector<8x1xi32>
    %cst_65 = arith.constant 0.000000e+00 : f32
    %119 = vector.broadcast %cst_65 : f32 to vector<8x16xf32>
    %120 = vector.shape_cast %118 : vector<8x1xi1> to vector<8x1xi1>
    %121 = vector.broadcast %120 : vector<8x1xi1> to vector<8x16xi1>
    %122 = arith.select %121, %116, %119 : vector<8x16xi1>, vector<8x16xf32>
    %123 = arith.truncf %122 : vector<8x16xf32> to vector<8x16xbf16>
    %cst_66 = arith.constant dense<0.000000e+00> : vector<8x16xf32>
    %124 = tpu.matmul %123, %106, %cst_66 {dimension_numbers = #tpu.dot_dimension_numbers<[1], [0], [0], [1], [0, 0, 1, 1], [], []>} : vector<8x16xbf16>, vector<16x16xbf16>, vector<8x16xf32> -> vector<8x16xf32>
    %125 = arith.addf %115, %124 : vector<8x16xf32>
    %c7_i32_67 = arith.constant 7 : i32
    %126 = tpu.dynamic_rotate %103 by %c7_i32_67 dim 0 : vector<8x16xf32>, i32 -> vector<8x16xf32>
    %c3_i32_68 = arith.constant 3 : i32
    %127 = vector.broadcast %c3_i32_68 : i32 to vector<8x1xi32>
    %128 = arith.cmpi slt, %19, %127 : vector<8x1xi32>
    %cst_69 = arith.constant 0.000000e+00 : f32
    %129 = vector.broadcast %cst_69 : f32 to vector<8x16xf32>
    %130 = vector.shape_cast %128 : vector<8x1xi1> to vector<8x1xi1>
    %131 = vector.broadcast %130 : vector<8x1xi1> to vector<8x16xi1>
    %132 = arith.select %131, %126, %129 : vector<8x16xi1>, vector<8x16xf32>
    %133 = arith.truncf %132 : vector<8x16xf32> to vector<8x16xbf16>
    %cst_70 = arith.constant dense<0.000000e+00> : vector<8x16xf32>
    %134 = tpu.matmul %133, %110, %cst_70 {dimension_numbers = #tpu.dot_dimension_numbers<[1], [0], [0], [1], [0, 0, 1, 1], [], []>} : vector<8x16xbf16>, vector<16x16xbf16>, vector<8x16xf32> -> vector<8x16xf32>
    %135 = arith.addf %125, %134 : vector<8x16xf32>
    %cst_71 = arith.constant 0.000000e+00 : f32
    %136 = vector.broadcast %cst_71 : f32 to vector<8x16xf32>
    %137 = arith.maximumf %135, %136 : vector<8x16xf32>
    %138 = arith.truncf %137 : vector<8x16xf32> to vector<8x16xbf16>
    %c1_72 = arith.constant 1 : index
    %c0_73 = arith.constant 0 : index
    %c0_74 = arith.constant 0 : index
    %139 = vector.load %arg6[%c1_72, %c0_73, %c0_74] : memref<2x16x16xbf16, #tpu.memory_space<vmem>>, vector<1x16x16xbf16>
    %140 = vector.shape_cast %139 : vector<1x16x16xbf16> to vector<16x16xbf16>
    %cst_75 = arith.constant dense<0.000000e+00> : vector<8x16xf32>
    %141 = tpu.matmul %138, %140, %cst_75 {dimension_numbers = #tpu.dot_dimension_numbers<[1], [0], [0], [1], [0, 0, 1, 1], [], []>} : vector<8x16xbf16>, vector<16x16xbf16>, vector<8x16xf32> -> vector<8x16xf32>
    %142 = arith.addf %101, %141 : vector<8x16xf32>
    %c1_76 = arith.constant 1 : index
    %c0_77 = arith.constant 0 : index
    %c0_78 = arith.constant 0 : index
    %143 = vector.load %arg7[%c1_76, %c0_77, %c0_78] : memref<2x1x16xf32, #tpu.memory_space<vmem>>, vector<1x1x16xf32>
    %144 = vector.shape_cast %143 : vector<1x1x16xf32> to vector<1x16xf32>
    %145 = vector.broadcast %144 : vector<1x16xf32> to vector<8x16xf32>
    %146 = arith.addf %142, %145 : vector<8x16xf32>
    %147 = arith.truncf %146 : vector<8x16xf32> to vector<8x16xbf16>
    %c0_79 = arith.constant 0 : index
    %c0_80 = arith.constant 0 : index
    %148 = vector.load %arg8[%c0_79, %c0_80] : memref<8x16xbf16, #tpu.memory_space<vmem>>, vector<8x16xbf16>
    tpu.vector_store %arg8[%c0_79, %c0_80], %147 {strides = array<i32>} : memref<8x16xbf16, #tpu.memory_space<vmem>>, vector<8x16xbf16>,
    return
  }
  func.func @transform_0(%arg0: i32) -> (i32, i32) {
    %c0_i32 = arith.constant 0 : i32
    %c0_i32_0 = arith.constant 0 : i32
    return %arg0, %c0_i32 : i32, i32
  }
  func.func @transform_1(%arg0: i32) -> (i32, i32, i32) {
    %c0_i32 = arith.constant 0 : i32
    %c0_i32_0 = arith.constant 0 : i32
    %c0_i32_1 = arith.constant 0 : i32
    %c0_i32_2 = arith.constant 0 : i32
    return %c0_i32, %c0_i32_0, %c0_i32_1 : i32, i32, i32
  }
  func.func @transform_2(%arg0: i32) -> (i32, i32) {
    %c0_i32 = arith.constant 0 : i32
    %c0_i32_0 = arith.constant 0 : i32
    %c0_i32_1 = arith.constant 0 : i32
    return %c0_i32, %c0_i32_0 : i32, i32
  }
  func.func @transform_3(%arg0: i32) -> (i32, i32, i32) {
    %c0_i32 = arith.constant 0 : i32
    %c0_i32_0 = arith.constant 0 : i32
    %c0_i32_1 = arith.constant 0 : i32
    %c0_i32_2 = arith.constant 0 : i32
    return %c0_i32, %c0_i32_0, %c0_i32_1 : i32, i32, i32
  }
  func.func @transform_4(%arg0: i32) -> (i32, i32, i32) {
    %c0_i32 = arith.constant 0 : i32
    %c0_i32_0 = arith.constant 0 : i32
    %c0_i32_1 = arith.constant 0 : i32
    %c0_i32_2 = arith.constant 0 : i32
    return %c0_i32, %c0_i32_0, %c0_i32_1 : i32, i32, i32
  }
  func.func @transform_5(%arg0: i32) -> (i32, i32, i32) {
    %c0_i32 = arith.constant 0 : i32
    %c0_i32_0 = arith.constant 0 : i32
    %c0_i32_1 = arith.constant 0 : i32
    %c0_i32_2 = arith.constant 0 : i32
    return %c0_i32, %c0_i32_0, %c0_i32_1 : i32, i32, i32
  }
  func.func @transform_6(%arg0: i32) -> (i32, i32, i32) {
    %c0_i32 = arith.constant 0 : i32
    %c0_i32_0 = arith.constant 0 : i32
    %c0_i32_1 = arith.constant 0 : i32
    %c0_i32_2 = arith.constant 0 : i32
    return %c0_i32, %c0_i32_0, %c0_i32_1 : i32, i32, i32
  }
  func.func @transform_7(%arg0: i32) -> (i32, i32) {
    %c0_i32 = arith.constant 0 : i32
    %c0_i32_0 = arith.constant 0 : i32
    return %arg0, %c0_i32 : i32, i32
  }
}

module attributes {stable_mosaic.version = 11 : i64} {
  func.func @_conv3_kernel(%arg0: i32, %arg1: memref<8x16xbf16, #tpu.memory_space<vmem>>, %arg2: memref<3x16x8xbf16, #tpu.memory_space<vmem>>, %arg3: memref<1x8xf32, #tpu.memory_space<vmem>>, %arg4: memref<8x8xf32, #tpu.memory_space<vmem>>) attributes {dimension_semantics = [#tpu.dimension_semantics<parallel>], iteration_bounds = array<i64: 1>, scalar_prefetch = 0 : i64, scratch_operands = 0 : i64, tpu.core_type = #tpu.core_type<tc>, window_params = [{transform_indices = @transform_0, window_bounds = array<i64: 8, 16>}, {pipeline_mode = #tpu.pipeline_mode<synchronous>, transform_indices = @transform_1, window_bounds = array<i64: 3, 16, 8>}, {pipeline_mode = #tpu.pipeline_mode<synchronous>, transform_indices = @transform_2, window_bounds = array<i64: 1, 8>}, {transform_indices = @transform_3, window_bounds = array<i64: 8, 8>}]} {
    %c0 = arith.constant 0 : index
    %c0_0 = arith.constant 0 : index
    %0 = vector.load %arg1[%c0, %c0_0] : memref<8x16xbf16, #tpu.memory_space<vmem>>, vector<8x16xbf16>
    %1 = tpu.iota {dimensions = array<i32: 0>} : vector<8x1xi32>
    %c4_i32 = arith.constant 4 : i32
    %c0_i32 = arith.constant 0 : i32
    %2 = arith.cmpi eq, %c4_i32, %c0_i32 : i32
    %c1_i32 = arith.constant 1 : i32
    %3 = arith.select %2, %c1_i32, %c4_i32 : i32
    %4 = vector.broadcast %3 : i32 to vector<8x1xi32>
    %5 = arith.remsi %1, %4 : vector<8x1xi32>
    %c0_i32_1 = arith.constant 0 : i32
    %6 = vector.broadcast %c0_i32_1 : i32 to vector<8x1xi32>
    %7 = arith.cmpi ne, %5, %6 : vector<8x1xi32>
    %c0_i32_2 = arith.constant 0 : i32
    %8 = vector.broadcast %c0_i32_2 : i32 to vector<8x1xi32>
    %9 = arith.cmpi slt, %5, %8 : vector<8x1xi32>
    %c0_i32_3 = arith.constant 0 : i32
    %10 = arith.cmpi slt, %3, %c0_i32_3 : i32
    %11 = vector.broadcast %10 : i1 to vector<8x1xi1>
    %12 = vector.broadcast %11 : vector<8x1xi1> to vector<8x1xi1>
    %13 = arith.xori %9, %12 : vector<8x1xi1>
    %14 = arith.andi %13, %7 : vector<8x1xi1>
    %15 = vector.broadcast %3 : i32 to vector<8x1xi32>
    %16 = arith.addi %5, %15 : vector<8x1xi32>
    %17 = arith.select %14, %16, %5 : vector<8x1xi1>, vector<8x1xi32>
    %18 = arith.extf %0 : vector<8x16xbf16> to vector<8x16xf32>
    %c0_4 = arith.constant 0 : index
    %c0_5 = arith.constant 0 : index
    %c0_6 = arith.constant 0 : index
    %19 = vector.load %arg2[%c0_4, %c0_5, %c0_6] : memref<3x16x8xbf16, #tpu.memory_space<vmem>>, vector<1x16x8xbf16>
    %20 = vector.shape_cast %19 : vector<1x16x8xbf16> to vector<16x8xbf16>
    %c1 = arith.constant 1 : index
    %c0_7 = arith.constant 0 : index
    %c0_8 = arith.constant 0 : index
    %21 = vector.load %arg2[%c1, %c0_7, %c0_8] : memref<3x16x8xbf16, #tpu.memory_space<vmem>>, vector<1x16x8xbf16>
    %22 = vector.shape_cast %21 : vector<1x16x8xbf16> to vector<16x8xbf16>
    %c2 = arith.constant 2 : index
    %c0_9 = arith.constant 0 : index
    %c0_10 = arith.constant 0 : index
    %23 = vector.load %arg2[%c2, %c0_9, %c0_10] : memref<3x16x8xbf16, #tpu.memory_space<vmem>>, vector<1x16x8xbf16>
    %24 = vector.shape_cast %23 : vector<1x16x8xbf16> to vector<16x8xbf16>
    %c0_11 = arith.constant 0 : index
    %c0_12 = arith.constant 0 : index
    %25 = vector.load %arg3[%c0_11, %c0_12] : memref<1x8xf32, #tpu.memory_space<vmem>>, vector<1x8xf32>
    %cst = arith.constant dense<0.000000e+00> : vector<8x8xf32>
    %26 = tpu.matmul %0, %22, %cst {dimension_numbers = #tpu.dot_dimension_numbers<[1], [0], [0], [1], [0, 0, 1, 1], [], []>} : vector<8x16xbf16>, vector<16x8xbf16>, vector<8x8xf32> -> vector<8x8xf32>
    %27 = vector.broadcast %25 : vector<1x8xf32> to vector<8x8xf32>
    %28 = arith.addf %26, %27 : vector<8x8xf32>
    %c1_i32_13 = arith.constant 1 : i32
    %29 = tpu.dynamic_rotate %18 by %c1_i32_13 dim 0 : vector<8x16xf32>, i32 -> vector<8x16xf32>
    %c1_i32_14 = arith.constant 1 : i32
    %30 = vector.broadcast %c1_i32_14 : i32 to vector<8x1xi32>
    %31 = arith.cmpi sge, %17, %30 : vector<8x1xi32>
    %cst_15 = arith.constant 0.000000e+00 : f32
    %32 = vector.broadcast %cst_15 : f32 to vector<8x16xf32>
    %33 = vector.shape_cast %31 : vector<8x1xi1> to vector<8x1xi1>
    %34 = vector.broadcast %33 : vector<8x1xi1> to vector<8x16xi1>
    %35 = arith.select %34, %29, %32 : vector<8x16xi1>, vector<8x16xf32>
    %36 = arith.truncf %35 : vector<8x16xf32> to vector<8x16xbf16>
    %cst_16 = arith.constant dense<0.000000e+00> : vector<8x8xf32>
    %37 = tpu.matmul %36, %20, %cst_16 {dimension_numbers = #tpu.dot_dimension_numbers<[1], [0], [0], [1], [0, 0, 1, 1], [], []>} : vector<8x16xbf16>, vector<16x8xbf16>, vector<8x8xf32> -> vector<8x8xf32>
    %38 = arith.addf %28, %37 : vector<8x8xf32>
    %c7_i32 = arith.constant 7 : i32
    %39 = tpu.dynamic_rotate %18 by %c7_i32 dim 0 : vector<8x16xf32>, i32 -> vector<8x16xf32>
    %c3_i32 = arith.constant 3 : i32
    %40 = vector.broadcast %c3_i32 : i32 to vector<8x1xi32>
    %41 = arith.cmpi slt, %17, %40 : vector<8x1xi32>
    %cst_17 = arith.constant 0.000000e+00 : f32
    %42 = vector.broadcast %cst_17 : f32 to vector<8x16xf32>
    %43 = vector.shape_cast %41 : vector<8x1xi1> to vector<8x1xi1>
    %44 = vector.broadcast %43 : vector<8x1xi1> to vector<8x16xi1>
    %45 = arith.select %44, %39, %42 : vector<8x16xi1>, vector<8x16xf32>
    %46 = arith.truncf %45 : vector<8x16xf32> to vector<8x16xbf16>
    %cst_18 = arith.constant dense<0.000000e+00> : vector<8x8xf32>
    %47 = tpu.matmul %46, %24, %cst_18 {dimension_numbers = #tpu.dot_dimension_numbers<[1], [0], [0], [1], [0, 0, 1, 1], [], []>} : vector<8x16xbf16>, vector<16x8xbf16>, vector<8x8xf32> -> vector<8x8xf32>
    %48 = arith.addf %38, %47 : vector<8x8xf32>
    %c0_19 = arith.constant 0 : index
    %c0_20 = arith.constant 0 : index
    %49 = vector.load %arg4[%c0_19, %c0_20] : memref<8x8xf32, #tpu.memory_space<vmem>>, vector<8x8xf32>
    tpu.vector_store %arg4[%c0_19, %c0_20], %48 {strides = array<i32>} : memref<8x8xf32, #tpu.memory_space<vmem>>, vector<8x8xf32>,
    return
  }
  func.func @transform_0(%arg0: i32) -> (i32, i32) {
    %c0_i32 = arith.constant 0 : i32
    %c0_i32_0 = arith.constant 0 : i32
    return %arg0, %c0_i32 : i32, i32
  }
  func.func @transform_1(%arg0: i32) -> (i32, i32, i32) {
    %c0_i32 = arith.constant 0 : i32
    %c0_i32_0 = arith.constant 0 : i32
    %c0_i32_1 = arith.constant 0 : i32
    %c0_i32_2 = arith.constant 0 : i32
    return %c0_i32, %c0_i32_0, %c0_i32_1 : i32, i32, i32
  }
  func.func @transform_2(%arg0: i32) -> (i32, i32) {
    %c0_i32 = arith.constant 0 : i32
    %c0_i32_0 = arith.constant 0 : i32
    %c0_i32_1 = arith.constant 0 : i32
    return %c0_i32, %c0_i32_0 : i32, i32
  }
  func.func @transform_3(%arg0: i32) -> (i32, i32) {
    %c0_i32 = arith.constant 0 : i32
    %c0_i32_0 = arith.constant 0 : i32
    return %arg0, %c0_i32 : i32, i32
  }
}

module attributes {stable_mosaic.version = 11 : i64} {
  func.func @_nearest_code_kernel(%arg0: i32, %arg1: i32, %arg2: memref<8x8xf32, #tpu.memory_space<vmem>>, %arg3: memref<64x8xbf16, #tpu.memory_space<vmem>>, %arg4: memref<1x64xf32, #tpu.memory_space<vmem>>, %arg5: memref<8x1xi32, #tpu.memory_space<vmem>>, %arg6: memref<8x1xf32, #tpu.memory_space<vmem>>, %arg7: memref<8x1xi32, #tpu.memory_space<vmem>>) attributes {dimension_semantics = [#tpu.dimension_semantics<parallel>, #tpu.dimension_semantics<arbitrary>], iteration_bounds = array<i64: 1, 1>, scalar_prefetch = 0 : i64, scratch_operands = 2 : i64, tpu.core_type = #tpu.core_type<tc>, window_params = [{transform_indices = @transform_0, window_bounds = array<i64: 8, 8>}, {transform_indices = @transform_1, window_bounds = array<i64: 64, 8>}, {transform_indices = @transform_2, window_bounds = array<i64: 1, 64>}, {transform_indices = @transform_3, window_bounds = array<i64: 8, 1>}]} {
    %c0 = arith.constant 0 : index
    %c0_0 = arith.constant 0 : index
    %0 = vector.load %arg2[%c0, %c0_0] : memref<8x8xf32, #tpu.memory_space<vmem>>, vector<8x8xf32>
    %1 = arith.truncf %0 : vector<8x8xf32> to vector<8x8xbf16>
    %c0_1 = arith.constant 0 : index
    %c0_2 = arith.constant 0 : index
    %2 = vector.load %arg3[%c0_1, %c0_2] : memref<64x8xbf16, #tpu.memory_space<vmem>>, vector<64x8xbf16>
    %cst = arith.constant dense<0.000000e+00> : vector<8x64xf32>
    %3 = tpu.matmul %1, %2, %cst {dimension_numbers = #tpu.dot_dimension_numbers<[1], [1], [0], [0], [0, 0, 1, 0], [], []>} : vector<8x8xbf16>, vector<64x8xbf16>, vector<8x64xf32> -> vector<8x64xf32>
    %c0_3 = arith.constant 0 : index
    %c0_4 = arith.constant 0 : index
    %4 = vector.load %arg4[%c0_3, %c0_4] : memref<1x64xf32, #tpu.memory_space<vmem>>, vector<1x64xf32>
    %cst_5 = arith.constant 2.000000e+00 : f32
    %5 = vector.broadcast %cst_5 : f32 to vector<8x64xf32>
    %6 = arith.mulf %5, %3 : vector<8x64xf32>
    %7 = vector.broadcast %4 : vector<1x64xf32> to vector<8x64xf32>
    %8 = arith.subf %7, %6 : vector<8x64xf32>
    %cst_6 = arith.constant dense<0x7F800000> : vector<8xf32>
    %9 = vector.multi_reduction <minimumf>, %8, %cst_6 [1] : vector<8x64xf32> to vector<8xf32>
    %10 = vector.shape_cast %9 : vector<8xf32> to vector<8x1xf32>
    %11 = tpu.iota {dimensions = array<i32: 1>} : vector<8x64xi32>
    %12 = vector.broadcast %10 : vector<8x1xf32> to vector<8x64xf32>
    %13 = arith.cmpf ole, %8, %12 : vector<8x64xf32>
    %c64_i32 = arith.constant 64 : i32
    %14 = vector.broadcast %c64_i32 : i32 to vector<8x64xi32>
    %15 = arith.select %13, %11, %14 : vector<8x64xi1>, vector<8x64xi32>
    %cst_7 = arith.constant dense<2147483647> : vector<8xi32>
    %16 = vector.multi_reduction <minsi>, %15, %cst_7 [1] : vector<8x64xi32> to vector<8xi32>
    %17 = vector.shape_cast %16 : vector<8xi32> to vector<8x1xi32>
    %c64_i32_8 = arith.constant 64 : i32
    %18 = arith.muli %arg1, %c64_i32_8 : i32
    %19 = vector.broadcast %18 : i32 to vector<8x1xi32>
    %20 = arith.addi %17, %19 : vector<8x1xi32>
    %c0_i32 = arith.constant 0 : i32
    %21 = arith.cmpi eq, %arg1, %c0_i32 : i32
    %22 = arith.extui %21 : i1 to i32
    %c0_i32_9 = arith.constant 0 : i32
    %23 = arith.cmpi ne, %22, %c0_i32_9 : i32
    scf.if %23 {
      %c0_14 = arith.constant 0 : index
      %c0_15 = arith.constant 0 : index
      %30 = vector.load %arg6[%c0_14, %c0_15] : memref<8x1xf32, #tpu.memory_space<vmem>>, vector<8x1xf32>
      tpu.vector_store %arg6[%c0_14, %c0_15], %10 {strides = array<i32>} : memref<8x1xf32, #tpu.memory_space<vmem>>, vector<8x1xf32>,
      %c0_16 = arith.constant 0 : index
      %c0_17 = arith.constant 0 : index
      %31 = vector.load %arg7[%c0_16, %c0_17] : memref<8x1xi32, #tpu.memory_space<vmem>>, vector<8x1xi32>
      tpu.vector_store %arg7[%c0_16, %c0_17], %20 {strides = array<i32>} : memref<8x1xi32, #tpu.memory_space<vmem>>, vector<8x1xi32>,
    } else {
    }
    %c0_i32_10 = arith.constant 0 : i32
    %24 = arith.cmpi sgt, %arg1, %c0_i32_10 : i32
    %25 = arith.extui %24 : i1 to i32
    %c0_i32_11 = arith.constant 0 : i32
    %26 = arith.cmpi ne, %25, %c0_i32_11 : i32
    scf.if %26 {
      %c0_14 = arith.constant 0 : index
      %c0_15 = arith.constant 0 : index
      %30 = vector.load %arg6[%c0_14, %c0_15] : memref<8x1xf32, #tpu.memory_space<vmem>>, vector<8x1xf32>
      %31 = arith.cmpf olt, %10, %30 : vector<8x1xf32>
      %c0_16 = arith.constant 0 : index
      %c0_17 = arith.constant 0 : index
      %32 = vector.load %arg6[%c0_16, %c0_17] : memref<8x1xf32, #tpu.memory_space<vmem>>, vector<8x1xf32>
      %33 = arith.select %31, %10, %32 : vector<8x1xi1>, vector<8x1xf32>
      %c0_18 = arith.constant 0 : index
      %c0_19 = arith.constant 0 : index
      %34 = vector.load %arg6[%c0_18, %c0_19] : memref<8x1xf32, #tpu.memory_space<vmem>>, vector<8x1xf32>
      tpu.vector_store %arg6[%c0_18, %c0_19], %33 {strides = array<i32>} : memref<8x1xf32, #tpu.memory_space<vmem>>, vector<8x1xf32>,
      %c0_20 = arith.constant 0 : index
      %c0_21 = arith.constant 0 : index
      %35 = vector.load %arg7[%c0_20, %c0_21] : memref<8x1xi32, #tpu.memory_space<vmem>>, vector<8x1xi32>
      %36 = arith.select %31, %20, %35 : vector<8x1xi1>, vector<8x1xi32>
      %c0_22 = arith.constant 0 : index
      %c0_23 = arith.constant 0 : index
      %37 = vector.load %arg7[%c0_22, %c0_23] : memref<8x1xi32, #tpu.memory_space<vmem>>, vector<8x1xi32>
      tpu.vector_store %arg7[%c0_22, %c0_23], %36 {strides = array<i32>} : memref<8x1xi32, #tpu.memory_space<vmem>>, vector<8x1xi32>,
    } else {
    }
    %c0_i32_12 = arith.constant 0 : i32
    %27 = arith.cmpi eq, %arg1, %c0_i32_12 : i32
    %28 = arith.extui %27 : i1 to i32
    %c0_i32_13 = arith.constant 0 : i32
    %29 = arith.cmpi ne, %28, %c0_i32_13 : i32
    scf.if %29 {
      %c0_14 = arith.constant 0 : index
      %c0_15 = arith.constant 0 : index
      %30 = vector.load %arg7[%c0_14, %c0_15] : memref<8x1xi32, #tpu.memory_space<vmem>>, vector<8x1xi32>
      %c0_16 = arith.constant 0 : index
      %c0_17 = arith.constant 0 : index
      %31 = vector.load %arg5[%c0_16, %c0_17] : memref<8x1xi32, #tpu.memory_space<vmem>>, vector<8x1xi32>
      tpu.vector_store %arg5[%c0_16, %c0_17], %30 {strides = array<i32>} : memref<8x1xi32, #tpu.memory_space<vmem>>, vector<8x1xi32>,
    } else {
    }
    return
  }
  func.func @transform_0(%arg0: i32, %arg1: i32) -> (i32, i32) {
    %c0_i32 = arith.constant 0 : i32
    %c0_i32_0 = arith.constant 0 : i32
    return %arg0, %c0_i32 : i32, i32
  }
  func.func @transform_1(%arg0: i32, %arg1: i32) -> (i32, i32) {
    %c0_i32 = arith.constant 0 : i32
    %c0_i32_0 = arith.constant 0 : i32
    return %arg1, %c0_i32 : i32, i32
  }
  func.func @transform_2(%arg0: i32, %arg1: i32) -> (i32, i32) {
    %c0_i32 = arith.constant 0 : i32
    %c0_i32_0 = arith.constant 0 : i32
    return %c0_i32, %arg1 : i32, i32
  }
  func.func @transform_3(%arg0: i32, %arg1: i32) -> (i32, i32) {
    %c0_i32 = arith.constant 0 : i32
    %c0_i32_0 = arith.constant 0 : i32
    return %arg0, %c0_i32 : i32, i32
  }
}

module attributes {stable_mosaic.version = 11 : i64} {
  func.func @_dec_stage_kernel(%arg0: i32, %arg1: memref<8x16xbf16, #tpu.memory_space<vmem>>, %arg2: memref<6x16x16xbf16, #tpu.memory_space<vmem>>, %arg3: memref<2x1x16xf32, #tpu.memory_space<vmem>>, %arg4: memref<2x16x16xbf16, #tpu.memory_space<vmem>>, %arg5: memref<2x1x16xf32, #tpu.memory_space<vmem>>, %arg6: memref<2x16x16xbf16, #tpu.memory_space<vmem>>, %arg7: memref<2x16x16xbf16, #tpu.memory_space<vmem>>, %arg8: memref<1x16xf32, #tpu.memory_space<vmem>>, %arg9: memref<8x32xbf16, #tpu.memory_space<vmem>>) attributes {dimension_semantics = [#tpu.dimension_semantics<parallel>], iteration_bounds = array<i64: 1>, scalar_prefetch = 0 : i64, scratch_operands = 0 : i64, tpu.core_type = #tpu.core_type<tc>, window_params = [{transform_indices = @transform_0, window_bounds = array<i64: 8, 16>}, {pipeline_mode = #tpu.pipeline_mode<synchronous>, transform_indices = @transform_1, window_bounds = array<i64: 6, 16, 16>}, {pipeline_mode = #tpu.pipeline_mode<synchronous>, transform_indices = @transform_2, window_bounds = array<i64: 2, 1, 16>}, {pipeline_mode = #tpu.pipeline_mode<synchronous>, transform_indices = @transform_3, window_bounds = array<i64: 2, 16, 16>}, {pipeline_mode = #tpu.pipeline_mode<synchronous>, transform_indices = @transform_4, window_bounds = array<i64: 2, 1, 16>}, {pipeline_mode = #tpu.pipeline_mode<synchronous>, transform_indices = @transform_5, window_bounds = array<i64: 2, 16, 16>}, {pipeline_mode = #tpu.pipeline_mode<synchronous>, transform_indices = @transform_6, window_bounds = array<i64: 2, 16, 16>}, {pipeline_mode = #tpu.pipeline_mode<synchronous>, transform_indices = @transform_7, window_bounds = array<i64: 1, 16>}, {transform_indices = @transform_8, window_bounds = array<i64: 8, 32>}]} {
    %c0 = arith.constant 0 : index
    %c0_0 = arith.constant 0 : index
    %0 = vector.load %arg1[%c0, %c0_0] : memref<8x16xbf16, #tpu.memory_space<vmem>>, vector<8x16xbf16>
    %1 = arith.extf %0 : vector<8x16xbf16> to vector<8x16xf32>
    %2 = tpu.iota {dimensions = array<i32: 0>} : vector<8x1xi32>
    %c4_i32 = arith.constant 4 : i32
    %c0_i32 = arith.constant 0 : i32
    %3 = arith.cmpi eq, %c4_i32, %c0_i32 : i32
    %c1_i32 = arith.constant 1 : i32
    %4 = arith.select %3, %c1_i32, %c4_i32 : i32
    %5 = vector.broadcast %4 : i32 to vector<8x1xi32>
    %6 = arith.remsi %2, %5 : vector<8x1xi32>
    %c0_i32_1 = arith.constant 0 : i32
    %7 = vector.broadcast %c0_i32_1 : i32 to vector<8x1xi32>
    %8 = arith.cmpi ne, %6, %7 : vector<8x1xi32>
    %c0_i32_2 = arith.constant 0 : i32
    %9 = vector.broadcast %c0_i32_2 : i32 to vector<8x1xi32>
    %10 = arith.cmpi slt, %6, %9 : vector<8x1xi32>
    %c0_i32_3 = arith.constant 0 : i32
    %11 = arith.cmpi slt, %4, %c0_i32_3 : i32
    %12 = vector.broadcast %11 : i1 to vector<8x1xi1>
    %13 = vector.broadcast %12 : vector<8x1xi1> to vector<8x1xi1>
    %14 = arith.xori %10, %13 : vector<8x1xi1>
    %15 = arith.andi %14, %8 : vector<8x1xi1>
    %16 = vector.broadcast %4 : i32 to vector<8x1xi32>
    %17 = arith.addi %6, %16 : vector<8x1xi32>
    %18 = arith.select %15, %17, %6 : vector<8x1xi1>, vector<8x1xi32>
    %cst = arith.constant 0.000000e+00 : f32
    %19 = vector.broadcast %cst : f32 to vector<8x16xf32>
    %20 = arith.maximumf %1, %19 : vector<8x16xf32>
    %21 = arith.truncf %20 : vector<8x16xf32> to vector<8x16xbf16>
    %c0_4 = arith.constant 0 : index
    %c0_5 = arith.constant 0 : index
    %c0_6 = arith.constant 0 : index
    %22 = vector.load %arg2[%c0_4, %c0_5, %c0_6] : memref<6x16x16xbf16, #tpu.memory_space<vmem>>, vector<1x16x16xbf16>
    %23 = vector.shape_cast %22 : vector<1x16x16xbf16> to vector<16x16xbf16>
    %c1 = arith.constant 1 : index
    %c0_7 = arith.constant 0 : index
    %c0_8 = arith.constant 0 : index
    %24 = vector.load %arg2[%c1, %c0_7, %c0_8] : memref<6x16x16xbf16, #tpu.memory_space<vmem>>, vector<1x16x16xbf16>
    %25 = vector.shape_cast %24 : vector<1x16x16xbf16> to vector<16x16xbf16>
    %c2 = arith.constant 2 : index
    %c0_9 = arith.constant 0 : index
    %c0_10 = arith.constant 0 : index
    %26 = vector.load %arg2[%c2, %c0_9, %c0_10] : memref<6x16x16xbf16, #tpu.memory_space<vmem>>, vector<1x16x16xbf16>
    %27 = vector.shape_cast %26 : vector<1x16x16xbf16> to vector<16x16xbf16>
    %c0_11 = arith.constant 0 : index
    %c0_12 = arith.constant 0 : index
    %c0_13 = arith.constant 0 : index
    %28 = vector.load %arg3[%c0_11, %c0_12, %c0_13] : memref<2x1x16xf32, #tpu.memory_space<vmem>>, vector<1x1x16xf32>
    %29 = vector.shape_cast %28 : vector<1x1x16xf32> to vector<1x16xf32>
    %cst_14 = arith.constant dense<0.000000e+00> : vector<8x16xf32>
    %30 = tpu.matmul %21, %25, %cst_14 {dimension_numbers = #tpu.dot_dimension_numbers<[1], [0], [0], [1], [0, 0, 1, 1], [], []>} : vector<8x16xbf16>, vector<16x16xbf16>, vector<8x16xf32> -> vector<8x16xf32>
    %31 = vector.broadcast %29 : vector<1x16xf32> to vector<8x16xf32>
    %32 = arith.addf %30, %31 : vector<8x16xf32>
    %c3_i32 = arith.constant 3 : i32
    %33 = tpu.dynamic_rotate %20 by %c3_i32 dim 0 : vector<8x16xf32>, i32 -> vector<8x16xf32>
    %c3_i32_15 = arith.constant 3 : i32
    %34 = vector.broadcast %c3_i32_15 : i32 to vector<8x1xi32>
    %35 = arith.cmpi sge, %18, %34 : vector<8x1xi32>
    %cst_16 = arith.constant 0.000000e+00 : f32
    %36 = vector.broadcast %cst_16 : f32 to vector<8x16xf32>
    %37 = vector.shape_cast %35 : vector<8x1xi1> to vector<8x1xi1>
    %38 = vector.broadcast %37 : vector<8x1xi1> to vector<8x16xi1>
    %39 = arith.select %38, %33, %36 : vector<8x16xi1>, vector<8x16xf32>
    %40 = arith.truncf %39 : vector<8x16xf32> to vector<8x16xbf16>
    %cst_17 = arith.constant dense<0.000000e+00> : vector<8x16xf32>
    %41 = tpu.matmul %40, %23, %cst_17 {dimension_numbers = #tpu.dot_dimension_numbers<[1], [0], [0], [1], [0, 0, 1, 1], [], []>} : vector<8x16xbf16>, vector<16x16xbf16>, vector<8x16xf32> -> vector<8x16xf32>
    %42 = arith.addf %32, %41 : vector<8x16xf32>
    %c5_i32 = arith.constant 5 : i32
    %43 = tpu.dynamic_rotate %20 by %c5_i32 dim 0 : vector<8x16xf32>, i32 -> vector<8x16xf32>
    %c1_i32_18 = arith.constant 1 : i32
    %44 = vector.broadcast %c1_i32_18 : i32 to vector<8x1xi32>
    %45 = arith.cmpi slt, %18, %44 : vector<8x1xi32>
    %cst_19 = arith.constant 0.000000e+00 : f32
    %46 = vector.broadcast %cst_19 : f32 to vector<8x16xf32>
    %47 = vector.shape_cast %45 : vector<8x1xi1> to vector<8x1xi1>
    %48 = vector.broadcast %47 : vector<8x1xi1> to vector<8x16xi1>
    %49 = arith.select %48, %43, %46 : vector<8x16xi1>, vector<8x16xf32>
    %50 = arith.truncf %49 : vector<8x16xf32> to vector<8x16xbf16>
    %cst_20 = arith.constant dense<0.000000e+00> : vector<8x16xf32>
    %51 = tpu.matmul %50, %27, %cst_20 {dimension_numbers = #tpu.dot_dimension_numbers<[1], [0], [0], [1], [0, 0, 1, 1], [], []>} : vector<8x16xbf16>, vector<16x16xbf16>, vector<8x16xf32> -> vector<8x16xf32>
    %52 = arith.addf %42, %51 : vector<8x16xf32>
    %cst_21 = arith.constant 0.000000e+00 : f32
    %53 = vector.broadcast %cst_21 : f32 to vector<8x16xf32>
    %54 = arith.maximumf %52, %53 : vector<8x16xf32>
    %55 = arith.truncf %54 : vector<8x16xf32> to vector<8x16xbf16>
    %c0_22 = arith.constant 0 : index
    %c0_23 = arith.constant 0 : index
    %c0_24 = arith.constant 0 : index
    %56 = vector.load %arg4[%c0_22, %c0_23, %c0_24] : memref<2x16x16xbf16, #tpu.memory_space<vmem>>, vector<1x16x16xbf16>
    %57 = vector.shape_cast %56 : vector<1x16x16xbf16> to vector<16x16xbf16>
    %cst_25 = arith.constant dense<0.000000e+00> : vector<8x16xf32>
    %58 = tpu.matmul %55, %57, %cst_25 {dimension_numbers = #tpu.dot_dimension_numbers<[1], [0], [0], [1], [0, 0, 1, 1], [], []>} : vector<8x16xbf16>, vector<16x16xbf16>, vector<8x16xf32> -> vector<8x16xf32>
    %59 = arith.addf %1, %58 : vector<8x16xf32>
    %c0_26 = arith.constant 0 : index
    %c0_27 = arith.constant 0 : index
    %c0_28 = arith.constant 0 : index
    %60 = vector.load %arg5[%c0_26, %c0_27, %c0_28] : memref<2x1x16xf32, #tpu.memory_space<vmem>>, vector<1x1x16xf32>
    %61 = vector.shape_cast %60 : vector<1x1x16xf32> to vector<1x16xf32>
    %62 = vector.broadcast %61 : vector<1x16xf32> to vector<8x16xf32>
    %63 = arith.addf %59, %62 : vector<8x16xf32>
    %cst_29 = arith.constant 0.000000e+00 : f32
    %64 = vector.broadcast %cst_29 : f32 to vector<8x16xf32>
    %65 = arith.maximumf %63, %64 : vector<8x16xf32>
    %66 = arith.truncf %65 : vector<8x16xf32> to vector<8x16xbf16>
    %c3 = arith.constant 3 : index
    %c0_30 = arith.constant 0 : index
    %c0_31 = arith.constant 0 : index
    %67 = vector.load %arg2[%c3, %c0_30, %c0_31] : memref<6x16x16xbf16, #tpu.memory_space<vmem>>, vector<1x16x16xbf16>
    %68 = vector.shape_cast %67 : vector<1x16x16xbf16> to vector<16x16xbf16>
    %c4 = arith.constant 4 : index
    %c0_32 = arith.constant 0 : index
    %c0_33 = arith.constant 0 : index
    %69 = vector.load %arg2[%c4, %c0_32, %c0_33] : memref<6x16x16xbf16, #tpu.memory_space<vmem>>, vector<1x16x16xbf16>
    %70 = vector.shape_cast %69 : vector<1x16x16xbf16> to vector<16x16xbf16>
    %c5 = arith.constant 5 : index
    %c0_34 = arith.constant 0 : index
    %c0_35 = arith.constant 0 : index
    %71 = vector.load %arg2[%c5, %c0_34, %c0_35] : memref<6x16x16xbf16, #tpu.memory_space<vmem>>, vector<1x16x16xbf16>
    %72 = vector.shape_cast %71 : vector<1x16x16xbf16> to vector<16x16xbf16>
    %c1_36 = arith.constant 1 : index
    %c0_37 = arith.constant 0 : index
    %c0_38 = arith.constant 0 : index
    %73 = vector.load %arg3[%c1_36, %c0_37, %c0_38] : memref<2x1x16xf32, #tpu.memory_space<vmem>>, vector<1x1x16xf32>
    %74 = vector.shape_cast %73 : vector<1x1x16xf32> to vector<1x16xf32>
    %cst_39 = arith.constant dense<0.000000e+00> : vector<8x16xf32>
    %75 = tpu.matmul %66, %70, %cst_39 {dimension_numbers = #tpu.dot_dimension_numbers<[1], [0], [0], [1], [0, 0, 1, 1], [], []>} : vector<8x16xbf16>, vector<16x16xbf16>, vector<8x16xf32> -> vector<8x16xf32>
    %76 = vector.broadcast %74 : vector<1x16xf32> to vector<8x16xf32>
    %77 = arith.addf %75, %76 : vector<8x16xf32>
    %c1_i32_40 = arith.constant 1 : i32
    %78 = tpu.dynamic_rotate %65 by %c1_i32_40 dim 0 : vector<8x16xf32>, i32 -> vector<8x16xf32>
    %c1_i32_41 = arith.constant 1 : i32
    %79 = vector.broadcast %c1_i32_41 : i32 to vector<8x1xi32>
    %80 = arith.cmpi sge, %18, %79 : vector<8x1xi32>
    %cst_42 = arith.constant 0.000000e+00 : f32
    %81 = vector.broadcast %cst_42 : f32 to vector<8x16xf32>
    %82 = vector.shape_cast %80 : vector<8x1xi1> to vector<8x1xi1>
    %83 = vector.broadcast %82 : vector<8x1xi1> to vector<8x16xi1>
    %84 = arith.select %83, %78, %81 : vector<8x16xi1>, vector<8x16xf32>
    %85 = arith.truncf %84 : vector<8x16xf32> to vector<8x16xbf16>
    %cst_43 = arith.constant dense<0.000000e+00> : vector<8x16xf32>
    %86 = tpu.matmul %85, %68, %cst_43 {dimension_numbers = #tpu.dot_dimension_numbers<[1], [0], [0], [1], [0, 0, 1, 1], [], []>} : vector<8x16xbf16>, vector<16x16xbf16>, vector<8x16xf32> -> vector<8x16xf32>
    %87 = arith.addf %77, %86 : vector<8x16xf32>
    %c7_i32 = arith.constant 7 : i32
    %88 = tpu.dynamic_rotate %65 by %c7_i32 dim 0 : vector<8x16xf32>, i32 -> vector<8x16xf32>
    %c3_i32_44 = arith.constant 3 : i32
    %89 = vector.broadcast %c3_i32_44 : i32 to vector<8x1xi32>
    %90 = arith.cmpi slt, %18, %89 : vector<8x1xi32>
    %cst_45 = arith.constant 0.000000e+00 : f32
    %91 = vector.broadcast %cst_45 : f32 to vector<8x16xf32>
    %92 = vector.shape_cast %90 : vector<8x1xi1> to vector<8x1xi1>
    %93 = vector.broadcast %92 : vector<8x1xi1> to vector<8x16xi1>
    %94 = arith.select %93, %88, %91 : vector<8x16xi1>, vector<8x16xf32>
    %95 = arith.truncf %94 : vector<8x16xf32> to vector<8x16xbf16>
    %cst_46 = arith.constant dense<0.000000e+00> : vector<8x16xf32>
    %96 = tpu.matmul %95, %72, %cst_46 {dimension_numbers = #tpu.dot_dimension_numbers<[1], [0], [0], [1], [0, 0, 1, 1], [], []>} : vector<8x16xbf16>, vector<16x16xbf16>, vector<8x16xf32> -> vector<8x16xf32>
    %97 = arith.addf %87, %96 : vector<8x16xf32>
    %cst_47 = arith.constant 0.000000e+00 : f32
    %98 = vector.broadcast %cst_47 : f32 to vector<8x16xf32>
    %99 = arith.maximumf %97, %98 : vector<8x16xf32>
    %100 = arith.truncf %99 : vector<8x16xf32> to vector<8x16xbf16>
    %c1_48 = arith.constant 1 : index
    %c0_49 = arith.constant 0 : index
    %c0_50 = arith.constant 0 : index
    %101 = vector.load %arg4[%c1_48, %c0_49, %c0_50] : memref<2x16x16xbf16, #tpu.memory_space<vmem>>, vector<1x16x16xbf16>
    %102 = vector.shape_cast %101 : vector<1x16x16xbf16> to vector<16x16xbf16>
    %cst_51 = arith.constant dense<0.000000e+00> : vector<8x16xf32>
    %103 = tpu.matmul %100, %102, %cst_51 {dimension_numbers = #tpu.dot_dimension_numbers<[1], [0], [0], [1], [0, 0, 1, 1], [], []>} : vector<8x16xbf16>, vector<16x16xbf16>, vector<8x16xf32> -> vector<8x16xf32>
    %104 = arith.addf %63, %103 : vector<8x16xf32>
    %c1_52 = arith.constant 1 : index
    %c0_53 = arith.constant 0 : index
    %c0_54 = arith.constant 0 : index
    %105 = vector.load %arg5[%c1_52, %c0_53, %c0_54] : memref<2x1x16xf32, #tpu.memory_space<vmem>>, vector<1x1x16xf32>
    %106 = vector.shape_cast %105 : vector<1x1x16xf32> to vector<1x16xf32>
    %107 = vector.broadcast %106 : vector<1x16xf32> to vector<8x16xf32>
    %108 = arith.addf %104, %107 : vector<8x16xf32>
    %109 = arith.truncf %108 : vector<8x16xf32> to vector<8x16xbf16>
    %c1_i32_55 = arith.constant 1 : i32
    %110 = tpu.dynamic_rotate %108 by %c1_i32_55 dim 0 : vector<8x16xf32>, i32 -> vector<8x16xf32>
    %c1_i32_56 = arith.constant 1 : i32
    %111 = vector.broadcast %c1_i32_56 : i32 to vector<8x1xi32>
    %112 = arith.cmpi sge, %18, %111 : vector<8x1xi32>
    %cst_57 = arith.constant 0.000000e+00 : f32
    %113 = vector.broadcast %cst_57 : f32 to vector<8x16xf32>
    %114 = vector.shape_cast %112 : vector<8x1xi1> to vector<8x1xi1>
    %115 = vector.broadcast %114 : vector<8x1xi1> to vector<8x16xi1>
    %116 = arith.select %115, %110, %113 : vector<8x16xi1>, vector<8x16xf32>
    %117 = arith.truncf %116 : vector<8x16xf32> to vector<8x16xbf16>
    %c7_i32_58 = arith.constant 7 : i32
    %118 = tpu.dynamic_rotate %108 by %c7_i32_58 dim 0 : vector<8x16xf32>, i32 -> vector<8x16xf32>
    %c3_i32_59 = arith.constant 3 : i32
    %119 = vector.broadcast %c3_i32_59 : i32 to vector<8x1xi32>
    %120 = arith.cmpi slt, %18, %119 : vector<8x1xi32>
    %cst_60 = arith.constant 0.000000e+00 : f32
    %121 = vector.broadcast %cst_60 : f32 to vector<8x16xf32>
    %122 = vector.shape_cast %120 : vector<8x1xi1> to vector<8x1xi1>
    %123 = vector.broadcast %122 : vector<8x1xi1> to vector<8x16xi1>
    %124 = arith.select %123, %118, %121 : vector<8x16xi1>, vector<8x16xf32>
    %125 = arith.truncf %124 : vector<8x16xf32> to vector<8x16xbf16>
    %c0_61 = arith.constant 0 : index
    %c0_62 = arith.constant 0 : index
    %126 = vector.load %arg8[%c0_61, %c0_62] : memref<1x16xf32, #tpu.memory_space<vmem>>, vector<1x16xf32>
    %c0_63 = arith.constant 0 : index
    %c0_64 = arith.constant 0 : index
    %c0_65 = arith.constant 0 : index
    %127 = vector.load %arg6[%c0_63, %c0_64, %c0_65] : memref<2x16x16xbf16, #tpu.memory_space<vmem>>, vector<1x16x16xbf16>
    %128 = vector.shape_cast %127 : vector<1x16x16xbf16> to vector<16x16xbf16>
    %cst_66 = arith.constant dense<0.000000e+00> : vector<8x16xf32>
    %129 = tpu.matmul %117, %128, %cst_66 {dimension_numbers = #tpu.dot_dimension_numbers<[1], [0], [0], [1], [0, 0, 1, 1], [], []>} : vector<8x16xbf16>, vector<16x16xbf16>, vector<8x16xf32> -> vector<8x16xf32>
    %c1_67 = arith.constant 1 : index
    %c0_68 = arith.constant 0 : index
    %c0_69 = arith.constant 0 : index
    %130 = vector.load %arg6[%c1_67, %c0_68, %c0_69] : memref<2x16x16xbf16, #tpu.memory_space<vmem>>, vector<1x16x16xbf16>
    %131 = vector.shape_cast %130 : vector<1x16x16xbf16> to vector<16x16xbf16>
    %cst_70 = arith.constant dense<0.000000e+00> : vector<8x16xf32>
    %132 = tpu.matmul %109, %131, %cst_70 {dimension_numbers = #tpu.dot_dimension_numbers<[1], [0], [0], [1], [0, 0, 1, 1], [], []>} : vector<8x16xbf16>, vector<16x16xbf16>, vector<8x16xf32> -> vector<8x16xf32>
    %133 = arith.addf %129, %132 : vector<8x16xf32>
    %134 = vector.broadcast %126 : vector<1x16xf32> to vector<8x16xf32>
    %135 = arith.addf %133, %134 : vector<8x16xf32>
    %c0_71 = arith.constant 0 : index
    %c0_72 = arith.constant 0 : index
    %c0_73 = arith.constant 0 : index
    %136 = vector.load %arg7[%c0_71, %c0_72, %c0_73] : memref<2x16x16xbf16, #tpu.memory_space<vmem>>, vector<1x16x16xbf16>
    %137 = vector.shape_cast %136 : vector<1x16x16xbf16> to vector<16x16xbf16>
    %cst_74 = arith.constant dense<0.000000e+00> : vector<8x16xf32>
    %138 = tpu.matmul %109, %137, %cst_74 {dimension_numbers = #tpu.dot_dimension_numbers<[1], [0], [0], [1], [0, 0, 1, 1], [], []>} : vector<8x16xbf16>, vector<16x16xbf16>, vector<8x16xf32> -> vector<8x16xf32>
    %c1_75 = arith.constant 1 : index
    %c0_76 = arith.constant 0 : index
    %c0_77 = arith.constant 0 : index
    %139 = vector.load %arg7[%c1_75, %c0_76, %c0_77] : memref<2x16x16xbf16, #tpu.memory_space<vmem>>, vector<1x16x16xbf16>
    %140 = vector.shape_cast %139 : vector<1x16x16xbf16> to vector<16x16xbf16>
    %cst_78 = arith.constant dense<0.000000e+00> : vector<8x16xf32>
    %141 = tpu.matmul %125, %140, %cst_78 {dimension_numbers = #tpu.dot_dimension_numbers<[1], [0], [0], [1], [0, 0, 1, 1], [], []>} : vector<8x16xbf16>, vector<16x16xbf16>, vector<8x16xf32> -> vector<8x16xf32>
    %142 = arith.addf %138, %141 : vector<8x16xf32>
    %143 = vector.broadcast %126 : vector<1x16xf32> to vector<8x16xf32>
    %144 = arith.addf %142, %143 : vector<8x16xf32>
    %145 = arith.truncf %135 : vector<8x16xf32> to vector<8x16xbf16>
    %c0_79 = arith.constant 0 : index
    %c0_80 = arith.constant 0 : index
    %146 = vector.load %arg9[%c0_79, %c0_80] : memref<8x32xbf16, #tpu.memory_space<vmem>>, vector<8x16xbf16>
    tpu.vector_store %arg9[%c0_79, %c0_80], %145 {strides = array<i32>} : memref<8x32xbf16, #tpu.memory_space<vmem>>, vector<8x16xbf16>,
    %147 = arith.truncf %144 : vector<8x16xf32> to vector<8x16xbf16>
    %c0_81 = arith.constant 0 : index
    %c16 = arith.constant 16 : index
    %148 = vector.load %arg9[%c0_81, %c16] : memref<8x32xbf16, #tpu.memory_space<vmem>>, vector<8x16xbf16>
    tpu.vector_store %arg9[%c0_81, %c16], %147 {strides = array<i32>} : memref<8x32xbf16, #tpu.memory_space<vmem>>, vector<8x16xbf16>,
    return
  }
  func.func @transform_0(%arg0: i32) -> (i32, i32) {
    %c0_i32 = arith.constant 0 : i32
    %c0_i32_0 = arith.constant 0 : i32
    return %arg0, %c0_i32 : i32, i32
  }
  func.func @transform_1(%arg0: i32) -> (i32, i32, i32) {
    %c0_i32 = arith.constant 0 : i32
    %c0_i32_0 = arith.constant 0 : i32
    %c0_i32_1 = arith.constant 0 : i32
    %c0_i32_2 = arith.constant 0 : i32
    return %c0_i32, %c0_i32_0, %c0_i32_1 : i32, i32, i32
  }
  func.func @transform_2(%arg0: i32) -> (i32, i32, i32) {
    %c0_i32 = arith.constant 0 : i32
    %c0_i32_0 = arith.constant 0 : i32
    %c0_i32_1 = arith.constant 0 : i32
    %c0_i32_2 = arith.constant 0 : i32
    return %c0_i32, %c0_i32_0, %c0_i32_1 : i32, i32, i32
  }
  func.func @transform_3(%arg0: i32) -> (i32, i32, i32) {
    %c0_i32 = arith.constant 0 : i32
    %c0_i32_0 = arith.constant 0 : i32
    %c0_i32_1 = arith.constant 0 : i32
    %c0_i32_2 = arith.constant 0 : i32
    return %c0_i32, %c0_i32_0, %c0_i32_1 : i32, i32, i32
  }
  func.func @transform_4(%arg0: i32) -> (i32, i32, i32) {
    %c0_i32 = arith.constant 0 : i32
    %c0_i32_0 = arith.constant 0 : i32
    %c0_i32_1 = arith.constant 0 : i32
    %c0_i32_2 = arith.constant 0 : i32
    return %c0_i32, %c0_i32_0, %c0_i32_1 : i32, i32, i32
  }
  func.func @transform_5(%arg0: i32) -> (i32, i32, i32) {
    %c0_i32 = arith.constant 0 : i32
    %c0_i32_0 = arith.constant 0 : i32
    %c0_i32_1 = arith.constant 0 : i32
    %c0_i32_2 = arith.constant 0 : i32
    return %c0_i32, %c0_i32_0, %c0_i32_1 : i32, i32, i32
  }
  func.func @transform_6(%arg0: i32) -> (i32, i32, i32) {
    %c0_i32 = arith.constant 0 : i32
    %c0_i32_0 = arith.constant 0 : i32
    %c0_i32_1 = arith.constant 0 : i32
    %c0_i32_2 = arith.constant 0 : i32
    return %c0_i32, %c0_i32_0, %c0_i32_1 : i32, i32, i32
  }
  func.func @transform_7(%arg0: i32) -> (i32, i32) {
    %c0_i32 = arith.constant 0 : i32
    %c0_i32_0 = arith.constant 0 : i32
    %c0_i32_1 = arith.constant 0 : i32
    return %c0_i32, %c0_i32_0 : i32, i32
  }
  func.func @transform_8(%arg0: i32) -> (i32, i32) {
    %c0_i32 = arith.constant 0 : i32
    %c0_i32_0 = arith.constant 0 : i32
    return %arg0, %c0_i32 : i32, i32
  }
}

module attributes {stable_mosaic.version = 11 : i64} {
  func.func @_dec_tail_kernel(%arg0: i32, %arg1: memref<16x16xbf16, #tpu.memory_space<vmem>>, %arg2: memref<3x16x16xbf16, #tpu.memory_space<vmem>>, %arg3: memref<1x16xf32, #tpu.memory_space<vmem>>, %arg4: memref<3x16x16xbf16, #tpu.memory_space<vmem>>, %arg5: memref<1x16xf32, #tpu.memory_space<vmem>>, %arg6: memref<16x16xf32, #tpu.memory_space<vmem>>) attributes {dimension_semantics = [#tpu.dimension_semantics<parallel>], iteration_bounds = array<i64: 2>, scalar_prefetch = 0 : i64, scratch_operands = 0 : i64, tpu.core_type = #tpu.core_type<tc>, window_params = [{transform_indices = @transform_0, window_bounds = array<i64: 16, 16>}, {pipeline_mode = #tpu.pipeline_mode<synchronous>, transform_indices = @transform_1, window_bounds = array<i64: 3, 16, 16>}, {pipeline_mode = #tpu.pipeline_mode<synchronous>, transform_indices = @transform_2, window_bounds = array<i64: 1, 16>}, {pipeline_mode = #tpu.pipeline_mode<synchronous>, transform_indices = @transform_3, window_bounds = array<i64: 3, 16, 16>}, {pipeline_mode = #tpu.pipeline_mode<synchronous>, transform_indices = @transform_4, window_bounds = array<i64: 1, 16>}, {transform_indices = @transform_5, window_bounds = array<i64: 16, 16>}]} {
    %c0 = arith.constant 0 : index
    %c0_0 = arith.constant 0 : index
    %0 = vector.load %arg1[%c0, %c0_0] : memref<16x16xbf16, #tpu.memory_space<vmem>>, vector<16x16xbf16>
    %1 = tpu.iota {dimensions = array<i32: 0>} : vector<16x1xi32>
    %2 = arith.extf %0 : vector<16x16xbf16> to vector<16x16xf32>
    %c0_1 = arith.constant 0 : index
    %c0_2 = arith.constant 0 : index
    %c0_3 = arith.constant 0 : index
    %3 = vector.load %arg2[%c0_1, %c0_2, %c0_3] : memref<3x16x16xbf16, #tpu.memory_space<vmem>>, vector<1x16x16xbf16>
    %4 = vector.shape_cast %3 : vector<1x16x16xbf16> to vector<16x16xbf16>
    %c1 = arith.constant 1 : index
    %c0_4 = arith.constant 0 : index
    %c0_5 = arith.constant 0 : index
    %5 = vector.load %arg2[%c1, %c0_4, %c0_5] : memref<3x16x16xbf16, #tpu.memory_space<vmem>>, vector<1x16x16xbf16>
    %6 = vector.shape_cast %5 : vector<1x16x16xbf16> to vector<16x16xbf16>
    %c2 = arith.constant 2 : index
    %c0_6 = arith.constant 0 : index
    %c0_7 = arith.constant 0 : index
    %7 = vector.load %arg2[%c2, %c0_6, %c0_7] : memref<3x16x16xbf16, #tpu.memory_space<vmem>>, vector<1x16x16xbf16>
    %8 = vector.shape_cast %7 : vector<1x16x16xbf16> to vector<16x16xbf16>
    %c0_8 = arith.constant 0 : index
    %c0_9 = arith.constant 0 : index
    %9 = vector.load %arg3[%c0_8, %c0_9] : memref<1x16xf32, #tpu.memory_space<vmem>>, vector<1x16xf32>
    %cst = arith.constant dense<0.000000e+00> : vector<16x16xf32>
    %10 = tpu.matmul %0, %6, %cst {dimension_numbers = #tpu.dot_dimension_numbers<[1], [0], [0], [1], [0, 0, 1, 1], [], []>} : vector<16x16xbf16>, vector<16x16xbf16>, vector<16x16xf32> -> vector<16x16xf32>
    %11 = vector.broadcast %9 : vector<1x16xf32> to vector<16x16xf32>
    %12 = arith.addf %10, %11 : vector<16x16xf32>
    %c1_i32 = arith.constant 1 : i32
    %13 = tpu.dynamic_rotate %2 by %c1_i32 dim 0 : vector<16x16xf32>, i32 -> vector<16x16xf32>
    %c1_i32_10 = arith.constant 1 : i32
    %14 = vector.broadcast %c1_i32_10 : i32 to vector<16x1xi32>
    %15 = arith.cmpi sge, %1, %14 : vector<16x1xi32>
    %cst_11 = arith.constant 0.000000e+00 : f32
    %16 = vector.broadcast %cst_11 : f32 to vector<16x16xf32>
    %17 = vector.shape_cast %15 : vector<16x1xi1> to vector<16x1xi1>
    %18 = vector.broadcast %17 : vector<16x1xi1> to vector<16x16xi1>
    %19 = arith.select %18, %13, %16 : vector<16x16xi1>, vector<16x16xf32>
    %20 = arith.truncf %19 : vector<16x16xf32> to vector<16x16xbf16>
    %cst_12 = arith.constant dense<0.000000e+00> : vector<16x16xf32>
    %21 = tpu.matmul %20, %4, %cst_12 {dimension_numbers = #tpu.dot_dimension_numbers<[1], [0], [0], [1], [0, 0, 1, 1], [], []>} : vector<16x16xbf16>, vector<16x16xbf16>, vector<16x16xf32> -> vector<16x16xf32>
    %22 = arith.addf %12, %21 : vector<16x16xf32>
    %c15_i32 = arith.constant 15 : i32
    %23 = tpu.dynamic_rotate %2 by %c15_i32 dim 0 : vector<16x16xf32>, i32 -> vector<16x16xf32>
    %c15_i32_13 = arith.constant 15 : i32
    %24 = vector.broadcast %c15_i32_13 : i32 to vector<16x1xi32>
    %25 = arith.cmpi slt, %1, %24 : vector<16x1xi32>
    %cst_14 = arith.constant 0.000000e+00 : f32
    %26 = vector.broadcast %cst_14 : f32 to vector<16x16xf32>
    %27 = vector.shape_cast %25 : vector<16x1xi1> to vector<16x1xi1>
    %28 = vector.broadcast %27 : vector<16x1xi1> to vector<16x16xi1>
    %29 = arith.select %28, %23, %26 : vector<16x16xi1>, vector<16x16xf32>
    %30 = arith.truncf %29 : vector<16x16xf32> to vector<16x16xbf16>
    %cst_15 = arith.constant dense<0.000000e+00> : vector<16x16xf32>
    %31 = tpu.matmul %30, %8, %cst_15 {dimension_numbers = #tpu.dot_dimension_numbers<[1], [0], [0], [1], [0, 0, 1, 1], [], []>} : vector<16x16xbf16>, vector<16x16xbf16>, vector<16x16xf32> -> vector<16x16xf32>
    %32 = arith.addf %22, %31 : vector<16x16xf32>
    %cst_16 = arith.constant 0.000000e+00 : f32
    %33 = vector.broadcast %cst_16 : f32 to vector<16x16xf32>
    %34 = arith.maximumf %32, %33 : vector<16x16xf32>
    %35 = arith.truncf %34 : vector<16x16xf32> to vector<16x16xbf16>
    %c0_17 = arith.constant 0 : index
    %c0_18 = arith.constant 0 : index
    %c0_19 = arith.constant 0 : index
    %36 = vector.load %arg4[%c0_17, %c0_18, %c0_19] : memref<3x16x16xbf16, #tpu.memory_space<vmem>>, vector<1x16x16xbf16>
    %37 = vector.shape_cast %36 : vector<1x16x16xbf16> to vector<16x16xbf16>
    %c1_20 = arith.constant 1 : index
    %c0_21 = arith.constant 0 : index
    %c0_22 = arith.constant 0 : index
    %38 = vector.load %arg4[%c1_20, %c0_21, %c0_22] : memref<3x16x16xbf16, #tpu.memory_space<vmem>>, vector<1x16x16xbf16>
    %39 = vector.shape_cast %38 : vector<1x16x16xbf16> to vector<16x16xbf16>
    %c2_23 = arith.constant 2 : index
    %c0_24 = arith.constant 0 : index
    %c0_25 = arith.constant 0 : index
    %40 = vector.load %arg4[%c2_23, %c0_24, %c0_25] : memref<3x16x16xbf16, #tpu.memory_space<vmem>>, vector<1x16x16xbf16>
    %41 = vector.shape_cast %40 : vector<1x16x16xbf16> to vector<16x16xbf16>
    %c0_26 = arith.constant 0 : index
    %c0_27 = arith.constant 0 : index
    %42 = vector.load %arg5[%c0_26, %c0_27] : memref<1x16xf32, #tpu.memory_space<vmem>>, vector<1x16xf32>
    %cst_28 = arith.constant dense<0.000000e+00> : vector<16x16xf32>
    %43 = tpu.matmul %35, %39, %cst_28 {dimension_numbers = #tpu.dot_dimension_numbers<[1], [0], [0], [1], [0, 0, 1, 1], [], []>} : vector<16x16xbf16>, vector<16x16xbf16>, vector<16x16xf32> -> vector<16x16xf32>
    %44 = vector.broadcast %42 : vector<1x16xf32> to vector<16x16xf32>
    %45 = arith.addf %43, %44 : vector<16x16xf32>
    %c1_i32_29 = arith.constant 1 : i32
    %46 = tpu.dynamic_rotate %34 by %c1_i32_29 dim 0 : vector<16x16xf32>, i32 -> vector<16x16xf32>
    %c1_i32_30 = arith.constant 1 : i32
    %47 = vector.broadcast %c1_i32_30 : i32 to vector<16x1xi32>
    %48 = arith.cmpi sge, %1, %47 : vector<16x1xi32>
    %cst_31 = arith.constant 0.000000e+00 : f32
    %49 = vector.broadcast %cst_31 : f32 to vector<16x16xf32>
    %50 = vector.shape_cast %48 : vector<16x1xi1> to vector<16x1xi1>
    %51 = vector.broadcast %50 : vector<16x1xi1> to vector<16x16xi1>
    %52 = arith.select %51, %46, %49 : vector<16x16xi1>, vector<16x16xf32>
    %53 = arith.truncf %52 : vector<16x16xf32> to vector<16x16xbf16>
    %cst_32 = arith.constant dense<0.000000e+00> : vector<16x16xf32>
    %54 = tpu.matmul %53, %37, %cst_32 {dimension_numbers = #tpu.dot_dimension_numbers<[1], [0], [0], [1], [0, 0, 1, 1], [], []>} : vector<16x16xbf16>, vector<16x16xbf16>, vector<16x16xf32> -> vector<16x16xf32>
    %55 = arith.addf %45, %54 : vector<16x16xf32>
    %c15_i32_33 = arith.constant 15 : i32
    %56 = tpu.dynamic_rotate %34 by %c15_i32_33 dim 0 : vector<16x16xf32>, i32 -> vector<16x16xf32>
    %c15_i32_34 = arith.constant 15 : i32
    %57 = vector.broadcast %c15_i32_34 : i32 to vector<16x1xi32>
    %58 = arith.cmpi slt, %1, %57 : vector<16x1xi32>
    %cst_35 = arith.constant 0.000000e+00 : f32
    %59 = vector.broadcast %cst_35 : f32 to vector<16x16xf32>
    %60 = vector.shape_cast %58 : vector<16x1xi1> to vector<16x1xi1>
    %61 = vector.broadcast %60 : vector<16x1xi1> to vector<16x16xi1>
    %62 = arith.select %61, %56, %59 : vector<16x16xi1>, vector<16x16xf32>
    %63 = arith.truncf %62 : vector<16x16xf32> to vector<16x16xbf16>
    %cst_36 = arith.constant dense<0.000000e+00> : vector<16x16xf32>
    %64 = tpu.matmul %63, %41, %cst_36 {dimension_numbers = #tpu.dot_dimension_numbers<[1], [0], [0], [1], [0, 0, 1, 1], [], []>} : vector<16x16xbf16>, vector<16x16xbf16>, vector<16x16xf32> -> vector<16x16xf32>
    %65 = arith.addf %55, %64 : vector<16x16xf32>
    %c0_37 = arith.constant 0 : index
    %c0_38 = arith.constant 0 : index
    %66 = vector.load %arg6[%c0_37, %c0_38] : memref<16x16xf32, #tpu.memory_space<vmem>>, vector<16x16xf32>
    tpu.vector_store %arg6[%c0_37, %c0_38], %65 {strides = array<i32>} : memref<16x16xf32, #tpu.memory_space<vmem>>, vector<16x16xf32>,
    return
  }
  func.func @transform_0(%arg0: i32) -> (i32, i32) {
    %c0_i32 = arith.constant 0 : i32
    %c0_i32_0 = arith.constant 0 : i32
    return %arg0, %c0_i32 : i32, i32
  }
  func.func @transform_1(%arg0: i32) -> (i32, i32, i32) {
    %c0_i32 = arith.constant 0 : i32
    %c0_i32_0 = arith.constant 0 : i32
    %c0_i32_1 = arith.constant 0 : i32
    %c0_i32_2 = arith.constant 0 : i32
    return %c0_i32, %c0_i32_0, %c0_i32_1 : i32, i32, i32
  }
  func.func @transform_2(%arg0: i32) -> (i32, i32) {
    %c0_i32 = arith.constant 0 : i32
    %c0_i32_0 = arith.constant 0 : i32
    %c0_i32_1 = arith.constant 0 : i32
    return %c0_i32, %c0_i32_0 : i32, i32
  }
  func.func @transform_3(%arg0: i32) -> (i32, i32, i32) {
    %c0_i32 = arith.constant 0 : i32
    %c0_i32_0 = arith.constant 0 : i32
    %c0_i32_1 = arith.constant 0 : i32
    %c0_i32_2 = arith.constant 0 : i32
    return %c0_i32, %c0_i32_0, %c0_i32_1 : i32, i32, i32
  }
  func.func @transform_4(%arg0: i32) -> (i32, i32) {
    %c0_i32 = arith.constant 0 : i32
    %c0_i32_0 = arith.constant 0 : i32
    %c0_i32_1 = arith.constant 0 : i32
    return %c0_i32, %c0_i32_0 : i32, i32
  }
  func.func @transform_5(%arg0: i32) -> (i32, i32) {
    %c0_i32 = arith.constant 0 : i32
    %c0_i32_0 = arith.constant 0 : i32
    return %arg0, %c0_i32 : i32, i32
  }
}

module attributes {stable_mosaic.version = 11 : i64} {
  func.func @_conv3_kernel(%arg0: i32, %arg1: memref<8x8xbf16, #tpu.memory_space<vmem>>, %arg2: memref<3x8x16xbf16, #tpu.memory_space<vmem>>, %arg3: memref<1x16xf32, #tpu.memory_space<vmem>>, %arg4: memref<8x16xbf16, #tpu.memory_space<vmem>>) attributes {dimension_semantics = [#tpu.dimension_semantics<parallel>], iteration_bounds = array<i64: 1>, scalar_prefetch = 0 : i64, scratch_operands = 0 : i64, tpu.core_type = #tpu.core_type<tc>, window_params = [{transform_indices = @transform_0, window_bounds = array<i64: 8, 8>}, {pipeline_mode = #tpu.pipeline_mode<synchronous>, transform_indices = @transform_1, window_bounds = array<i64: 3, 8, 16>}, {pipeline_mode = #tpu.pipeline_mode<synchronous>, transform_indices = @transform_2, window_bounds = array<i64: 1, 16>}, {transform_indices = @transform_3, window_bounds = array<i64: 8, 16>}]} {
    %c0 = arith.constant 0 : index
    %c0_0 = arith.constant 0 : index
    %0 = vector.load %arg1[%c0, %c0_0] : memref<8x8xbf16, #tpu.memory_space<vmem>>, vector<8x8xbf16>
    %1 = tpu.iota {dimensions = array<i32: 0>} : vector<8x1xi32>
    %c4_i32 = arith.constant 4 : i32
    %c0_i32 = arith.constant 0 : i32
    %2 = arith.cmpi eq, %c4_i32, %c0_i32 : i32
    %c1_i32 = arith.constant 1 : i32
    %3 = arith.select %2, %c1_i32, %c4_i32 : i32
    %4 = vector.broadcast %3 : i32 to vector<8x1xi32>
    %5 = arith.remsi %1, %4 : vector<8x1xi32>
    %c0_i32_1 = arith.constant 0 : i32
    %6 = vector.broadcast %c0_i32_1 : i32 to vector<8x1xi32>
    %7 = arith.cmpi ne, %5, %6 : vector<8x1xi32>
    %c0_i32_2 = arith.constant 0 : i32
    %8 = vector.broadcast %c0_i32_2 : i32 to vector<8x1xi32>
    %9 = arith.cmpi slt, %5, %8 : vector<8x1xi32>
    %c0_i32_3 = arith.constant 0 : i32
    %10 = arith.cmpi slt, %3, %c0_i32_3 : i32
    %11 = vector.broadcast %10 : i1 to vector<8x1xi1>
    %12 = vector.broadcast %11 : vector<8x1xi1> to vector<8x1xi1>
    %13 = arith.xori %9, %12 : vector<8x1xi1>
    %14 = arith.andi %13, %7 : vector<8x1xi1>
    %15 = vector.broadcast %3 : i32 to vector<8x1xi32>
    %16 = arith.addi %5, %15 : vector<8x1xi32>
    %17 = arith.select %14, %16, %5 : vector<8x1xi1>, vector<8x1xi32>
    %18 = arith.extf %0 : vector<8x8xbf16> to vector<8x8xf32>
    %c0_4 = arith.constant 0 : index
    %c0_5 = arith.constant 0 : index
    %c0_6 = arith.constant 0 : index
    %19 = vector.load %arg2[%c0_4, %c0_5, %c0_6] : memref<3x8x16xbf16, #tpu.memory_space<vmem>>, vector<1x8x16xbf16>
    %20 = vector.shape_cast %19 : vector<1x8x16xbf16> to vector<8x16xbf16>
    %c1 = arith.constant 1 : index
    %c0_7 = arith.constant 0 : index
    %c0_8 = arith.constant 0 : index
    %21 = vector.load %arg2[%c1, %c0_7, %c0_8] : memref<3x8x16xbf16, #tpu.memory_space<vmem>>, vector<1x8x16xbf16>
    %22 = vector.shape_cast %21 : vector<1x8x16xbf16> to vector<8x16xbf16>
    %c2 = arith.constant 2 : index
    %c0_9 = arith.constant 0 : index
    %c0_10 = arith.constant 0 : index
    %23 = vector.load %arg2[%c2, %c0_9, %c0_10] : memref<3x8x16xbf16, #tpu.memory_space<vmem>>, vector<1x8x16xbf16>
    %24 = vector.shape_cast %23 : vector<1x8x16xbf16> to vector<8x16xbf16>
    %c0_11 = arith.constant 0 : index
    %c0_12 = arith.constant 0 : index
    %25 = vector.load %arg3[%c0_11, %c0_12] : memref<1x16xf32, #tpu.memory_space<vmem>>, vector<1x16xf32>
    %cst = arith.constant dense<0.000000e+00> : vector<8x16xf32>
    %26 = tpu.matmul %0, %22, %cst {dimension_numbers = #tpu.dot_dimension_numbers<[1], [0], [0], [1], [0, 0, 1, 1], [], []>} : vector<8x8xbf16>, vector<8x16xbf16>, vector<8x16xf32> -> vector<8x16xf32>
    %27 = vector.broadcast %25 : vector<1x16xf32> to vector<8x16xf32>
    %28 = arith.addf %26, %27 : vector<8x16xf32>
    %c1_i32_13 = arith.constant 1 : i32
    %29 = tpu.dynamic_rotate %18 by %c1_i32_13 dim 0 : vector<8x8xf32>, i32 -> vector<8x8xf32>
    %c1_i32_14 = arith.constant 1 : i32
    %30 = vector.broadcast %c1_i32_14 : i32 to vector<8x1xi32>
    %31 = arith.cmpi sge, %17, %30 : vector<8x1xi32>
    %cst_15 = arith.constant 0.000000e+00 : f32
    %32 = vector.broadcast %cst_15 : f32 to vector<8x8xf32>
    %33 = vector.shape_cast %31 : vector<8x1xi1> to vector<8x1xi1>
    %34 = vector.broadcast %33 : vector<8x1xi1> to vector<8x8xi1>
    %35 = arith.select %34, %29, %32 : vector<8x8xi1>, vector<8x8xf32>
    %36 = arith.truncf %35 : vector<8x8xf32> to vector<8x8xbf16>
    %cst_16 = arith.constant dense<0.000000e+00> : vector<8x16xf32>
    %37 = tpu.matmul %36, %20, %cst_16 {dimension_numbers = #tpu.dot_dimension_numbers<[1], [0], [0], [1], [0, 0, 1, 1], [], []>} : vector<8x8xbf16>, vector<8x16xbf16>, vector<8x16xf32> -> vector<8x16xf32>
    %38 = arith.addf %28, %37 : vector<8x16xf32>
    %c7_i32 = arith.constant 7 : i32
    %39 = tpu.dynamic_rotate %18 by %c7_i32 dim 0 : vector<8x8xf32>, i32 -> vector<8x8xf32>
    %c3_i32 = arith.constant 3 : i32
    %40 = vector.broadcast %c3_i32 : i32 to vector<8x1xi32>
    %41 = arith.cmpi slt, %17, %40 : vector<8x1xi32>
    %cst_17 = arith.constant 0.000000e+00 : f32
    %42 = vector.broadcast %cst_17 : f32 to vector<8x8xf32>
    %43 = vector.shape_cast %41 : vector<8x1xi1> to vector<8x1xi1>
    %44 = vector.broadcast %43 : vector<8x1xi1> to vector<8x8xi1>
    %45 = arith.select %44, %39, %42 : vector<8x8xi1>, vector<8x8xf32>
    %46 = arith.truncf %45 : vector<8x8xf32> to vector<8x8xbf16>
    %cst_18 = arith.constant dense<0.000000e+00> : vector<8x16xf32>
    %47 = tpu.matmul %46, %24, %cst_18 {dimension_numbers = #tpu.dot_dimension_numbers<[1], [0], [0], [1], [0, 0, 1, 1], [], []>} : vector<8x8xbf16>, vector<8x16xbf16>, vector<8x16xf32> -> vector<8x16xf32>
    %48 = arith.addf %38, %47 : vector<8x16xf32>
    %cst_19 = arith.constant 0.000000e+00 : f32
    %49 = vector.broadcast %cst_19 : f32 to vector<8x16xf32>
    %50 = arith.maximumf %48, %49 : vector<8x16xf32>
    %51 = arith.truncf %50 : vector<8x16xf32> to vector<8x16xbf16>
    %c0_20 = arith.constant 0 : index
    %c0_21 = arith.constant 0 : index
    %52 = vector.load %arg4[%c0_20, %c0_21] : memref<8x16xbf16, #tpu.memory_space<vmem>>, vector<8x16xbf16>
    tpu.vector_store %arg4[%c0_20, %c0_21], %51 {strides = array<i32>} : memref<8x16xbf16, #tpu.memory_space<vmem>>, vector<8x16xbf16>,
    return
  }
  func.func @transform_0(%arg0: i32) -> (i32, i32) {
    %c0_i32 = arith.constant 0 : i32
    %c0_i32_0 = arith.constant 0 : i32
    return %arg0, %c0_i32 : i32, i32
  }
  func.func @transform_1(%arg0: i32) -> (i32, i32, i32) {
    %c0_i32 = arith.constant 0 : i32
    %c0_i32_0 = arith.constant 0 : i32
    %c0_i32_1 = arith.constant 0 : i32
    %c0_i32_2 = arith.constant 0 : i32
    return %c0_i32, %c0_i32_0, %c0_i32_1 : i32, i32, i32
  }
  func.func @transform_2(%arg0: i32) -> (i32, i32) {
    %c0_i32 = arith.constant 0 : i32
    %c0_i32_0 = arith.constant 0 : i32
    %c0_i32_1 = arith.constant 0 : i32
    return %c0_i32, %c0_i32_0 : i32, i32
  }
  func.func @transform_3(%arg0: i32) -> (i32, i32) {
    %c0_i32 = arith.constant 0 : i32
    %c0_i32_0 = arith.constant 0 : i32
    return %arg0, %c0_i32 : i32, i32
  }
}

module attributes {stable_mosaic.version = 11 : i64} {
  func.func @_dec_stage_kernel(%arg0: i32, %arg1: memref<8x16xbf16, #tpu.memory_space<vmem>>, %arg2: memref<6x16x16xbf16, #tpu.memory_space<vmem>>, %arg3: memref<2x1x16xf32, #tpu.memory_space<vmem>>, %arg4: memref<2x16x16xbf16, #tpu.memory_space<vmem>>, %arg5: memref<2x1x16xf32, #tpu.memory_space<vmem>>, %arg6: memref<2x16x16xbf16, #tpu.memory_space<vmem>>, %arg7: memref<2x16x16xbf16, #tpu.memory_space<vmem>>, %arg8: memref<1x16xf32, #tpu.memory_space<vmem>>, %arg9: memref<8x32xbf16, #tpu.memory_space<vmem>>) attributes {dimension_semantics = [#tpu.dimension_semantics<parallel>], iteration_bounds = array<i64: 2>, scalar_prefetch = 0 : i64, scratch_operands = 0 : i64, tpu.core_type = #tpu.core_type<tc>, window_params = [{transform_indices = @transform_0, window_bounds = array<i64: 8, 16>}, {pipeline_mode = #tpu.pipeline_mode<synchronous>, transform_indices = @transform_1, window_bounds = array<i64: 6, 16, 16>}, {pipeline_mode = #tpu.pipeline_mode<synchronous>, transform_indices = @transform_2, window_bounds = array<i64: 2, 1, 16>}, {pipeline_mode = #tpu.pipeline_mode<synchronous>, transform_indices = @transform_3, window_bounds = array<i64: 2, 16, 16>}, {pipeline_mode = #tpu.pipeline_mode<synchronous>, transform_indices = @transform_4, window_bounds = array<i64: 2, 1, 16>}, {pipeline_mode = #tpu.pipeline_mode<synchronous>, transform_indices = @transform_5, window_bounds = array<i64: 2, 16, 16>}, {pipeline_mode = #tpu.pipeline_mode<synchronous>, transform_indices = @transform_6, window_bounds = array<i64: 2, 16, 16>}, {pipeline_mode = #tpu.pipeline_mode<synchronous>, transform_indices = @transform_7, window_bounds = array<i64: 1, 16>}, {transform_indices = @transform_8, window_bounds = array<i64: 8, 32>}]} {
    %c0 = arith.constant 0 : index
    %c0_0 = arith.constant 0 : index
    %0 = vector.load %arg1[%c0, %c0_0] : memref<8x16xbf16, #tpu.memory_space<vmem>>, vector<8x16xbf16>
    %1 = arith.extf %0 : vector<8x16xbf16> to vector<8x16xf32>
    %2 = tpu.iota {dimensions = array<i32: 0>} : vector<8x1xi32>
    %cst = arith.constant 0.000000e+00 : f32
    %3 = vector.broadcast %cst : f32 to vector<8x16xf32>
    %4 = arith.maximumf %1, %3 : vector<8x16xf32>
    %5 = arith.truncf %4 : vector<8x16xf32> to vector<8x16xbf16>
    %c0_1 = arith.constant 0 : index
    %c0_2 = arith.constant 0 : index
    %c0_3 = arith.constant 0 : index
    %6 = vector.load %arg2[%c0_1, %c0_2, %c0_3] : memref<6x16x16xbf16, #tpu.memory_space<vmem>>, vector<1x16x16xbf16>
    %7 = vector.shape_cast %6 : vector<1x16x16xbf16> to vector<16x16xbf16>
    %c1 = arith.constant 1 : index
    %c0_4 = arith.constant 0 : index
    %c0_5 = arith.constant 0 : index
    %8 = vector.load %arg2[%c1, %c0_4, %c0_5] : memref<6x16x16xbf16, #tpu.memory_space<vmem>>, vector<1x16x16xbf16>
    %9 = vector.shape_cast %8 : vector<1x16x16xbf16> to vector<16x16xbf16>
    %c2 = arith.constant 2 : index
    %c0_6 = arith.constant 0 : index
    %c0_7 = arith.constant 0 : index
    %10 = vector.load %arg2[%c2, %c0_6, %c0_7] : memref<6x16x16xbf16, #tpu.memory_space<vmem>>, vector<1x16x16xbf16>
    %11 = vector.shape_cast %10 : vector<1x16x16xbf16> to vector<16x16xbf16>
    %c0_8 = arith.constant 0 : index
    %c0_9 = arith.constant 0 : index
    %c0_10 = arith.constant 0 : index
    %12 = vector.load %arg3[%c0_8, %c0_9, %c0_10] : memref<2x1x16xf32, #tpu.memory_space<vmem>>, vector<1x1x16xf32>
    %13 = vector.shape_cast %12 : vector<1x1x16xf32> to vector<1x16xf32>
    %cst_11 = arith.constant dense<0.000000e+00> : vector<8x16xf32>
    %14 = tpu.matmul %5, %9, %cst_11 {dimension_numbers = #tpu.dot_dimension_numbers<[1], [0], [0], [1], [0, 0, 1, 1], [], []>} : vector<8x16xbf16>, vector<16x16xbf16>, vector<8x16xf32> -> vector<8x16xf32>
    %15 = vector.broadcast %13 : vector<1x16xf32> to vector<8x16xf32>
    %16 = arith.addf %14, %15 : vector<8x16xf32>
    %c3_i32 = arith.constant 3 : i32
    %17 = tpu.dynamic_rotate %4 by %c3_i32 dim 0 : vector<8x16xf32>, i32 -> vector<8x16xf32>
    %c3_i32_12 = arith.constant 3 : i32
    %18 = vector.broadcast %c3_i32_12 : i32 to vector<8x1xi32>
    %19 = arith.cmpi sge, %2, %18 : vector<8x1xi32>
    %cst_13 = arith.constant 0.000000e+00 : f32
    %20 = vector.broadcast %cst_13 : f32 to vector<8x16xf32>
    %21 = vector.shape_cast %19 : vector<8x1xi1> to vector<8x1xi1>
    %22 = vector.broadcast %21 : vector<8x1xi1> to vector<8x16xi1>
    %23 = arith.select %22, %17, %20 : vector<8x16xi1>, vector<8x16xf32>
    %24 = arith.truncf %23 : vector<8x16xf32> to vector<8x16xbf16>
    %cst_14 = arith.constant dense<0.000000e+00> : vector<8x16xf32>
    %25 = tpu.matmul %24, %7, %cst_14 {dimension_numbers = #tpu.dot_dimension_numbers<[1], [0], [0], [1], [0, 0, 1, 1], [], []>} : vector<8x16xbf16>, vector<16x16xbf16>, vector<8x16xf32> -> vector<8x16xf32>
    %26 = arith.addf %16, %25 : vector<8x16xf32>
    %c5_i32 = arith.constant 5 : i32
    %27 = tpu.dynamic_rotate %4 by %c5_i32 dim 0 : vector<8x16xf32>, i32 -> vector<8x16xf32>
    %c5_i32_15 = arith.constant 5 : i32
    %28 = vector.broadcast %c5_i32_15 : i32 to vector<8x1xi32>
    %29 = arith.cmpi slt, %2, %28 : vector<8x1xi32>
    %cst_16 = arith.constant 0.000000e+00 : f32
    %30 = vector.broadcast %cst_16 : f32 to vector<8x16xf32>
    %31 = vector.shape_cast %29 : vector<8x1xi1> to vector<8x1xi1>
    %32 = vector.broadcast %31 : vector<8x1xi1> to vector<8x16xi1>
    %33 = arith.select %32, %27, %30 : vector<8x16xi1>, vector<8x16xf32>
    %34 = arith.truncf %33 : vector<8x16xf32> to vector<8x16xbf16>
    %cst_17 = arith.constant dense<0.000000e+00> : vector<8x16xf32>
    %35 = tpu.matmul %34, %11, %cst_17 {dimension_numbers = #tpu.dot_dimension_numbers<[1], [0], [0], [1], [0, 0, 1, 1], [], []>} : vector<8x16xbf16>, vector<16x16xbf16>, vector<8x16xf32> -> vector<8x16xf32>
    %36 = arith.addf %26, %35 : vector<8x16xf32>
    %cst_18 = arith.constant 0.000000e+00 : f32
    %37 = vector.broadcast %cst_18 : f32 to vector<8x16xf32>
    %38 = arith.maximumf %36, %37 : vector<8x16xf32>
    %39 = arith.truncf %38 : vector<8x16xf32> to vector<8x16xbf16>
    %c0_19 = arith.constant 0 : index
    %c0_20 = arith.constant 0 : index
    %c0_21 = arith.constant 0 : index
    %40 = vector.load %arg4[%c0_19, %c0_20, %c0_21] : memref<2x16x16xbf16, #tpu.memory_space<vmem>>, vector<1x16x16xbf16>
    %41 = vector.shape_cast %40 : vector<1x16x16xbf16> to vector<16x16xbf16>
    %cst_22 = arith.constant dense<0.000000e+00> : vector<8x16xf32>
    %42 = tpu.matmul %39, %41, %cst_22 {dimension_numbers = #tpu.dot_dimension_numbers<[1], [0], [0], [1], [0, 0, 1, 1], [], []>} : vector<8x16xbf16>, vector<16x16xbf16>, vector<8x16xf32> -> vector<8x16xf32>
    %43 = arith.addf %1, %42 : vector<8x16xf32>
    %c0_23 = arith.constant 0 : index
    %c0_24 = arith.constant 0 : index
    %c0_25 = arith.constant 0 : index
    %44 = vector.load %arg5[%c0_23, %c0_24, %c0_25] : memref<2x1x16xf32, #tpu.memory_space<vmem>>, vector<1x1x16xf32>
    %45 = vector.shape_cast %44 : vector<1x1x16xf32> to vector<1x16xf32>
    %46 = vector.broadcast %45 : vector<1x16xf32> to vector<8x16xf32>
    %47 = arith.addf %43, %46 : vector<8x16xf32>
    %cst_26 = arith.constant 0.000000e+00 : f32
    %48 = vector.broadcast %cst_26 : f32 to vector<8x16xf32>
    %49 = arith.maximumf %47, %48 : vector<8x16xf32>
    %50 = arith.truncf %49 : vector<8x16xf32> to vector<8x16xbf16>
    %c3 = arith.constant 3 : index
    %c0_27 = arith.constant 0 : index
    %c0_28 = arith.constant 0 : index
    %51 = vector.load %arg2[%c3, %c0_27, %c0_28] : memref<6x16x16xbf16, #tpu.memory_space<vmem>>, vector<1x16x16xbf16>
    %52 = vector.shape_cast %51 : vector<1x16x16xbf16> to vector<16x16xbf16>
    %c4 = arith.constant 4 : index
    %c0_29 = arith.constant 0 : index
    %c0_30 = arith.constant 0 : index
    %53 = vector.load %arg2[%c4, %c0_29, %c0_30] : memref<6x16x16xbf16, #tpu.memory_space<vmem>>, vector<1x16x16xbf16>
    %54 = vector.shape_cast %53 : vector<1x16x16xbf16> to vector<16x16xbf16>
    %c5 = arith.constant 5 : index
    %c0_31 = arith.constant 0 : index
    %c0_32 = arith.constant 0 : index
    %55 = vector.load %arg2[%c5, %c0_31, %c0_32] : memref<6x16x16xbf16, #tpu.memory_space<vmem>>, vector<1x16x16xbf16>
    %56 = vector.shape_cast %55 : vector<1x16x16xbf16> to vector<16x16xbf16>
    %c1_33 = arith.constant 1 : index
    %c0_34 = arith.constant 0 : index
    %c0_35 = arith.constant 0 : index
    %57 = vector.load %arg3[%c1_33, %c0_34, %c0_35] : memref<2x1x16xf32, #tpu.memory_space<vmem>>, vector<1x1x16xf32>
    %58 = vector.shape_cast %57 : vector<1x1x16xf32> to vector<1x16xf32>
    %cst_36 = arith.constant dense<0.000000e+00> : vector<8x16xf32>
    %59 = tpu.matmul %50, %54, %cst_36 {dimension_numbers = #tpu.dot_dimension_numbers<[1], [0], [0], [1], [0, 0, 1, 1], [], []>} : vector<8x16xbf16>, vector<16x16xbf16>, vector<8x16xf32> -> vector<8x16xf32>
    %60 = vector.broadcast %58 : vector<1x16xf32> to vector<8x16xf32>
    %61 = arith.addf %59, %60 : vector<8x16xf32>
    %c1_i32 = arith.constant 1 : i32
    %62 = tpu.dynamic_rotate %49 by %c1_i32 dim 0 : vector<8x16xf32>, i32 -> vector<8x16xf32>
    %c1_i32_37 = arith.constant 1 : i32
    %63 = vector.broadcast %c1_i32_37 : i32 to vector<8x1xi32>
    %64 = arith.cmpi sge, %2, %63 : vector<8x1xi32>
    %cst_38 = arith.constant 0.000000e+00 : f32
    %65 = vector.broadcast %cst_38 : f32 to vector<8x16xf32>
    %66 = vector.shape_cast %64 : vector<8x1xi1> to vector<8x1xi1>
    %67 = vector.broadcast %66 : vector<8x1xi1> to vector<8x16xi1>
    %68 = arith.select %67, %62, %65 : vector<8x16xi1>, vector<8x16xf32>
    %69 = arith.truncf %68 : vector<8x16xf32> to vector<8x16xbf16>
    %cst_39 = arith.constant dense<0.000000e+00> : vector<8x16xf32>
    %70 = tpu.matmul %69, %52, %cst_39 {dimension_numbers = #tpu.dot_dimension_numbers<[1], [0], [0], [1], [0, 0, 1, 1], [], []>} : vector<8x16xbf16>, vector<16x16xbf16>, vector<8x16xf32> -> vector<8x16xf32>
    %71 = arith.addf %61, %70 : vector<8x16xf32>
    %c7_i32 = arith.constant 7 : i32
    %72 = tpu.dynamic_rotate %49 by %c7_i32 dim 0 : vector<8x16xf32>, i32 -> vector<8x16xf32>
    %c7_i32_40 = arith.constant 7 : i32
    %73 = vector.broadcast %c7_i32_40 : i32 to vector<8x1xi32>
    %74 = arith.cmpi slt, %2, %73 : vector<8x1xi32>
    %cst_41 = arith.constant 0.000000e+00 : f32
    %75 = vector.broadcast %cst_41 : f32 to vector<8x16xf32>
    %76 = vector.shape_cast %74 : vector<8x1xi1> to vector<8x1xi1>
    %77 = vector.broadcast %76 : vector<8x1xi1> to vector<8x16xi1>
    %78 = arith.select %77, %72, %75 : vector<8x16xi1>, vector<8x16xf32>
    %79 = arith.truncf %78 : vector<8x16xf32> to vector<8x16xbf16>
    %cst_42 = arith.constant dense<0.000000e+00> : vector<8x16xf32>
    %80 = tpu.matmul %79, %56, %cst_42 {dimension_numbers = #tpu.dot_dimension_numbers<[1], [0], [0], [1], [0, 0, 1, 1], [], []>} : vector<8x16xbf16>, vector<16x16xbf16>, vector<8x16xf32> -> vector<8x16xf32>
    %81 = arith.addf %71, %80 : vector<8x16xf32>
    %cst_43 = arith.constant 0.000000e+00 : f32
    %82 = vector.broadcast %cst_43 : f32 to vector<8x16xf32>
    %83 = arith.maximumf %81, %82 : vector<8x16xf32>
    %84 = arith.truncf %83 : vector<8x16xf32> to vector<8x16xbf16>
    %c1_44 = arith.constant 1 : index
    %c0_45 = arith.constant 0 : index
    %c0_46 = arith.constant 0 : index
    %85 = vector.load %arg4[%c1_44, %c0_45, %c0_46] : memref<2x16x16xbf16, #tpu.memory_space<vmem>>, vector<1x16x16xbf16>
    %86 = vector.shape_cast %85 : vector<1x16x16xbf16> to vector<16x16xbf16>
    %cst_47 = arith.constant dense<0.000000e+00> : vector<8x16xf32>
    %87 = tpu.matmul %84, %86, %cst_47 {dimension_numbers = #tpu.dot_dimension_numbers<[1], [0], [0], [1], [0, 0, 1, 1], [], []>} : vector<8x16xbf16>, vector<16x16xbf16>, vector<8x16xf32> -> vector<8x16xf32>
    %88 = arith.addf %47, %87 : vector<8x16xf32>
    %c1_48 = arith.constant 1 : index
    %c0_49 = arith.constant 0 : index
    %c0_50 = arith.constant 0 : index
    %89 = vector.load %arg5[%c1_48, %c0_49, %c0_50] : memref<2x1x16xf32, #tpu.memory_space<vmem>>, vector<1x1x16xf32>
    %90 = vector.shape_cast %89 : vector<1x1x16xf32> to vector<1x16xf32>
    %91 = vector.broadcast %90 : vector<1x16xf32> to vector<8x16xf32>
    %92 = arith.addf %88, %91 : vector<8x16xf32>
    %93 = arith.truncf %92 : vector<8x16xf32> to vector<8x16xbf16>
    %c1_i32_51 = arith.constant 1 : i32
    %94 = tpu.dynamic_rotate %92 by %c1_i32_51 dim 0 : vector<8x16xf32>, i32 -> vector<8x16xf32>
    %c1_i32_52 = arith.constant 1 : i32
    %95 = vector.broadcast %c1_i32_52 : i32 to vector<8x1xi32>
    %96 = arith.cmpi sge, %2, %95 : vector<8x1xi32>
    %cst_53 = arith.constant 0.000000e+00 : f32
    %97 = vector.broadcast %cst_53 : f32 to vector<8x16xf32>
    %98 = vector.shape_cast %96 : vector<8x1xi1> to vector<8x1xi1>
    %99 = vector.broadcast %98 : vector<8x1xi1> to vector<8x16xi1>
    %100 = arith.select %99, %94, %97 : vector<8x16xi1>, vector<8x16xf32>
    %101 = arith.truncf %100 : vector<8x16xf32> to vector<8x16xbf16>
    %c7_i32_54 = arith.constant 7 : i32
    %102 = tpu.dynamic_rotate %92 by %c7_i32_54 dim 0 : vector<8x16xf32>, i32 -> vector<8x16xf32>
    %c7_i32_55 = arith.constant 7 : i32
    %103 = vector.broadcast %c7_i32_55 : i32 to vector<8x1xi32>
    %104 = arith.cmpi slt, %2, %103 : vector<8x1xi32>
    %cst_56 = arith.constant 0.000000e+00 : f32
    %105 = vector.broadcast %cst_56 : f32 to vector<8x16xf32>
    %106 = vector.shape_cast %104 : vector<8x1xi1> to vector<8x1xi1>
    %107 = vector.broadcast %106 : vector<8x1xi1> to vector<8x16xi1>
    %108 = arith.select %107, %102, %105 : vector<8x16xi1>, vector<8x16xf32>
    %109 = arith.truncf %108 : vector<8x16xf32> to vector<8x16xbf16>
    %c0_57 = arith.constant 0 : index
    %c0_58 = arith.constant 0 : index
    %110 = vector.load %arg8[%c0_57, %c0_58] : memref<1x16xf32, #tpu.memory_space<vmem>>, vector<1x16xf32>
    %c0_59 = arith.constant 0 : index
    %c0_60 = arith.constant 0 : index
    %c0_61 = arith.constant 0 : index
    %111 = vector.load %arg6[%c0_59, %c0_60, %c0_61] : memref<2x16x16xbf16, #tpu.memory_space<vmem>>, vector<1x16x16xbf16>
    %112 = vector.shape_cast %111 : vector<1x16x16xbf16> to vector<16x16xbf16>
    %cst_62 = arith.constant dense<0.000000e+00> : vector<8x16xf32>
    %113 = tpu.matmul %101, %112, %cst_62 {dimension_numbers = #tpu.dot_dimension_numbers<[1], [0], [0], [1], [0, 0, 1, 1], [], []>} : vector<8x16xbf16>, vector<16x16xbf16>, vector<8x16xf32> -> vector<8x16xf32>
    %c1_63 = arith.constant 1 : index
    %c0_64 = arith.constant 0 : index
    %c0_65 = arith.constant 0 : index
    %114 = vector.load %arg6[%c1_63, %c0_64, %c0_65] : memref<2x16x16xbf16, #tpu.memory_space<vmem>>, vector<1x16x16xbf16>
    %115 = vector.shape_cast %114 : vector<1x16x16xbf16> to vector<16x16xbf16>
    %cst_66 = arith.constant dense<0.000000e+00> : vector<8x16xf32>
    %116 = tpu.matmul %93, %115, %cst_66 {dimension_numbers = #tpu.dot_dimension_numbers<[1], [0], [0], [1], [0, 0, 1, 1], [], []>} : vector<8x16xbf16>, vector<16x16xbf16>, vector<8x16xf32> -> vector<8x16xf32>
    %117 = arith.addf %113, %116 : vector<8x16xf32>
    %118 = vector.broadcast %110 : vector<1x16xf32> to vector<8x16xf32>
    %119 = arith.addf %117, %118 : vector<8x16xf32>
    %c0_67 = arith.constant 0 : index
    %c0_68 = arith.constant 0 : index
    %c0_69 = arith.constant 0 : index
    %120 = vector.load %arg7[%c0_67, %c0_68, %c0_69] : memref<2x16x16xbf16, #tpu.memory_space<vmem>>, vector<1x16x16xbf16>
    %121 = vector.shape_cast %120 : vector<1x16x16xbf16> to vector<16x16xbf16>
    %cst_70 = arith.constant dense<0.000000e+00> : vector<8x16xf32>
    %122 = tpu.matmul %93, %121, %cst_70 {dimension_numbers = #tpu.dot_dimension_numbers<[1], [0], [0], [1], [0, 0, 1, 1], [], []>} : vector<8x16xbf16>, vector<16x16xbf16>, vector<8x16xf32> -> vector<8x16xf32>
    %c1_71 = arith.constant 1 : index
    %c0_72 = arith.constant 0 : index
    %c0_73 = arith.constant 0 : index
    %123 = vector.load %arg7[%c1_71, %c0_72, %c0_73] : memref<2x16x16xbf16, #tpu.memory_space<vmem>>, vector<1x16x16xbf16>
    %124 = vector.shape_cast %123 : vector<1x16x16xbf16> to vector<16x16xbf16>
    %cst_74 = arith.constant dense<0.000000e+00> : vector<8x16xf32>
    %125 = tpu.matmul %109, %124, %cst_74 {dimension_numbers = #tpu.dot_dimension_numbers<[1], [0], [0], [1], [0, 0, 1, 1], [], []>} : vector<8x16xbf16>, vector<16x16xbf16>, vector<8x16xf32> -> vector<8x16xf32>
    %126 = arith.addf %122, %125 : vector<8x16xf32>
    %127 = vector.broadcast %110 : vector<1x16xf32> to vector<8x16xf32>
    %128 = arith.addf %126, %127 : vector<8x16xf32>
    %129 = arith.truncf %119 : vector<8x16xf32> to vector<8x16xbf16>
    %c0_75 = arith.constant 0 : index
    %c0_76 = arith.constant 0 : index
    %130 = vector.load %arg9[%c0_75, %c0_76] : memref<8x32xbf16, #tpu.memory_space<vmem>>, vector<8x16xbf16>
    tpu.vector_store %arg9[%c0_75, %c0_76], %129 {strides = array<i32>} : memref<8x32xbf16, #tpu.memory_space<vmem>>, vector<8x16xbf16>,
    %131 = arith.truncf %128 : vector<8x16xf32> to vector<8x16xbf16>
    %c0_77 = arith.constant 0 : index
    %c16 = arith.constant 16 : index
    %132 = vector.load %arg9[%c0_77, %c16] : memref<8x32xbf16, #tpu.memory_space<vmem>>, vector<8x16xbf16>
    tpu.vector_store %arg9[%c0_77, %c16], %131 {strides = array<i32>} : memref<8x32xbf16, #tpu.memory_space<vmem>>, vector<8x16xbf16>,
    return
  }
  func.func @transform_0(%arg0: i32) -> (i32, i32) {
    %c0_i32 = arith.constant 0 : i32
    %c0_i32_0 = arith.constant 0 : i32
    return %arg0, %c0_i32 : i32, i32
  }
  func.func @transform_1(%arg0: i32) -> (i32, i32, i32) {
    %c0_i32 = arith.constant 0 : i32
    %c0_i32_0 = arith.constant 0 : i32
    %c0_i32_1 = arith.constant 0 : i32
    %c0_i32_2 = arith.constant 0 : i32
    return %c0_i32, %c0_i32_0, %c0_i32_1 : i32, i32, i32
  }
  func.func @transform_2(%arg0: i32) -> (i32, i32, i32) {
    %c0_i32 = arith.constant 0 : i32
    %c0_i32_0 = arith.constant 0 : i32
    %c0_i32_1 = arith.constant 0 : i32
    %c0_i32_2 = arith.constant 0 : i32
    return %c0_i32, %c0_i32_0, %c0_i32_1 : i32, i32, i32
  }
  func.func @transform_3(%arg0: i32) -> (i32, i32, i32) {
    %c0_i32 = arith.constant 0 : i32
    %c0_i32_0 = arith.constant 0 : i32
    %c0_i32_1 = arith.constant 0 : i32
    %c0_i32_2 = arith.constant 0 : i32
    return %c0_i32, %c0_i32_0, %c0_i32_1 : i32, i32, i32
  }
  func.func @transform_4(%arg0: i32) -> (i32, i32, i32) {
    %c0_i32 = arith.constant 0 : i32
    %c0_i32_0 = arith.constant 0 : i32
    %c0_i32_1 = arith.constant 0 : i32
    %c0_i32_2 = arith.constant 0 : i32
    return %c0_i32, %c0_i32_0, %c0_i32_1 : i32, i32, i32
  }
  func.func @transform_5(%arg0: i32) -> (i32, i32, i32) {
    %c0_i32 = arith.constant 0 : i32
    %c0_i32_0 = arith.constant 0 : i32
    %c0_i32_1 = arith.constant 0 : i32
    %c0_i32_2 = arith.constant 0 : i32
    return %c0_i32, %c0_i32_0, %c0_i32_1 : i32, i32, i32
  }
  func.func @transform_6(%arg0: i32) -> (i32, i32, i32) {
    %c0_i32 = arith.constant 0 : i32
    %c0_i32_0 = arith.constant 0 : i32
    %c0_i32_1 = arith.constant 0 : i32
    %c0_i32_2 = arith.constant 0 : i32
    return %c0_i32, %c0_i32_0, %c0_i32_1 : i32, i32, i32
  }
  func.func @transform_7(%arg0: i32) -> (i32, i32) {
    %c0_i32 = arith.constant 0 : i32
    %c0_i32_0 = arith.constant 0 : i32
    %c0_i32_1 = arith.constant 0 : i32
    return %c0_i32, %c0_i32_0 : i32, i32
  }
  func.func @transform_8(%arg0: i32) -> (i32, i32) {
    %c0_i32 = arith.constant 0 : i32
    %c0_i32_0 = arith.constant 0 : i32
    return %arg0, %c0_i32 : i32, i32
  }
}

</mosaic_0001>

<bundles_post_ra>
// kernel: vqvae_forward.9
= control target key start
LH: loop header
LB: loop body
LE: loop exit
PB: predicated region body
PF: predicated region fallthrough
CT: control target
= control target key end

     0   :  { %8 = vsyncpa [#allocation3], 0  ;;  %s516_s12 = smov 0   ;;  %s549_s0 = inlined_call_operand.vmem [shape: bf16[32,16], index: 0, kind: input, shape index: {}]   ;;  %s550_s1 = inlined_call_operand.hbm [shape: bf16[3,16,16], index: 1, kind: input, shape index: {}]   ;;  %s551_s2 = inlined_call_operand.vmem [shape: f32[1,16], index: 2, kind: input, shape index: {}]   ;;  %s552_s3 = inlined_call_operand.vmem [shape: bf16[32,16], index: 3, kind: output, shape index: {}]  }
   0x1 LB: > { %s124_s15 = sshll.u32 %s550_s1, 4  ;;  %s393_s16 = sadd.s32 4294967295, %s491_s12   ;;  %s491_s12 = sphi %s516_s12, %s14_s12   ;;  %s125_s15 = int_to_ptr.hbm [resolvable:$true] %s124_s15 }
   0x2   : > { %p395_p0 = scmp.ge.s32.totalorder %s491_s12, 1  ;;  %p113_p1 = scmp.lt.s32.totalorder %s491_s12, 3 }
   0x3   : > { %p437_p2 = scmp.eq.s32.totalorder %s393_s16, 0  ;;  %s493_s17 = smov [#allocation2]  }
   0x4   : > { %p114_p3 = pnand %p395_p0, %p113_p1  ;;  %s126_s18 = sshll.u32 %s493_s17, 4  ;;  %s127_s18 = int_to_ptr.vmem [resolvable:$true] %s126_s18 }
   0x5   : > { %s494_s19 = smov 64   ;;  %s495_s20 = smov 4  }
   0x6   : > { %p433_p4 = pneg %p114_p3  ;;  %154 = sbr.rel (%p114_p3) target bundleno = 175 (0xaf), region = 32 }
   0x8   : > { %p434_p5 = pnand %p437_p2, %p433_p4 }
   0xa   : > { %436 = dma.hbm_to_vmem [thread:$0]  (!%p434_p5), %s125_s15, 384, %s127_s18, [#allocation3], %s494_s19, %s494_s19, %s495_s20  }
   0xb   : > { %486 = dma.done.wait (%p437_p2), [#allocation3], 384  }
   0xc   : > { %488 = vsyncadd (%p437_p2), [#allocation3], 4294966912  ;;  %s400_s21 = sshll.u32 %s393_s16, 1  ;;  %v194_v0 = vlaneseq  ;;  %v427_v3 = vld [vmem:[#allocation2 + $0x8] sm:$0xff]  ;;  %v426_v5 = vld [vmem:[#allocation2] sm:$0xff]  ;;  %vm222_vm0 = vcmask 130048  }
   0xd   : > { %p180_p6 = scmp.lt.s32.totalorder %s400_s21, 3  ;;  %v428_v6 = vld [vmem:[#allocation2 + $0x10] sm:$0xff]  ;;  %233 = vmatpush.bf16.msra.mxu0 %v427_v3  ;;  %270 = vmatpush.bf16.msra.mxu1 %v426_v5  ;;  %v450_v22 = vld [vmem:[%s551_s2] ss:$0 sm:$0xff]  ;;  %vm322_vm5 = vcmask 125952  }
   0xe   : > { %v195_v1 = vshrl.u32 %v194_v0, 7  ;;  %309 = vmatpush.bf16.msra.mxu2 %v428_v6 }
   0xf   : > { %s554_s21 = smov (!%p180_p6, %s400_s21), 3 }
  0x10   : > { %s401_s22 = sshll.u32 %s554_s21, 2  ;;  %v196_v2 = vadd.s32 8, %v195_v1  ;;  %vm242_vm1 = vcmp.lt.s32.totalorder %v195_v1, 1  ;;  %vm245_vm2 = vcmp.ge.s32.totalorder %v195_v1, 1  ;;  %vm281_vm3 = vcmp.lt.s32.totalorder %v195_v1, 7 }
  0x11   : > { %s183_s25 = scalar_lea.vmem %s549_s0, %s401_s22  ;;  %s189_s30 = scalar_lea.vmem %s552_s3, %s401_s22 }
  0x12   : > { %v425_v4 = vld [vmem:[%s183_s25] sm:$0xff]  ;;  %vm285_vm4 = vcmp.lt.s32.totalorder %v196_v2, 15 }
  0x13   : > { %v192_v7 = vld [vmem:[%s183_s25] sm:$0xff]   ;;  %412 = vmatmul.msk.bf16.vlgmr.msra.gmra.mxu0 %vm222_vm0, %v425_v4 }
  0x14   : > { %v197_v8 = vunpack.c.l.bf16 %v192_v7  ;;  %v198_v9 = vunpack.c.h.bf16 %v192_v7 }
  0x16   : > { %v240_v10 = vrot.slane %v197_v8, 7  ;;  %v241_v11 = vrot.slane %v198_v9, 7  ;;  %v279_v12 = vrot.slane %v197_v8, 1  ;;  %v280_v13 = vrot.slane %v198_v9, 1 }
  0x18   : > { %v243_v14 = vsel %vm242_vm1, %v240_v10, %v241_v11  ;;  %v244_v15 = vsel %vm242_vm1, %v241_v11, %v240_v10  ;;  %v282_v16 = vsel %vm281_vm3, %v279_v12, %v280_v13  ;;  %v283_v17 = vsel %vm281_vm3, %v280_v13, %v279_v12 }
  0x19   : > { %v251_v18 = vsel %vm245_vm2, %v244_v15, 0.0  ;;  %v291_v19 = vsel %vm285_vm4, %v283_v17, 0.0 }
  0x1a   : > { %v253_v20 = vpack.c.bf16 %v243_v14, %v251_v18  ;;  %v292_v21 = vpack.c.bf16 %v291_v19, %v282_v16 }
  0x1c   : > { %417 = vmatmul.msk.bf16.vlgmr.msra.gmra.mxu1 %vm222_vm0, %v253_v20  ;;  %422 = vmatmul.msk.bf16.vlgmr.msra.gmra.mxu2 %vm222_vm0, %v292_v21 }
  0x90   : > { %v235_v23 = vpop.f32.mrf.mxu0 }
  0x91   : > { %v236_v24 = vadd.f32 %v450_v22, %v235_v23 }
  0x98   : > { %v237_v29 = vpop.f32.mrf.mxu0 }
  0x99   : > { %v272_v25 = vpop.f32.mrf.mxu1  ;;  %v238_v32 = vadd.f32 %v450_v22, %v237_v29 }
  0x9a   : > { %v277_v26 = vadd.f32 %v272_v25, %v236_v24 }
  0x9f   : > { %v311_v27 = vpop.f32.mrf.mxu2 }
  0xa0   : > { %v316_v28 = vadd.f32 %v311_v27, %v277_v26 }
  0xa1   : > { %v274_v31 = vpop.f32.mrf.mxu1 }
  0xa2   : > { %v318_v30 = vmax.f32 %v316_v28, 0.0  ;;  %v278_v34 = vadd.f32 %v274_v31, %v238_v32 }
  0xa4   : > { %v320_v33 = vpack.c.bf16 %v318_v30, %v318_v30 }
  0xa6   : > { %323 = vst.msk [vmem:[%s189_s30] sm:$0xf] %vm322_vm5, %v320_v33 }
  0xa7   : > { %v313_v35 = vpop.f32.mrf.mxu2 }
  0xa8   : > { %v317_v36 = vadd.f32 %v313_v35, %v278_v34 }
  0xaa   : > { %v319_v37 = vmax.f32 %v317_v36, 0.0 }
  0xac   : > { %v321_v38 = vpack.c.bf16 %v319_v37, %v319_v37 }
  0xae   : > { %324 = vst.msk [vmem:[%s189_s30 + $0x4] sm:$0xf] %vm322_vm5, %v321_v38 }
  0xaf PF: > { %s14_s12 = sadd.s32 1, %s491_s12  }
  0xb0   : > { %p11_p7 = scmp.ge.s32.totalorder %s14_s12, 4  }
  0xb2   :  { %13 = sbr.rel (!%p11_p7) target bundleno = 1 (0x1), region = 69 }
  0xb7   :  { %347 = vsyncpa [#allocation3], 1 }
  0xb8   :  { %349 = vsyncpa [#allocation3 + $0x1], 1 }

// kernel: vqvae_forward.10
= control target key start
LH: loop header
LB: loop body
LE: loop exit
PB: predicated region body
PF: predicated region fallthrough
CT: control target
= control target key end

     0   :  { %12 = vsyncpa [#allocation3], 0  ;;  %s1357_s0 = inlined_call_operand.vmem [shape: bf16[16,32], index: 0, kind: input, shape index: {}]   ;;  %s1358_s1 = inlined_call_operand.hbm [shape: bf16[4,16,16], index: 1, kind: input, shape index: {}]   ;;  %s1359_s2 = inlined_call_operand.hbm [shape: f32[1,16], index: 2, kind: input, shape index: {}]   ;;  %s1360_s3 = inlined_call_operand.vmem [shape: bf16[6,16,16], index: 3, kind: input, shape index: {}]   ;;  %s1361_s4 = inlined_call_operand.hbm [shape: f32[2,1,16], index: 4, kind: input, shape index: {}]   ;;  %s1362_s5 = inlined_call_operand.hbm [shape: bf16[2,16,16], index: 5, kind: input, shape index: {}]   ;;  %s1363_s6 = inlined_call_operand.hbm [shape: f32[2,1,16], index: 6, kind: input, shape index: {}]   ;;  %s1364_s7 = inlined_call_operand.vmem [shape: bf16[16,16], index: 7, kind: output, shape index: {}]  }
   0x1   :  { %13 = vsyncpa [#allocation5], 0 }
   0x2   :  { %14 = vsyncpa [#allocation8], 0  ;;  %s1233_s24 = smov 0  }
   0x3 LB: > { %s229_s27 = sshll.u32 %s1359_s2, 4  ;;  %s1242_s28 = sadd.s32 4294967295, %s1181_s24   ;;  %s1181_s24 = sphi %s1233_s24, %s20_s24   ;;  %s230_s27 = int_to_ptr.hbm [resolvable:$true] %s229_s27 }
   0x4   : > { %p845_p0 = scmp.ge.s32.totalorder %s1181_s24, 1  ;;  %p203_p1 = scmp.lt.s32.totalorder %s1181_s24, 3 }
   0x5   : > { %p980_p2 = scmp.eq.s32.totalorder %s1242_s28, 0  ;;  %s1183_s30 = smov [#allocation4]  }
   0x6   : > { %p1247_p3 = pnand %p845_p0, %p203_p1  ;;  %s231_s8 = sshll.u32 %s1183_s30, 4  ;;  %s232_s8 = int_to_ptr.vmem [resolvable:$true] %s231_s8 }
   0x7   : > { %s257_s11 = sshll.u32 %s1362_s5, 4  ;;  %s1184_s13 = smov [#allocation7]   ;;  %s258_s11 = int_to_ptr.hbm [resolvable:$true] %s257_s11 }
   0x8   : > { %p964_p4 = pneg %p1247_p3  ;;  %s259_s14 = sshll.u32 %s1184_s13, 4  ;;  %s260_s14 = int_to_ptr.vmem [resolvable:$true] %s259_s14 }
   0x9   : > { %s214_s17 = sshll.u32 %s1358_s1, 4  ;;  %s1185_s18 = smov 64   ;;  %s215_s17 = int_to_ptr.hbm [resolvable:$true] %s214_s17 }
   0xa   : > { %p1258_p5 = pnand %p980_p2, %p964_p4  ;;  %s1186_s19 = smov 4  }
   0xb   : > { %s1187_s20 = smov [#allocation2]   ;;  %s243_s25 = sshll.u32 %s1361_s4, 4  ;;  %s244_s25 = int_to_ptr.hbm [resolvable:$true] %s243_s25 }
   0xc   : > { %970 = dma.hbm_to_vmem [thread:$0]  (!%p1258_p5), %s230_s27, 16, %s232_s8, [#allocation5]  }
   0xd   : > { %976 = dma.hbm_to_vmem [thread:$0]  (!%p1258_p5), %s258_s11, 256, %s260_s14, [#allocation8], %s1185_s18, %s1185_s18, %s1186_s19  }
   0xe   : > { %s216_s21 = sshll.u32 %s1187_s20, 4  ;;  %s1188_s26 = smov [#allocation6]   ;;  %s217_s21 = int_to_ptr.vmem [resolvable:$true] %s216_s21 }
   0xf   : > { %967 = dma.hbm_to_vmem [thread:$0]  (!%p1258_p5), %s215_s17, 512, %s217_s21, [#allocation3], %s1185_s18, %s1185_s18, %s1186_s19  }
  0x10   : > { %s245_s30 = sshll.u32 %s1188_s26, 4  ;;  %s271_s9 = sshll.u32 %s1363_s6, 4  ;;  %s246_s30 = int_to_ptr.vmem [resolvable:$true] %s245_s30  ;;  %s272_s9 = int_to_ptr.hbm [resolvable:$true] %s271_s9 }
  0x11   : > { %s1189_s10 = smov 16   ;;  %s1190_s11 = smov 1  }
  0x12   : > { %973 = dma.hbm_to_vmem [thread:$0]  (!%p1258_p5), %s244_s25, 32, %s246_s30, [#allocation5], %s1189_s10, %s1189_s10, %s1190_s11  }
  0x13   : > { %s1191_s13 = smov [#allocation9]   ;;  %296 = sbr.rel (%p1247_p3) target bundleno = 863 (0x35f), region = 48 }
  0x14   : > { %s273_s14 = sshll.u32 %s1191_s13, 4  ;;  %s274_s14 = int_to_ptr.vmem [resolvable:$true] %s273_s14 }
  0x15   : > { %979 = dma.hbm_to_vmem [thread:$0]  (!%p1258_p5), %s272_s9, 32, %s274_s14, [#allocation8], %s1189_s10, %s1189_s10, %s1190_s11  }
  0x18   : > { %1168 = dma.done.wait (%p980_p2), [#allocation3], 512  }
  0x19   : > { %1170 = vsyncadd (%p980_p2), [#allocation3], 4294966784 }
  0x1a   : > { %1172 = dma.done.wait (%p980_p2), [#allocation5], 48  }
  0x1b   : > { %1174 = vsyncadd (%p980_p2), [#allocation5], 4294967248 }
  0x1c   : > { %1176 = dma.done.wait (%p980_p2), [#allocation8], 288  }
  0x1d   : > { %1178 = vsyncadd (%p980_p2), [#allocation8], 4294967008  ;;  %p347_p6 = scmp.lt.s32.totalorder %s1242_s28, 1  ;;  %v357_v0 = vlaneseq  ;;  %v932_v3 = vld [vmem:[#allocation2 + $0x8] sm:$0xff]  ;;  %v935_v4 = vld [vmem:[#allocation2 + $0x18] sm:$0xff]  ;;  %vm383_vm1 = vcmask 130048  }
  0x1e   : > { %v934_v6 = vld [vmem:[#allocation2] sm:$0xff]  ;;  %394 = vmatpush.bf16.msra.mxu0 %v932_v3  ;;  %480 = vmatpush.bf16.msra.mxu3 %v935_v4  ;;  %s1192_s17 = smov 112   ;;  %v933_v15 = vld [vmem:[#allocation2 + $0x10] sm:$0xff]  ;;  %v937_v23 = vld [vmem:[%s1360_s3 + $0x8] sm:$0xff]  ;;  %vm738_vm5 = vcmask 125952  }
  0x1f   : > { %s1368_s28 = smov (!%p347_p6, %s1242_s28), 1  ;;  %v1299_v1 = vshrl.u32 %v357_v0, 7  ;;  %453 = vmatpush.bf16.msra.mxu2 %v934_v6  ;;  %424 = vmatpush.bf16.msra.mxu1 %v933_v15  ;;  %v938_v22 = vld [vmem:[%s1360_s3 + $0x10] sm:$0xff]  ;;  %v936_v24 = vld [vmem:[%s1360_s3] sm:$0xff]  ;;  %v942_v43 = vld [vmem:[%s1360_s3 + $0x28] sm:$0xff] }
  0x20   : > { %s858_s29 = sshll.u32 %s1368_s28, 2  ;;  %v1008_v25 = vld [vmem:[#allocation4] ss:$0 sm:$0xff]  ;;  %v939_v42 = vld [vmem:[#allocation7] sm:$0xff]  ;;  %v1009_v45 = vld [vmem:[#allocation6] ss:$0 sm:$0xff] }
  0x21   : > { %s350_s16 = scalar_lea.vmem %s1357_s0, %s858_s29  ;;  %vm361_vm0 = vcmp.ge.s32.totalorder %v1299_v1, 1  ;;  %vm366_vm2 = vcmp.lt.s32.totalorder %v1299_v1, 7  ;;  %vm524_vm3 = vcmp.ge.s32.totalorder %v1299_v1, 3  ;;  %vm553_vm4 = vcmp.lt.s32.totalorder %v1299_v1, 5  ;;  %v941_v44 = vld [vmem:[%s1360_s3 + $0x20] sm:$0xff]  ;;  %v940_v57 = vld [vmem:[%s1360_s3 + $0x18] sm:$0xff]  ;;  %s354_s13 = scalar_lea.vmem %s1364_s7, %s858_s29 }
  0x22   : > { %v356_v2 = vld [vmem:[%s350_s16] sm:$0xf]  ;;  %517 = vmatpush.bf16.msrb.mxu0 %v937_v23  ;;  %601 = vmatpush.bf16.msrb.mxu3 %v939_v42  ;;  %v1010_v58 = vld [vmem:[#allocation9] ss:$0 sm:$0xff] }
  0x23   : > { %v359_v5 = vunpack.c.l.bf16 %v356_v2  ;;  %864 = vmatmul.msk.bf16.vlgmr.msra.gmra.mxu0 %vm383_vm1, %v356_v2  ;;  %v404_v13 = vunpack.c.l.b16 %v356_v2  ;;  %574 = vmatpush.bf16.msrb.mxu2 %v938_v22 }
  0x24   : > { %545 = vmatpush.bf16.msrb.mxu1 %v936_v24 }
  0x25   : > { %v360_v7 = vrot.slane %v359_v5, 7  ;;  %v365_v8 = vrot.slane %v359_v5, 1  ;;  %v405_v14 = vpack.c.b16 %v404_v13, %v404_v13 }
  0x26   : > { %645 = vmatpush.bf16.msra.mxu0 %v941_v44 }
  0x27   : > { %v364_v9 = vsel %vm361_vm0, %v360_v7, 0.0  ;;  %v369_v10 = vsel %vm366_vm2, %v365_v8, 0.0  ;;  %v943_v8 = vld [vmem:[#allocation7 + $0x8] sm:$0xff] }
  0x28   : > { %v431_v11 = vpack.c.bf16 %v364_v9, %v364_v9  ;;  %v460_v12 = vpack.c.bf16 %v369_v10, %v369_v10  ;;  %v1011_v9 = vld [vmem:[#allocation6 + $0x1] ss:$0 sm:$0xff] }
  0x2a   : > { %435 = vrot.lane.b32.xlu0 %v431_v11, %s1192_s17  ;;  %879 = vmatmul.msk.bf16.vlgmr.msra.gmra.mxu3 %vm383_vm1, %v460_v12 }
  0x2b   : > { %724 = vmatpush.bf16.msra.mxu3 %v943_v8 }
  0x32   : > { %406 = vrot.lane.b32.xlu0 %v405_v14, %s1192_s17 }
  0x9c   : > { %v436_v16 = vpop.permute.xlu0 %435 }
  0x9d   : > { %874 = vmatmul.msk.bf16.vlgmr.msra.gmra.mxu2 %vm383_vm1, %v436_v16 }
  0x9e   : > { %696 = vmatpush.bf16.msra.mxu2 %v942_v43 }
  0xa0   : > { %v396_v18 = vpop.f32.mrf.mxu0 }
  0xa1   : > { %v397_v26 = vadd.f32 %v1008_v25, %v396_v18 }
  0xa4   : > { %v407_v17 = vpop.permute.xlu0 %406 }
  0xa5   : > { %869 = vmatmul.msk.bf16.vlgmr.msra.gmra.mxu1 %vm383_vm1, %v407_v17 }
  0xa6   : > { %670 = vmatpush.bf16.msra.mxu1 %v940_v57 }
  0xa8   : > { %v398_v19 = vpop.f32.mrf.mxu0 }
  0xad   : > { %v482_v20 = vpop.f32.mrf.mxu3 }
  0xb5   : > { %v484_v21 = vpop.f32.mrf.mxu3 }
 0x120   : > { %v455_v27 = vpop.f32.mrf.mxu2 }
 0x122   : > { %v426_v28 = vpop.f32.mrf.mxu1 }
 0x123   : > { %v430_v29 = vadd.f32 %v426_v28, %v397_v26 }
 0x125   : > { %v459_v30 = vadd.f32 %v455_v27, %v430_v29 }
 0x127   : > { %v486_v31 = vadd.f32 %v482_v20, %v459_v30  ;;  %v1012_v20 = vld [vmem:[#allocation9 + $0x1] ss:$0 sm:$0xff] }
 0x128   : > { %v457_v32 = vpop.f32.mrf.mxu2 }
 0x129   : > { %v487_v33 = vmax.f32 %v486_v31, 0.0 }
 0x12a   : > { %v428_v34 = vpop.f32.mrf.mxu1 }
 0x12b   : > { %v488_v35 = vpack.c.bf16 %v487_v33, %v487_v33  ;;  %v523_v36 = vrot.slane %v487_v33, 5  ;;  %v552_v37 = vrot.slane %v487_v33, 3 }
 0x12d   : > { %888 = vmatmul.msk.bf16.vlgmr.msrb.gmra.mxu0 %vm383_vm1, %v488_v35  ;;  %v527_v38 = vsel %vm524_vm3, %v523_v36, 0.0  ;;  %v556_v39 = vsel %vm553_vm4, %v552_v37, 0.0 }
 0x12e   : > { %v528_v40 = vpack.c.bf16 %v527_v38, %v527_v38  ;;  %v557_v41 = vpack.c.bf16 %v556_v39, %v556_v39 }
 0x130   : > { %893 = vmatmul.msk.bf16.vlgmr.msrb.gmra.mxu1 %vm383_vm1, %v528_v40  ;;  %898 = vmatmul.msk.bf16.vlgmr.msrb.gmra.mxu2 %vm383_vm1, %v557_v41 }
 0x1aa   : > { %v519_v46 = vpop.f32.mrf.mxu0 }
 0x1ab   : > { %v520_v48 = vadd.f32 %v1009_v45, %v519_v46 }
 0x1ad   : > { %v547_v47 = vpop.f32.mrf.mxu1 }
 0x1ae   : > { %v551_v49 = vadd.f32 %v547_v47, %v520_v48 }
 0x1b2   : > { %v521_v50 = vpop.f32.mrf.mxu0 }
 0x1b3   : > { %v576_v51 = vpop.f32.mrf.mxu2 }
 0x1b4   : > { %v580_v52 = vadd.f32 %v576_v51, %v551_v49 }
 0x1b5   : > { %v549_v53 = vpop.f32.mrf.mxu1 }
 0x1b6   : > { %v581_v54 = vmax.f32 %v580_v52, 0.0 }
 0x1b8   : > { %v582_v55 = vpack.c.bf16 %v581_v54, %v581_v54 }
 0x1ba   : > { %903 = vmatmul.msk.bf16.vlgmr.msrb.gmra.mxu3 %vm383_vm1, %v582_v55 }
 0x1bb   : > { %v578_v56 = vpop.f32.mrf.mxu2 }
 0x23d   : > { %v603_v59 = vpop.f32.mrf.mxu3 }
 0x23e   : > { %v607_v60 = vadd.f32 %v603_v59, %v486_v31 }
 0x240   : > { %v612_v61 = vadd.f32 %v1010_v58, %v607_v60 }
 0x242   : > { %v613_v62 = vmax.f32 %v612_v61, 0.0 }
 0x244   : > { %v614_v63 = vpack.c.bf16 %v613_v62, %v613_v62  ;;  %v651_v0 = vrot.slane %v613_v62, 7  ;;  %v677_v2 = vrot.slane %v613_v62, 1 }
 0x245   : > { %v605_v3 = vpop.f32.mrf.mxu3 }
 0x246   : > { %v652_v4 = vsel %vm361_vm0, %v651_v0, 0.0  ;;  %v678_v5 = vsel %vm366_vm2, %v677_v2, 0.0  ;;  %914 = vmatmul.msk.bf16.vlgmr.msra.gmra.mxu0 %vm383_vm1, %v614_v63 }
 0x247   : > { %v653_v6 = vpack.c.bf16 %v652_v4, %v652_v4  ;;  %v679_v7 = vpack.c.bf16 %v678_v5, %v678_v5 }
 0x249   : > { %919 = vmatmul.msk.bf16.vlgmr.msra.gmra.mxu1 %vm383_vm1, %v653_v6  ;;  %924 = vmatmul.msk.bf16.vlgmr.msra.gmra.mxu2 %vm383_vm1, %v679_v7 }
 0x2c3   : > { %v647_v10 = vpop.f32.mrf.mxu0 }
 0x2c4   : > { %v648_v12 = vadd.f32 %v1011_v9, %v647_v10 }
 0x2c6   : > { %v672_v11 = vpop.f32.mrf.mxu1 }
 0x2c7   : > { %v676_v13 = vadd.f32 %v672_v11, %v648_v12 }
 0x2cb   : > { %v649_v14 = vpop.f32.mrf.mxu0 }
 0x2cc   : > { %v698_v15 = vpop.f32.mrf.mxu2 }
 0x2cd   : > { %v702_v1 = vadd.f32 %v698_v15, %v676_v13 }
 0x2ce   : > { %v674_v16 = vpop.f32.mrf.mxu1 }
 0x2cf   : > { %v703_v17 = vmax.f32 %v702_v1, 0.0 }
 0x2d1   : > { %v704_v18 = vpack.c.bf16 %v703_v17, %v703_v17 }
 0x2d3   : > { %929 = vmatmul.msk.bf16.vlgmr.msra.gmra.mxu3 %vm383_vm1, %v704_v18 }
 0x2d4   : > { %v700_v19 = vpop.f32.mrf.mxu2 }
 0x356   : > { %v726_v21 = vpop.f32.mrf.mxu3 }
 0x357   : > { %v730_v22 = vadd.f32 %v726_v21, %v612_v61 }
 0x359   : > { %v736_v23 = vadd.f32 %v1012_v20, %v730_v22 }
 0x35b   : > { %v737_v24 = vpack.c.bf16 %v736_v23, %v736_v23 }
 0x35d   : > { %739 = vst.msk [vmem:[%s354_s13] sm:$0xf] %vm738_vm5, %v737_v24 }
 0x35e   : > { %v728_v25 = vpop.f32.mrf.mxu3 }
 0x35f PF: > { %s20_s24 = sadd.s32 1, %s1181_s24  }
 0x360   : > { %p17_p7 = scmp.ge.s32.totalorder %s20_s24, 4  }
 0x362   :  { %19 = sbr.rel (!%p17_p7) target bundleno = 3 (0x3), region = 110 }
 0x367   :  { %759 = vsyncpa [#allocation3], 1 }
 0x368   :  { %761 = vsyncpa [#allocation3 + $0x1], 1 }
 0x369   :  { %762 = vsyncpa [#allocation5], 1 }
 0x36a   :  { %763 = vsyncpa [#allocation8], 1 }

// kernel: vqvae_forward.12
= control target key start
LH: loop header
LB: loop body
LE: loop exit
PB: predicated region body
PF: predicated region fallthrough
CT: control target
= control target key end

     0   :  { %v16_v0 = vlaneseq  ;;  %vm49_vm0 = vcmask 130048   ;;  %vm124_vm3 = vcmask 64512   ;;  %s191_s1 = inlined_call_operand.vmem [shape: bf16[3,16,8], index: 1, kind: input, shape index: {}]   ;;  %s192_s0 = inlined_call_operand.vmem [shape: bf16[8,16], index: 0, kind: input, shape index: {}]   ;;  %s193_s2 = inlined_call_operand.vmem [shape: f32[1,8], index: 2, kind: input, shape index: {}]   ;;  %s194_s3 = inlined_call_operand.vmem [shape: f32[8,8], index: 3, kind: output, shape index: {}]  }
   0x1   :  { %v150_v1 = vld [vmem:[%s191_s1 + $0x8] sm:$0xff]  ;;  %v149_v2 = vld [vmem:[%s191_s1] sm:$0xff]  ;;  %v151_v3 = vld [vmem:[%s191_s1 + $0x10] sm:$0xff] }
   0x2   :  { %v15_v4 = vld [vmem:[%s192_s0] sm:$0xf]  ;;  %v17_v5 = vshrl.u32 %v16_v0, 7  ;;  %60 = vmatpush.bf16.msra.mxu0 %v150_v1  ;;  %88 = vmatpush.bf16.msra.mxu1 %v149_v2 }
   0x3   :  { %v30_v6 = vunpack.c.l.bf16 %v15_v4  ;;  %117 = vmatpush.bf16.msra.mxu2 %v151_v3  ;;  %v152_v14 = vld [vmem:[%s193_s2] ss:$0 sm:$0xff] }
   0x4   :  { %v22_v7 = vand.u32 3, %v17_v5 }
   0x5   :  { %v66_v8 = vrot.slane %v30_v6, 7  ;;  %v95_v9 = vrot.slane %v30_v6, 1  ;;  %138 = vmatmul.msk.bf16.vlgmr.msra.gmra.mxu0 %vm49_vm0, %v15_v4 }
   0x6   :  { %vm67_vm1 = vcmp.ge.s32.totalorder %v22_v7, 1  ;;  %vm96_vm2 = vcmp.lt.s32.totalorder %v22_v7, 3 }
   0x7   :  { %v70_v10 = vsel %vm67_vm1, %v66_v8, 0.0  ;;  %v99_v11 = vsel %vm96_vm2, %v95_v9, 0.0 }
   0x8   :  { %v71_v12 = vpack.c.bf16 %v70_v10, %v70_v10  ;;  %v100_v13 = vpack.c.bf16 %v99_v11, %v99_v11 }
   0xa   :  { %143 = vmatmul.msk.bf16.vlgmr.msra.gmra.mxu1 %vm49_vm0, %v71_v12  ;;  %148 = vmatmul.msk.bf16.vlgmr.msra.gmra.mxu2 %vm49_vm0, %v100_v13 }
  0x82   :  { %v62_v15 = vpop.f32.mrf.mxu0 }
  0x83   :  { %v63_v16 = vadd.f32 %v152_v14, %v62_v15 }
  0x87   :  { %v90_v17 = vpop.f32.mrf.mxu1 }
  0x88   :  { %v94_v18 = vadd.f32 %v90_v17, %v63_v16 }
  0x8a   :  { %v64_v19 = vpop.f32.mrf.mxu0 }
  0x8d   :  { %v119_v20 = vpop.f32.mrf.mxu2 }
  0x8e   :  { %v123_v21 = vadd.f32 %v119_v20, %v94_v18 }
  0x8f   :  { %v92_v22 = vpop.f32.mrf.mxu1 }
  0x90   :  { %125 = vst.msk [vmem:[%s194_s3] sm:$0xff] %vm124_vm3, %v123_v21 }
  0x95   :  { %v121_v23 = vpop.f32.mrf.mxu2 }

// kernel: vqvae_forward.11
= control target key start
LH: loop header
LB: loop body
LE: loop exit
PB: predicated region body
PF: predicated region fallthrough
CT: control target
= control target key end

     0   :  { %12 = vsyncpa [#allocation3], 0  ;;  %s834_s0 = inlined_call_operand.vmem [shape: bf16[8,32], index: 0, kind: input, shape index: {}]   ;;  %s835_s1 = inlined_call_operand.vmem [shape: bf16[4,16,16], index: 1, kind: input, shape index: {}]   ;;  %s836_s2 = inlined_call_operand.hbm [shape: f32[1,16], index: 2, kind: input, shape index: {}]   ;;  %s837_s3 = inlined_call_operand.hbm [shape: bf16[6,16,16], index: 3, kind: input, shape index: {}]   ;;  %s838_s4 = inlined_call_operand.hbm [shape: f32[2,1,16], index: 4, kind: input, shape index: {}]   ;;  %s839_s5 = inlined_call_operand.hbm [shape: bf16[2,16,16], index: 5, kind: input, shape index: {}]   ;;  %s840_s6 = inlined_call_operand.hbm [shape: f32[2,1,16], index: 6, kind: input, shape index: {}]   ;;  %s841_s7 = inlined_call_operand.vmem [shape: bf16[8,16], index: 7, kind: output, shape index: {}]  }
   0x1   :  { %13 = vsyncpa [#allocation5], 0  ;;  %s34_s26 = sshll.u32 %s837_s3, 4  ;;  %s35_s26 = int_to_ptr.hbm [resolvable:$true] %s34_s26 }
   0x2   :  { %14 = vsyncpa [#allocation8], 0  ;;  %s725_s27 = smov [#allocation4]   ;;  %s60_s8 = sshll.u32 %s839_s5, 4  ;;  %s61_s8 = int_to_ptr.hbm [resolvable:$true] %s60_s8 }
   0x3   :  { %s36_s28 = sshll.u32 %s725_s27, 4  ;;  %s726_s9 = smov 64   ;;  %s37_s28 = int_to_ptr.vmem [resolvable:$true] %s36_s28 }
   0x4   :  { %s727_s10 = smov 4   ;;  %s728_s11 = smov [#allocation7]  }
   0x5   :  { %42 = dma.hbm_to_vmem [thread:$0]  %s35_s26, 768, %s37_s28, [#allocation5], %s726_s9, %s726_s9, %s727_s10  }
   0x6   :  { %s62_s12 = sshll.u32 %s728_s11, 4  ;;  %s24_s15 = sshll.u32 %s836_s2, 4  ;;  %s63_s12 = int_to_ptr.vmem [resolvable:$true] %s62_s12  ;;  %s25_s15 = int_to_ptr.hbm [resolvable:$true] %s24_s15 }
   0x7   :  { %68 = dma.hbm_to_vmem [thread:$0]  %s61_s8, 256, %s63_s12, [#allocation8], %s726_s9, %s726_s9, %s727_s10  }
   0x8   :  { %s47_s17 = sshll.u32 %s838_s4, 4  ;;  %s729_s18 = smov [#allocation2]   ;;  %s48_s17 = int_to_ptr.hbm [resolvable:$true] %s47_s17 }
   0x9   :  { %s26_s19 = sshll.u32 %s729_s18, 4  ;;  %s730_s5 = smov [#allocation6]   ;;  %s27_s19 = int_to_ptr.vmem [resolvable:$true] %s26_s19 }
   0xa   :  { %29 = dma.hbm_to_vmem [thread:$0]  %s25_s15, 16, %s27_s19, [#allocation3]  }
   0xb   :  { %s49_s20 = sshll.u32 %s730_s5, 4  ;;  %s731_s21 = smov 16   ;;  %s50_s20 = int_to_ptr.vmem [resolvable:$true] %s49_s20 }
   0xc   :  { %s732_s22 = smov 1   ;;  %s73_s24 = sshll.u32 %s840_s6, 4  ;;  %s74_s24 = int_to_ptr.hbm [resolvable:$true] %s73_s24 }
   0xd   :  { %55 = dma.hbm_to_vmem [thread:$0]  %s48_s17, 32, %s50_s20, [#allocation5], %s731_s21, %s731_s21, %s732_s22  }
   0xe   :  { %s733_s25 = smov [#allocation9]  }
   0xf   :  { %s75_s26 = sshll.u32 %s733_s25, 4  ;;  %s76_s26 = int_to_ptr.vmem [resolvable:$true] %s75_s26 }
  0x10   :  { %81 = dma.hbm_to_vmem [thread:$0]  %s74_s24, 32, %s76_s26, [#allocation8], %s731_s21, %s731_s21, %s732_s22  }
  0x11   :  { %719 = dma.done.wait [#allocation3], 16  }
  0x12   :  { %720 = vsyncadd [#allocation3], 4294967280 }
  0x13   :  { %721 = dma.done.wait [#allocation5], 800  }
  0x14   :  { %722 = vsyncadd [#allocation5], 4294966496 }
  0x15   :  { %723 = dma.done.wait [#allocation8], 288  }
  0x16   :  { %724 = vsyncadd [#allocation8], 4294967008  ;;  %v104_v0 = vlaneseq  ;;  %v103_v3 = vld [vmem:[%s834_s0] sm:$0xf]  ;;  %v572_v4 = vld [vmem:[%s835_s1 + $0x8] sm:$0xff]  ;;  %vm142_vm1 = vcmask 130048  }
  0x17   :  { %v575_v5 = vld [vmem:[%s835_s1 + $0x18] sm:$0xff]  ;;  %v118_v6 = vunpack.c.l.bf16 %v103_v3  ;;  %v574_v7 = vld [vmem:[%s835_s1] sm:$0xff]  ;;  %153 = vmatpush.bf16.msra.mxu0 %v572_v4  ;;  %s734_s0 = smov 112   ;;  %v163_v14 = vunpack.c.l.b16 %v103_v3  ;;  %v573_v16 = vld [vmem:[%s835_s1 + $0x10] sm:$0xff]  ;;  %vm497_vm5 = vcmask 125952  }
  0x18   :  { %v105_v1 = vshrl.u32 %v104_v0, 7  ;;  %239 = vmatpush.bf16.msra.mxu3 %v575_v5  ;;  %212 = vmatpush.bf16.msra.mxu2 %v574_v7  ;;  %v578_v23 = vld [vmem:[#allocation4 + $0x10] sm:$0xff]  ;;  %v577_v24 = vld [vmem:[#allocation4 + $0x8] sm:$0xff]  ;;  %v576_v25 = vld [vmem:[#allocation4] sm:$0xff] }
  0x19   :  { %v119_v8 = vrot.slane %v118_v6, 7  ;;  %v124_v9 = vrot.slane %v118_v6, 1  ;;  %v164_v15 = vpack.c.b16 %v163_v14, %v163_v14  ;;  %183 = vmatpush.bf16.msra.mxu1 %v573_v16  ;;  %v594_v26 = vld [vmem:[#allocation2] ss:$0 sm:$0xff]  ;;  %v579_v43 = vld [vmem:[#allocation7] sm:$0xff]  ;;  %v582_v44 = vld [vmem:[#allocation4 + $0x28] sm:$0xff] }
  0x1a   :  { %v790_v2 = vand.u32 3, %v105_v1  ;;  %512 = vmatmul.msk.bf16.vlgmr.msra.gmra.mxu0 %vm142_vm1, %v103_v3  ;;  %v581_v45 = vld [vmem:[#allocation4 + $0x20] sm:$0xff]  ;;  %v595_v46 = vld [vmem:[#allocation6] ss:$0 sm:$0xff]  ;;  %v580_v58 = vld [vmem:[#allocation4 + $0x18] sm:$0xff] }
  0x1b   :  { %276 = vmatpush.bf16.msrb.mxu0 %v577_v24  ;;  %v596_v59 = vld [vmem:[#allocation9] ss:$0 sm:$0xff] }
  0x1c   :  { %vm120_vm0 = vcmp.ge.s32.totalorder %v790_v2, 1  ;;  %vm125_vm2 = vcmp.lt.s32.totalorder %v790_v2, 3  ;;  %333 = vmatpush.bf16.msrb.mxu2 %v578_v23  ;;  %vm283_vm3 = vcmp.ge.s32.totalorder %v790_v2, 3  ;;  %vm312_vm4 = vcmp.lt.s32.totalorder %v790_v2, 1  ;;  %360 = vmatpush.bf16.msrb.mxu3 %v579_v43 }
  0x1d   :  { %v123_v10 = vsel %vm120_vm0, %v119_v8, 0.0  ;;  %v128_v11 = vsel %vm125_vm2, %v124_v9, 0.0  ;;  %304 = vmatpush.bf16.msrb.mxu1 %v576_v25  ;;  %v583_v9 = vld [vmem:[#allocation7 + $0x8] sm:$0xff] }
  0x1e   :  { %v190_v12 = vpack.c.bf16 %v123_v10, %v123_v10  ;;  %v219_v13 = vpack.c.bf16 %v128_v11, %v128_v11  ;;  %v597_v10 = vld [vmem:[#allocation6 + $0x1] ss:$0 sm:$0xff] }
  0x1f   :  { %404 = vmatpush.bf16.msra.mxu0 %v581_v45 }
  0x20   :  { %194 = vrot.lane.b32.xlu0 %v190_v12, %s734_s0  ;;  %531 = vmatmul.msk.bf16.vlgmr.msra.gmra.mxu3 %vm142_vm1, %v219_v13 }
  0x21   :  { %483 = vmatpush.bf16.msra.mxu3 %v583_v9 }
  0x28   :  { %165 = vrot.lane.b32.xlu0 %v164_v15, %s734_s0 }
  0x92   :  { %v195_v17 = vpop.permute.xlu0 %194 }
  0x93   :  { %524 = vmatmul.msk.bf16.vlgmr.msra.gmra.mxu2 %vm142_vm1, %v195_v17 }
  0x94   :  { %455 = vmatpush.bf16.msra.mxu2 %v582_v44 }
  0x97   :  { %v155_v19 = vpop.f32.mrf.mxu0 }
  0x98   :  { %v156_v27 = vadd.f32 %v594_v26, %v155_v19 }
  0x9a   :  { %v166_v18 = vpop.permute.xlu0 %165 }
  0x9b   :  { %519 = vmatmul.msk.bf16.vlgmr.msra.gmra.mxu1 %vm142_vm1, %v166_v18 }
  0x9c   :  { %429 = vmatpush.bf16.msra.mxu1 %v580_v58 }
  0x9f   :  { %v157_v20 = vpop.f32.mrf.mxu0 }
  0xa3   :  { %v241_v21 = vpop.f32.mrf.mxu3 }
  0xab   :  { %v243_v22 = vpop.f32.mrf.mxu3 }
 0x116   :  { %v214_v28 = vpop.f32.mrf.mxu2 }
 0x118   :  { %v185_v29 = vpop.f32.mrf.mxu1 }
 0x119   :  { %v189_v30 = vadd.f32 %v185_v29, %v156_v27 }
 0x11b   :  { %v218_v31 = vadd.f32 %v214_v28, %v189_v30 }
 0x11d   :  { %v245_v32 = vadd.f32 %v241_v21, %v218_v31  ;;  %v598_v21 = vld [vmem:[#allocation9 + $0x1] ss:$0 sm:$0xff] }
 0x11e   :  { %v216_v33 = vpop.f32.mrf.mxu2 }
 0x11f   :  { %v246_v34 = vmax.f32 %v245_v32, 0.0 }
 0x120   :  { %v187_v35 = vpop.f32.mrf.mxu1 }
 0x121   :  { %v247_v36 = vpack.c.bf16 %v246_v34, %v246_v34  ;;  %v282_v37 = vrot.slane %v246_v34, 5  ;;  %v311_v38 = vrot.slane %v246_v34, 3 }
 0x123   :  { %536 = vmatmul.msk.bf16.vlgmr.msrb.gmra.mxu0 %vm142_vm1, %v247_v36  ;;  %v286_v39 = vsel %vm283_vm3, %v282_v37, 0.0  ;;  %v315_v40 = vsel %vm312_vm4, %v311_v38, 0.0 }
 0x124   :  { %v287_v41 = vpack.c.bf16 %v286_v39, %v286_v39  ;;  %v316_v42 = vpack.c.bf16 %v315_v40, %v315_v40 }
 0x126   :  { %541 = vmatmul.msk.bf16.vlgmr.msrb.gmra.mxu1 %vm142_vm1, %v287_v41  ;;  %546 = vmatmul.msk.bf16.vlgmr.msrb.gmra.mxu2 %vm142_vm1, %v316_v42 }
 0x1a0   :  { %v278_v47 = vpop.f32.mrf.mxu0 }
 0x1a1   :  { %v279_v49 = vadd.f32 %v595_v46, %v278_v47 }
 0x1a3   :  { %v306_v48 = vpop.f32.mrf.mxu1 }
 0x1a4   :  { %v310_v50 = vadd.f32 %v306_v48, %v279_v49 }
 0x1a8   :  { %v280_v51 = vpop.f32.mrf.mxu0 }
 0x1a9   :  { %v335_v52 = vpop.f32.mrf.mxu2 }
 0x1aa   :  { %v339_v53 = vadd.f32 %v335_v52, %v310_v50 }
 0x1ab   :  { %v308_v54 = vpop.f32.mrf.mxu1 }
 0x1ac   :  { %v340_v55 = vmax.f32 %v339_v53, 0.0 }
 0x1ae   :  { %v341_v56 = vpack.c.bf16 %v340_v55, %v340_v55 }
 0x1b0   :  { %551 = vmatmul.msk.bf16.vlgmr.msrb.gmra.mxu3 %vm142_vm1, %v341_v56 }
 0x1b1   :  { %v337_v57 = vpop.f32.mrf.mxu2 }
 0x233   :  { %v362_v60 = vpop.f32.mrf.mxu3 }
 0x234   :  { %v366_v61 = vadd.f32 %v362_v60, %v245_v32 }
 0x236   :  { %v371_v62 = vadd.f32 %v596_v59, %v366_v61 }
 0x238   :  { %v372_v63 = vmax.f32 %v371_v62, 0.0 }
 0x23a   :  { %v373_v0 = vpack.c.bf16 %v372_v63, %v372_v63  ;;  %v410_v1 = vrot.slane %v372_v63, 7  ;;  %v436_v3 = vrot.slane %v372_v63, 1 }
 0x23b   :  { %v364_v4 = vpop.f32.mrf.mxu3 }
 0x23c   :  { %v411_v5 = vsel %vm120_vm0, %v410_v1, 0.0  ;;  %v437_v6 = vsel %vm125_vm2, %v436_v3, 0.0  ;;  %556 = vmatmul.msk.bf16.vlgmr.msra.gmra.mxu0 %vm142_vm1, %v373_v0 }
 0x23d   :  { %v412_v7 = vpack.c.bf16 %v411_v5, %v411_v5  ;;  %v438_v8 = vpack.c.bf16 %v437_v6, %v437_v6 }
 0x23f   :  { %561 = vmatmul.msk.bf16.vlgmr.msra.gmra.mxu1 %vm142_vm1, %v412_v7  ;;  %566 = vmatmul.msk.bf16.vlgmr.msra.gmra.mxu2 %vm142_vm1, %v438_v8 }
 0x2b9   :  { %v406_v11 = vpop.f32.mrf.mxu0 }
 0x2ba   :  { %v407_v13 = vadd.f32 %v597_v10, %v406_v11 }
 0x2bc   :  { %v431_v12 = vpop.f32.mrf.mxu1 }
 0x2bd   :  { %v435_v14 = vadd.f32 %v431_v12, %v407_v13 }
 0x2c1   :  { %v408_v15 = vpop.f32.mrf.mxu0 }
 0x2c2   :  { %v457_v16 = vpop.f32.mrf.mxu2 }
 0x2c3   :  { %v461_v17 = vadd.f32 %v457_v16, %v435_v14 }
 0x2c4   :  { %v433_v2 = vpop.f32.mrf.mxu1 }
 0x2c5   :  { %v462_v18 = vmax.f32 %v461_v17, 0.0 }
 0x2c7   :  { %v463_v19 = vpack.c.bf16 %v462_v18, %v462_v18 }
 0x2c9   :  { %571 = vmatmul.msk.bf16.vlgmr.msra.gmra.mxu3 %vm142_vm1, %v463_v19 }
 0x2ca   :  { %v459_v20 = vpop.f32.mrf.mxu2 }
 0x34c   :  { %v485_v22 = vpop.f32.mrf.mxu3 }
 0x34d   :  { %v489_v23 = vadd.f32 %v485_v22, %v371_v62 }
 0x34f   :  { %v495_v24 = vadd.f32 %v598_v21, %v489_v23 }
 0x351   :  { %v496_v25 = vpack.c.bf16 %v495_v24, %v495_v24 }
 0x353   :  { %498 = vst.msk [vmem:[%s841_s7] sm:$0xf] %vm497_vm5, %v496_v25 }
 0x354   :  { %v487_v26 = vpop.f32.mrf.mxu3 }
 0x355   :  { %503 = vsyncpa [#allocation3], 1 }
 0x356   :  { %504 = vsyncpa [#allocation5], 1 }
 0x357   :  { %505 = vsyncpa [#allocation8], 1 }

// kernel: vqvae_forward.13
= control target key start
LH: loop header
LB: loop body
LE: loop exit
PB: predicated region body
PF: predicated region fallthrough
CT: control target
= control target key end

     0   :  { %vm45_vm0 = vcmask 64512   ;;  %vm80_vm1 = vcmask 523264   ;;  %v84_v16 = vlaneseq  ;;  %vm110_vm2 = vcmask 7168   ;;  %s205_s1 = inlined_call_operand.vmem [shape: bf16[64,8], index: 1, kind: input, shape index: {}]   ;;  %s206_s0 = inlined_call_operand.vmem [shape: f32[8,8], index: 0, kind: input, shape index: {}]   ;;  %s207_s2 = inlined_call_operand.vmem [shape: f32[1,64], index: 2, kind: input, shape index: {}]   ;;  %s208_s3 = inlined_call_operand.vmem [shape: s32[8,1], index: 3, kind: output, shape index: {}]  }
   0x1   :  { %v155_v0 = vld [vmem:[%s205_s1 + $0x18] sm:$0xff]  ;;  %v154_v2 = vld [vmem:[%s205_s1 + $0x10] sm:$0xff]  ;;  %v153_v4 = vld [vmem:[%s205_s1 + $0x8] sm:$0xff] }
   0x2   :  { %v59_v1 = vsel %vm45_vm0, %v155_v0, 0  ;;  %v56_v3 = vsel %vm45_vm0, %v154_v2, 0  ;;  %v53_v5 = vsel %vm45_vm0, %v153_v4, 0  ;;  %v152_v6 = vld [vmem:[%s205_s1] sm:$0xff]  ;;  %v85_v17 = vand.u32 127, %v84_v16 }
   0x3   :  { %65 = vmatpush.bf16.xpose.msra.mxu0 %v59_v1  ;;  %v50_v7 = vsel %vm45_vm0, %v152_v6, 0  ;;  %v15_v8 = vld [vmem:[%s206_s0] sm:$0xff] }
   0x4   :  { %v16_v9 = vpack.c.bf16 %v15_v8, %v15_v8  ;;  %v156_v10 = vld [vmem:[%s207_s2] ss:$0 sm:$0xff] }
   0xb   :  { %66 = vmatpush.bf16.xpose.msra.mxu0 %v56_v3 }
  0x13   :  { %67 = vmatpush.bf16.xpose.msra.mxu0 %v53_v5 }
  0x1b   :  { %68 = vmatpush.bf16.xpose.msra.mxu0 %v50_v7 }
  0x22   :  { %151 = vmatmul.msk.bf16.vlgmr.msra.gmra.mxu0 %vm45_vm0, %v16_v9 }
  0x9f   :  { %v70_v11 = vpop.f32.mrf.mxu0 }
  0xa0   :  { %v75_v12 = vmul.f32 2.0, %v70_v11 }
  0xa2   :  { %v79_v13 = vsub.f32 %v156_v10, %v75_v12 }
  0xa4   :  { %v81_v14 = vsel %vm80_vm1, %v79_v13, inf }
  0xa5   :  { %82 = vmin.xlane.f32.xlu0 %v81_v14 }
  0xa7   :  { %v72_v15 = vpop.f32.mrf.mxu0 }
 0x118   :  { %v83_v18 = vpop.xlane.xlu0 %82 }
 0x119   :  { %vm86_vm3 = vcmp.le.f32.partialorder %v79_v13, %v83_v18 }
 0x11a   :  { %v87_v19 = vsel %vm86_vm3, %v85_v17, 64 }
 0x11b   :  { %v88_v20 = vsel %vm80_vm1, %v87_v19, 2147483647 }
 0x11c   :  { %v90_v21 = vshra.s32 %v88_v20, 16  ;;  %v89_v23 = vand.u32 65535, %v88_v20 }
 0x11e   :  { %v92_v22 = vcvt.s32.f32 %v90_v21  ;;  %v91_v25 = vcvt.s32.f32 %v89_v23 }
 0x120   :  { %93 = vmin.xlane.f32.xlu0 %v92_v22 }
 0x193   :  { %v94_v24 = vpop.xlane.xlu0 %93 }
 0x194   :  { %vm95_vm4 = vcmp.eq.f32.partialorder %v92_v22, %v94_v24  ;;  %v100_v27 = vcvt.f32.s32 %v94_v24 }
 0x195   :  { %v96_v26 = vsel %vm95_vm4, %v91_v25, inf }
 0x196   :  { %97 = vmin.xlane.f32.xlu1 %v96_v26  ;;  %v101_v29 = vshll.u32 %v100_v27, 16 }
 0x209   :  { %v98_v28 = vpop.xlane.xlu1 %97 }
 0x20a   :  { %v99_v30 = vcvt.f32.s32 %v98_v28 }
 0x20c   :  { %v102_v31 = vadd.s32 %v101_v29, %v99_v30 }
 0x20e   :  { %112 = vst.msk [vmem:[#allocation3] sm:$0xff] %vm110_vm2, %v102_v31 }
 0x215   :  { %v128_v32 = vld [vmem:[#allocation3] sm:$0xff] }
 0x216   :  { %130 = vst.msk [vmem:[%s208_s3] sm:$0xff] %vm110_vm2, %v128_v32 }

// kernel: vqvae_forward.14
= control target key start
LH: loop header
LB: loop body
LE: loop exit
PB: predicated region body
PF: predicated region fallthrough
CT: control target
= control target key end

     0   :  { %vm44_vm0 = vcmask 1043456   ;;  %v16_v0 = vlaneseq  ;;  %vm40_vm1 = vcmask 64512   ;;  %vm115_vm4 = vcmask 125952   ;;  %s165_s1 = inlined_call_operand.vmem [shape: bf16[3,8,16], index: 1, kind: input, shape index: {}]   ;;  %s166_s0 = inlined_call_operand.vmem [shape: bf16[8,8], index: 0, kind: input, shape index: {}]   ;;  %s167_s2 = inlined_call_operand.vmem [shape: f32[1,16], index: 2, kind: input, shape index: {}]   ;;  %s168_s3 = inlined_call_operand.vmem [shape: bf16[8,16], index: 3, kind: output, shape index: {}]  }
   0x1   :  { %v121_v1 = vld [vmem:[%s165_s1 + $0x4] sm:$0xf]  ;;  %v15_v2 = vld [vmem:[%s166_s0] sm:$0xf]  ;;  %v122_v7 = vld [vmem:[%s165_s1 + $0x8] sm:$0xf] }
   0x2   :  { %v31_v3 = vld [vmem:[%s165_s1] sm:$0xf]  ;;  %v46_v4 = vsel %vm44_vm0, %v121_v1, 0  ;;  %v30_v5 = vunpack.c.l.bf16 %v15_v2  ;;  %v17_v8 = vshrl.u32 %v16_v0, 7  ;;  %v97_v9 = vsel %vm44_vm0, %v122_v7, 0 }
   0x3   :  { %v71_v6 = vsel %vm44_vm0, %v31_v3, 0  ;;  %55 = vmatpush.bf16.msra.mxu0 %v46_v4  ;;  %106 = vmatpush.bf16.msra.mxu2 %v97_v9  ;;  %v126_v17 = vld [vmem:[%s167_s2] ss:$0 sm:$0xff] }
   0x4   :  { %80 = vmatpush.bf16.msra.mxu1 %v71_v6  ;;  %v61_v10 = vrot.slane %v30_v5, 7  ;;  %v87_v11 = vrot.slane %v30_v5, 1  ;;  %v22_v12 = vand.u32 3, %v17_v8 }
   0x6   :  { %123 = vmatmul.msk.bf16.vlgmr.msra.gmra.mxu0 %vm40_vm1, %v15_v2  ;;  %vm62_vm2 = vcmp.ge.s32.totalorder %v22_v12, 1  ;;  %vm88_vm3 = vcmp.lt.s32.totalorder %v22_v12, 3 }
   0x7   :  { %v65_v13 = vsel %vm62_vm2, %v61_v10, 0.0  ;;  %v91_v14 = vsel %vm88_vm3, %v87_v11, 0.0 }
   0x8   :  { %v66_v15 = vpack.c.bf16 %v65_v13, %v65_v13  ;;  %v92_v16 = vpack.c.bf16 %v91_v14, %v91_v14 }
   0xa   :  { %124 = vmatmul.msk.bf16.vlgmr.msra.gmra.mxu1 %vm40_vm1, %v66_v15  ;;  %125 = vmatmul.msk.bf16.vlgmr.msra.gmra.mxu2 %vm40_vm1, %v92_v16 }
  0x83   :  { %v57_v18 = vpop.f32.mrf.mxu0 }
  0x84   :  { %v58_v19 = vadd.f32 %v126_v17, %v57_v18 }
  0x87   :  { %v82_v20 = vpop.f32.mrf.mxu1 }
  0x88   :  { %v86_v21 = vadd.f32 %v82_v20, %v58_v19 }
  0x8b   :  { %v59_v22 = vpop.f32.mrf.mxu0 }
  0x8d   :  { %v108_v23 = vpop.f32.mrf.mxu2 }
  0x8e   :  { %v112_v24 = vadd.f32 %v108_v23, %v86_v21 }
  0x8f   :  { %v84_v25 = vpop.f32.mrf.mxu1 }
  0x90   :  { %v113_v26 = vmax.f32 %v112_v24, 0.0 }
  0x92   :  { %v114_v27 = vpack.c.bf16 %v113_v26, %v113_v26 }
  0x94   :  { %116 = vst.msk [vmem:[%s168_s3] sm:$0xf] %vm115_vm4, %v114_v27 }
  0x95   :  { %v110_v28 = vpop.f32.mrf.mxu2 }

// kernel: vqvae_forward.17
= control target key start
LH: loop header
LB: loop body
LE: loop exit
PB: predicated region body
PF: predicated region fallthrough
CT: control target
= control target key end

     0   :  { %10 = vsyncpa [#allocation3], 0  ;;  %s864_s0 = inlined_call_operand.vmem [shape: bf16[32,16], index: 0, kind: input, shape index: {}]   ;;  %s865_s1 = inlined_call_operand.vmem [shape: bf16[3,16,16], index: 1, kind: input, shape index: {}]   ;;  %s866_s2 = inlined_call_operand.vmem [shape: f32[1,16], index: 2, kind: input, shape index: {}]   ;;  %s867_s3 = inlined_call_operand.vmem [shape: bf16[3,16,16], index: 3, kind: input, shape index: {}]   ;;  %s868_s4 = inlined_call_operand.vmem [shape: f32[1,16], index: 4, kind: input, shape index: {}]   ;;  %s869_s5 = inlined_call_operand.hbm [shape: f32[32,16], index: 5, kind: output, shape index: {}]  }
   0x1   :  { %12 = vsyncpa [#allocation3 + $0x1], 0  ;;  %s736_s18 = smov 0   ;;  %s738_s19 = smov 0  }
   0x2   :  { %s740_s20 = smov 0   ;;  %s742_s21 = smov 0  }
   0x3 LB: > { %s757_s22 = sadd.s32 4294967295, %s702_s21   ;;  %s535_s23 = sadd.s32 4294967294, %s702_s21   ;;  %s702_s21 = sphi %s742_s21, %s875_s21   ;;  %s698_s20 = sphi %s740_s20, %s874_s20   ;;  %s694_s19 = sphi %s738_s19, %s873_s19   ;;  %s690_s18 = sphi %s736_s18, %s872_s18  }
   0x4   : > { %s761_s24 = sadd.s32 1, %s702_s21   ;;  %s135_s25 = sadd.s32 1, %s698_s20 }
   0x5   : > { %s132_s26 = ssub.s32 %s702_s21, %s761_s24  ;;  %p145_p0 = scmp.ne.s32.totalorder %s698_s20, %s694_s19 }
   0x6   : > { %p133_p1 = scmp.eq.s32.totalorder %s132_s26, 0  ;;  %p146_p2 = scmp.eq.s32.totalorder %s757_s22, 1 }
   0x7   : > { %p151_p3 = scmp.ne.s32.totalorder %s694_s19, %s690_s18  ;;  %p152_p4 = scmp.eq.s32.totalorder %s535_s23, 1 }
   0x8   : > { %s772_s27 = scalar_select %p133_p1, %s698_s20, %s135_s25  }
   0x9   : > { %p774_p5 = por %p146_p2, %p145_p0  ;;  %p778_p6 = por %p152_p4, %p151_p3 }
   0xa   : > { %p538_p7 = scmp.ge.s32.totalorder %s702_s21, 1  ;;  %p191_p8 = scmp.lt.s32.totalorder %s702_s21, 3 }
   0xc   : > { %p192_p9 = pnand %p538_p7, %p191_p8 }
   0xd   : > { %s540_s7 = sshll.u32 (!%p192_p9), %s757_s22, 1  ;;  %s216_s10 = sand.u32 (!%p192_p9), 1, %s694_s19  }
   0xe   : > { %195 = sbr.rel (%p192_p9) target bundleno = 328 (0x148), region = 40  ;;  %p220_p10 = scmp.lt.s32.totalorder (!%p192_p9), %s540_s7, 3 }
   0xf   : > { %s539_s11 = sshll.u32 (!%p192_p9), %s216_s10, 4 }
  0x10   : > { %s218_s16 = scalar_lea.vmem (!%p192_p9), [#allocation2], %s539_s11 }
  0x11   : > { %s470_s17 = sshll.u32 (!%p192_p9), %s218_s16, 4  ;;  %s471_s17 = int_to_ptr.vmem [resolvable:$true] %s470_s17 }
  0x13   : > { %v591_v0 = vld [vmem:[%s865_s1 + $0x8] sm:$0xff]  ;;  %v590_v1 = vld [vmem:[%s865_s1] sm:$0xff]  ;;  %v592_v2 = vld [vmem:[%s865_s1 + $0x10] sm:$0xff]  ;;  %v229_v3 = vlaneseq  ;;  %s877_s7 = smov (!%p220_p10, %s540_s7), 3  ;;  %vm257_vm0 = vcmask 130048  }
  0x14   : > { %268 = vmatpush.bf16.msra.mxu0 %v591_v0  ;;  %305 = vmatpush.bf16.msra.mxu1 %v590_v1  ;;  %s541_s12 = sshll.u32 %s877_s7, 2  ;;  %v593_v22 = vld [vmem:[%s867_s3] sm:$0xff]  ;;  %v594_v23 = vld [vmem:[%s867_s3 + $0x8] sm:$0xff]  ;;  %v595_v24 = vld [vmem:[%s867_s3 + $0x10] sm:$0xff]  ;;  %s660_s7 = scalar_lea.hbm %s869_s5, 32 }
  0x15   : > { %v230_v4 = vshrl.u32 %v229_v3, 7  ;;  %344 = vmatpush.bf16.msra.mxu2 %v592_v2  ;;  %s223_s15 = scalar_lea.vmem %s864_s0, %s541_s12  ;;  %384 = vmatpush.bf16.msra.mxu3 %v594_v23  ;;  %v638_v25 = vld [vmem:[%s866_s2] ss:$0 sm:$0xff]  ;;  %s596_s12 = sshll.u32 %s757_s22, 4 }
  0x16   : > { %v589_v6 = vld [vmem:[%s223_s15] sm:$0xff]  ;;  %s458_s22 = scalar_lea.sflag [#allocation3], %s216_s10 }
  0x17   : > { %v231_v5 = vadd.s32 8, %v230_v4  ;;  %v227_v7 = vld [vmem:[%s223_s15] sm:$0xff]   ;;  %554 = vmatmul.msk.bf16.vlgmr.msra.gmra.mxu0 %vm257_vm0, %v589_v6  ;;  %vm277_vm1 = vcmp.lt.s32.totalorder %v230_v4, 1  ;;  %vm280_vm2 = vcmp.ge.s32.totalorder %v230_v4, 1  ;;  %vm316_vm3 = vcmp.lt.s32.totalorder %v230_v4, 7  ;;  %s469_s15 = scalar_lea.hbm %s869_s5, %s596_s12 }
  0x18   : > { %v232_v8 = vunpack.c.l.bf16 %v227_v7  ;;  %v233_v9 = vunpack.c.h.bf16 %v227_v7  ;;  %414 = vmatpush.bf16.msrb.mxu0 %v593_v22  ;;  %446 = vmatpush.bf16.msrb.mxu1 %v595_v24  ;;  %v639_v53 = vld [vmem:[%s868_s4] ss:$0 sm:$0xff]  ;;  %s472_s23 = sshll.u32 %s469_s15, 4  ;;  %s473_s23 = int_to_ptr.hbm [resolvable:$true] %s472_s23 }
  0x19   : > { %vm320_vm4 = vcmp.lt.s32.totalorder %v231_v5, 15  ;;  %s654_s25 = sshra.s32 %s473_s23, 4  ;;  %s655_s25 = int_to_ptr.hbm [resolvable:$true] %s654_s25 }
  0x1a   : > { %v275_v10 = vrot.slane %v232_v8, 7  ;;  %v276_v11 = vrot.slane %v233_v9, 7  ;;  %v314_v12 = vrot.slane %v232_v8, 1  ;;  %v315_v13 = vrot.slane %v233_v9, 1  ;;  %s656_s26 = scalar_lea.hbm %s655_s25, 16  ;;  %p661_p0 = scmp.lt.s32.totalorder %s655_s25, %s869_s5 }
  0x1b   : > { %p657_p11 = scmp.ne.s32.totalorder %s655_s25, %s656_s26  ;;  %p662_p1 = scmp.lt.s32.totalorder %s660_s7, %s656_s26 }
  0x1c   : > { %v278_v14 = vsel %vm277_vm1, %v275_v10, %v276_v11  ;;  %v279_v15 = vsel %vm277_vm1, %v276_v11, %v275_v10  ;;  %v317_v16 = vsel %vm316_vm3, %v314_v12, %v315_v13  ;;  %v318_v17 = vsel %vm316_vm3, %v315_v13, %v314_v12 }
  0x1d   : > { %v286_v18 = vsel %vm280_vm2, %v279_v15, 0.0  ;;  %v326_v19 = vsel %vm320_vm4, %v318_v17, 0.0  ;;  %p658_p12 = pnand %p657_p11, %p774_p5  ;;  %p663_p2 = por %p662_p1, %p661_p0 }
  0x1e   : > { %v288_v20 = vpack.c.bf16 %v278_v14, %v286_v18  ;;  %v327_v21 = vpack.c.bf16 %v326_v19, %v317_v16 }
  0x1f   : > { %p659_p13 = pneg %p658_p12 }
  0x20   : > { %559 = vmatmul.msk.bf16.vlgmr.msra.gmra.mxu1 %vm257_vm0, %v288_v20  ;;  %564 = vmatmul.msk.bf16.vlgmr.msra.gmra.mxu2 %vm257_vm0, %v327_v21 }
  0x21   : > { %p664_p3 = pnand %p663_p2, %p659_p13 }
  0x94   : > { %v270_v26 = vpop.f32.mrf.mxu0 }
  0x95   : > { %v271_v28 = vadd.f32 %v638_v25, %v270_v26 }
  0x9c   : > { %v272_v31 = vpop.f32.mrf.mxu0 }
  0x9d   : > { %v307_v27 = vpop.f32.mrf.mxu1  ;;  %v273_v34 = vadd.f32 %v638_v25, %v272_v31 }
  0x9e   : > { %v312_v29 = vadd.f32 %v307_v27, %v271_v28 }
  0xa3   : > { %v346_v30 = vpop.f32.mrf.mxu2 }
  0xa4   : > { %v351_v32 = vadd.f32 %v346_v30, %v312_v29 }
  0xa5   : > { %v309_v33 = vpop.f32.mrf.mxu1 }
  0xa6   : > { %v313_v35 = vadd.f32 %v309_v33, %v273_v34  ;;  %v353_v36 = vmax.f32 %v351_v32, 0.0 }
  0xa8   : > { %v391_v40 = vrot.slane %v353_v36, 7  ;;  %v423_v41 = vrot.slane %v353_v36, 1 }
  0xab   : > { %v348_v37 = vpop.f32.mrf.mxu2 }
  0xac   : > { %v352_v38 = vadd.f32 %v348_v37, %v313_v35 }
  0xae   : > { %v354_v39 = vmax.f32 %v352_v38, 0.0 }
  0xb0   : > { %v392_v42 = vrot.slane %v354_v39, 7  ;;  %v424_v43 = vrot.slane %v354_v39, 1  ;;  %v355_v44 = vpack.c.bf16 %v354_v39, %v353_v36 }
  0xb2   : > { %573 = vmatmul.msk.bf16.vlgmr.msra.gmra.mxu3 %vm257_vm0, %v355_v44  ;;  %v393_v45 = vsel %vm277_vm1, %v391_v40, %v392_v42  ;;  %v394_v46 = vsel %vm277_vm1, %v392_v42, %v391_v40  ;;  %v425_v47 = vsel %vm316_vm3, %v423_v41, %v424_v43  ;;  %v426_v48 = vsel %vm316_vm3, %v424_v43, %v423_v41 }
  0xb3   : > { %v395_v49 = vsel %vm280_vm2, %v394_v46, 0.0  ;;  %v428_v50 = vsel %vm320_vm4, %v426_v48, 0.0 }
  0xb4   : > { %v397_v51 = vpack.c.bf16 %v393_v45, %v395_v49  ;;  %v429_v52 = vpack.c.bf16 %v428_v50, %v425_v47 }
  0xb6   : > { %578 = vmatmul.msk.bf16.vlgmr.msrb.gmra.mxu0 %vm257_vm0, %v397_v51  ;;  %583 = vmatmul.msk.bf16.vlgmr.msrb.gmra.mxu1 %vm257_vm0, %v429_v52 }
 0x133   : > { %v416_v54 = vpop.f32.mrf.mxu0  ;;  %v448_v57 = vpop.f32.mrf.mxu1 }
 0x135   : > { %v386_v55 = vpop.f32.mrf.mxu3 }
 0x136   : > { %v387_v56 = vadd.f32 %v639_v53, %v386_v55 }
 0x138   : > { %v421_v58 = vadd.f32 %v416_v54, %v387_v56 }
 0x13a   : > { %v453_v59 = vadd.f32 %v448_v57, %v421_v58 }
 0x13b   : > { %v418_v62 = vpop.f32.mrf.mxu0  ;;  %v450_v0 = vpop.f32.mrf.mxu1 }
 0x13c   : > { %455 = vst.msk [vmem:[%s218_s16] sm:$0xff] %vm257_vm0, %v453_v59 }
 0x13d   : > { %v388_v60 = vpop.f32.mrf.mxu3 }
 0x13e   : > { %v389_v61 = vadd.f32 %v639_v53, %v388_v60 }
 0x140   : > { %v422_v63 = vadd.f32 %v418_v62, %v389_v61 }
 0x142   : > { %v454_v1 = vadd.f32 %v450_v0, %v422_v63 }
 0x144   : > { %456 = vst.msk [vmem:[%s218_s16 + $0x8] sm:$0xff] %vm257_vm0, %v454_v1 }
 0x145   : > { %667 = shalt.err (!%p664_p3)
}
 0x146   : > { %s704_s10 = smov 128   ;;  %s705_s11 = smov 8  }
 0x147   : > { %597 = dma.vmem_to_hbm [thread:$0]  (%p774_p5), %s471_s17, 256, %s473_s23, %s458_s22, %s704_s10, %s704_s10, %s705_s11  }
 0x148 PF: > { %p603_p4 = scmp.ge.s32.totalorder %s702_s21, 2  ;;  %s487_s12 = sand.u32 1, %s690_s18  }
 0x149   : > { %s488_s13 = scalar_lea.sflag [#allocation3], %s487_s12 }
 0x14a   : > { %p600_p7 = pnand %p603_p4, %p778_p6 }
 0x14c   : > { %p601_p8 = pneg %p600_p7 }
 0x14e   : > { %685 = dma.done.wait (%p601_p8), %s488_s13, 256  }
 0x14f   : > { %687 = vsyncadd (%p601_p8), %s488_s13, 4294967040  ;;  %p15_p9 = scmp.ge.s32.totalorder %s761_s24, 4   ;;  %s872_s18 = smov %s694_s19 }
 0x150   : > { %s873_s19 = smov %s698_s20  ;;  %s874_s20 = smov %s772_s27 }
 0x151   : > { %s875_s21 = smov %s761_s24  ;;  %17 = sbr.rel (!%p15_p9) target bundleno = 3 (0x3), region = 79 }
 0x156   :  { %494 = vsyncpa [#allocation3], 1 }
 0x157   :  { %496 = vsyncpa [#allocation3 + $0x1], 1 }

// kernel: vqvae_forward.15
= control target key start
LH: loop header
LB: loop body
LE: loop exit
PB: predicated region body
PF: predicated region fallthrough
CT: control target
= control target key end

     0   :  { %v32_v0 = vlaneseq  ;;  %vm66_vm0 = vcmask 130048   ;;  %vm412_vm5 = vcmask 125952   ;;  %s521_s13 = smov 16   ;;  %vm419_vm6 = vcmask 257152   ;;  %s653_s1 = inlined_call_operand.vmem [shape: bf16[6,16,16], index: 1, kind: input, shape index: {}]   ;;  %s654_s0 = inlined_call_operand.vmem [shape: bf16[8,16], index: 0, kind: input, shape index: {}]   ;;  %s655_s2 = inlined_call_operand.vmem [shape: f32[2,1,16], index: 2, kind: input, shape index: {}]   ;;  %s656_s4 = inlined_call_operand.vmem [shape: f32[2,1,16], index: 4, kind: input, shape index: {}]   ;;  %s657_s3 = inlined_call_operand.vmem [shape: bf16[2,16,16], index: 3, kind: input, shape index: {}]   ;;  %s658_s6 = inlined_call_operand.vmem [shape: bf16[2,16,16], index: 6, kind: input, shape index: {}]   ;;  %s659_s5 = inlined_call_operand.vmem [shape: bf16[2,16,16], index: 5, kind: input, shape index: {}]   ;;  %s660_s7 = inlined_call_operand.vmem [shape: f32[1,16], index: 7, kind: input, shape index: {}]   ;;  %s661_s8 = inlined_call_operand.vmem [shape: bf16[8,32], index: 8, kind: output, shape index: {}]  }
   0x1   :  { %v504_v1 = vld [vmem:[%s653_s1 + $0x8] sm:$0xff]  ;;  %v30_v2 = vld [vmem:[%s654_s0] sm:$0xf]  ;;  %v505_v5 = vld [vmem:[%s653_s1 + $0x10] sm:$0xff] }
   0x2   :  { %v503_v3 = vld [vmem:[%s653_s1] sm:$0xff]  ;;  %v31_v4 = vunpack.c.l.bf16 %v30_v2  ;;  %v33_v6 = vshrl.u32 %v32_v0, 7  ;;  %77 = vmatpush.bf16.msra.mxu0 %v504_v1  ;;  %134 = vmatpush.bf16.msra.mxu2 %v505_v5  ;;  %v509_v17 = vld [vmem:[%s653_s1 + $0x28] sm:$0xff]  ;;  %v507_v31 = vld [vmem:[%s653_s1 + $0x18] sm:$0xff] }
   0x3   :  { %105 = vmatpush.bf16.msra.mxu1 %v503_v3  ;;  %v506_v16 = vld [vmem:[%s657_s3] sm:$0xff]  ;;  %v510_v45 = vld [vmem:[%s657_s3 + $0x8] sm:$0xff] }
   0x4   :  { %v46_v7 = vmax.f32 %v31_v4, 0.0  ;;  %v579_v8 = vand.u32 3, %v33_v6  ;;  %161 = vmatpush.bf16.msra.mxu3 %v506_v16  ;;  %v508_v18 = vld [vmem:[%s653_s1 + $0x20] sm:$0xff]  ;;  %v514_v46 = vld [vmem:[%s658_s6 + $0x8] sm:$0xff] }
   0x5   :  { %v516_v19 = vld [vmem:[%s655_s2] ss:$0 sm:$0xff]  ;;  %v518_v48 = vld [vmem:[%s655_s2 + $0x1] ss:$0 sm:$0xff]  ;;  %v512_v60 = vld [vmem:[%s659_s5 + $0x8] sm:$0xff] }
   0x6   :  { %v47_v9 = vpack.c.bf16 %v46_v7, %v46_v7  ;;  %v83_v10 = vrot.slane %v46_v7, 5  ;;  %vm84_vm1 = vcmp.ge.s32.totalorder %v579_v8, 3  ;;  %v112_v11 = vrot.slane %v46_v7, 3  ;;  %262 = vmatpush.bf16.msrb.mxu2 %v509_v17  ;;  %205 = vmatpush.bf16.msrb.mxu0 %v508_v18  ;;  %v517_v32 = vld [vmem:[%s656_s4] ss:$0 sm:$0xff] }
   0x7   :  { %vm113_vm2 = vcmp.lt.s32.totalorder %v579_v8, 1  ;;  %233 = vmatpush.bf16.msrb.mxu1 %v507_v31  ;;  %vm212_vm3 = vcmp.ge.s32.totalorder %v579_v8, 1  ;;  %vm241_vm4 = vcmp.lt.s32.totalorder %v579_v8, 3  ;;  %v513_v47 = vld [vmem:[%s658_s6] sm:$0xff] }
   0x8   :  { %433 = vmatmul.msk.bf16.vlgmr.msra.gmra.mxu0 %vm66_vm0, %v47_v9  ;;  %v87_v12 = vsel %vm84_vm1, %v83_v10, 0.0  ;;  %v116_v13 = vsel %vm113_vm2, %v112_v11, 0.0  ;;  %290 = vmatpush.bf16.msrb.mxu3 %v510_v45  ;;  %v511_v61 = vld [vmem:[%s659_s5] sm:$0xff] }
   0x9   :  { %v88_v14 = vpack.c.bf16 %v87_v12, %v87_v12  ;;  %v117_v15 = vpack.c.bf16 %v116_v13, %v116_v13  ;;  %v519_v62 = vld [vmem:[%s656_s4 + $0x1] ss:$0 sm:$0xff]  ;;  %v520_v12 = vld [vmem:[%s660_s7] ss:$0 sm:$0xff] }
   0xa   :  { %332 = vmatpush.bf16.msra.mxu0 %v512_v60 }
   0xb   :  { %438 = vmatmul.msk.bf16.vlgmr.msra.gmra.mxu1 %vm66_vm0, %v88_v14  ;;  %443 = vmatmul.msk.bf16.vlgmr.msra.gmra.mxu2 %vm66_vm0, %v117_v15 }
   0xc   :  { %385 = vmatpush.bf16.msra.mxu2 %v514_v46  ;;  %354 = vmatpush.bf16.msra.mxu1 %v511_v61 }
  0x85   :  { %v79_v20 = vpop.f32.mrf.mxu0 }
  0x86   :  { %v80_v21 = vadd.f32 %v516_v19, %v79_v20 }
  0x88   :  { %v107_v22 = vpop.f32.mrf.mxu1 }
  0x89   :  { %v111_v23 = vadd.f32 %v107_v22, %v80_v21 }
  0x8d   :  { %v81_v24 = vpop.f32.mrf.mxu0 }
  0x8e   :  { %v136_v25 = vpop.f32.mrf.mxu2 }
  0x8f   :  { %v140_v26 = vadd.f32 %v136_v25, %v111_v23 }
  0x90   :  { %v109_v27 = vpop.f32.mrf.mxu1 }
  0x91   :  { %v141_v28 = vmax.f32 %v140_v26, 0.0 }
  0x93   :  { %v142_v29 = vpack.c.bf16 %v141_v28, %v141_v28 }
  0x95   :  { %448 = vmatmul.msk.bf16.vlgmr.msra.gmra.mxu3 %vm66_vm0, %v142_v29 }
  0x96   :  { %v138_v30 = vpop.f32.mrf.mxu2  ;;  %404 = vmatpush.bf16.msra.mxu3 %v513_v47 }
 0x118   :  { %v163_v33 = vpop.f32.mrf.mxu3 }
 0x119   :  { %v167_v34 = vadd.f32 %v163_v33, %v31_v4 }
 0x11b   :  { %v172_v35 = vadd.f32 %v517_v32, %v167_v34 }
 0x11d   :  { %v173_v36 = vmax.f32 %v172_v35, 0.0 }
 0x11f   :  { %v211_v37 = vrot.slane %v173_v36, 7  ;;  %v240_v38 = vrot.slane %v173_v36, 1  ;;  %v174_v39 = vpack.c.bf16 %v173_v36, %v173_v36 }
 0x120   :  { %v165_v40 = vpop.f32.mrf.mxu3 }
 0x121   :  { %460 = vmatmul.msk.bf16.vlgmr.msrb.gmra.mxu0 %vm66_vm0, %v174_v39  ;;  %v215_v41 = vsel %vm212_vm3, %v211_v37, 0.0  ;;  %v244_v42 = vsel %vm241_vm4, %v240_v38, 0.0 }
 0x122   :  { %v216_v43 = vpack.c.bf16 %v215_v41, %v215_v41  ;;  %v245_v44 = vpack.c.bf16 %v244_v42, %v244_v42 }
 0x124   :  { %465 = vmatmul.msk.bf16.vlgmr.msrb.gmra.mxu1 %vm66_vm0, %v216_v43  ;;  %470 = vmatmul.msk.bf16.vlgmr.msrb.gmra.mxu2 %vm66_vm0, %v245_v44 }
 0x19e   :  { %v207_v49 = vpop.f32.mrf.mxu0 }
 0x19f   :  { %v208_v51 = vadd.f32 %v518_v48, %v207_v49 }
 0x1a1   :  { %v235_v50 = vpop.f32.mrf.mxu1 }
 0x1a2   :  { %v239_v52 = vadd.f32 %v235_v50, %v208_v51 }
 0x1a6   :  { %v209_v53 = vpop.f32.mrf.mxu0 }
 0x1a7   :  { %v264_v54 = vpop.f32.mrf.mxu2 }
 0x1a8   :  { %v268_v55 = vadd.f32 %v264_v54, %v239_v52 }
 0x1a9   :  { %v237_v56 = vpop.f32.mrf.mxu1 }
 0x1aa   :  { %v269_v57 = vmax.f32 %v268_v55, 0.0 }
 0x1ac   :  { %v270_v58 = vpack.c.bf16 %v269_v57, %v269_v57 }
 0x1ae   :  { %477 = vmatmul.msk.bf16.vlgmr.msrb.gmra.mxu3 %vm66_vm0, %v270_v58 }
 0x1af   :  { %v266_v59 = vpop.f32.mrf.mxu2 }
 0x231   :  { %v292_v63 = vpop.f32.mrf.mxu3 }
 0x232   :  { %v296_v0 = vadd.f32 %v292_v63, %v172_v35 }
 0x234   :  { %v302_v1 = vadd.f32 %v519_v62, %v296_v0 }
 0x236   :  { %v303_v2 = vpack.c.bf16 %v302_v1, %v302_v1  ;;  %v304_v3 = vrot.slane %v302_v1, 7  ;;  %v307_v4 = vrot.slane %v302_v1, 1 }
 0x238   :  { %v305_v5 = vsel %vm212_vm3, %v304_v3, 0.0  ;;  %v308_v6 = vsel %vm241_vm4, %v307_v4, 0.0  ;;  %485 = vmatmul.msk.bf16.vlgmr.msra.gmra.mxu0 %vm66_vm0, %v303_v2  ;;  %502 = vmatmul.msk.bf16.vlgmr.msra.gmra.mxu3 %vm66_vm0, %v303_v2 }
 0x239   :  { %v306_v7 = vpack.c.bf16 %v305_v5, %v305_v5  ;;  %v309_v9 = vpack.c.bf16 %v308_v6, %v308_v6  ;;  %v294_v10 = vpop.f32.mrf.mxu3 }
 0x23b   :  { %490 = vmatmul.msk.bf16.vlgmr.msra.gmra.mxu1 %vm66_vm0, %v306_v7  ;;  %497 = vmatmul.msk.bf16.vlgmr.msra.gmra.mxu2 %vm66_vm0, %v309_v9 }
 0x2b5   :  { %v334_v11 = vpop.f32.mrf.mxu0 }
 0x2b8   :  { %v356_v13 = vpop.f32.mrf.mxu1 }
 0x2b9   :  { %v357_v14 = vadd.f32 %v356_v13, %v334_v11 }
 0x2bb   :  { %v363_v8 = vadd.f32 %v520_v12, %v357_v14  ;;  %v406_v15 = vpop.f32.mrf.mxu3 }
 0x2bd   :  { %v411_v16 = vpack.c.bf16 %v363_v8, %v363_v8  ;;  %v336_v17 = vpop.f32.mrf.mxu0 }
 0x2be   :  { %v387_v18 = vpop.f32.mrf.mxu2 }
 0x2bf   :  { %v407_v19 = vadd.f32 %v406_v15, %v387_v18  ;;  %413 = vst.msk [vmem:[%s661_s8] sm:$0xf] %vm412_vm5, %v411_v16 }
 0x2c0   :  { %v358_v20 = vpop.f32.mrf.mxu1 }
 0x2c1   :  { %v410_v21 = vadd.f32 %v520_v12, %v407_v19 }
 0x2c3   :  { %v408_v22 = vpop.f32.mrf.mxu3  ;;  %v414_v23 = vpack.c.bf16 %v410_v21, %v410_v21 }
 0x2c5   :  { %416 = vrot.lane.b32.xlu0 %v414_v23, %s521_s13 }
 0x2c6   :  { %v389_v24 = vpop.f32.mrf.mxu2 }
 0x337   :  { %v417_v25 = vpop.permute.xlu0 %416 }
 0x338   :  { %420 = vst.msk [vmem:[%s661_s8] sm:$0xf] %vm419_vm6, %v417_v25 }

// kernel: vqvae_forward.16
= control target key start
LH: loop header
LB: loop body
LE: loop exit
PB: predicated region body
PF: predicated region fallthrough
CT: control target
= control target key end

     0   :  { %s901_s27 = smov 0   ;;  %s1002_s0 = inlined_call_operand.vmem [shape: bf16[16,16], index: 0, kind: input, shape index: {}]   ;;  %s1003_s1 = inlined_call_operand.vmem [shape: bf16[6,16,16], index: 1, kind: input, shape index: {}]   ;;  %s1004_s2 = inlined_call_operand.vmem [shape: f32[2,1,16], index: 2, kind: input, shape index: {}]   ;;  %s1005_s3 = inlined_call_operand.vmem [shape: bf16[2,16,16], index: 3, kind: input, shape index: {}]   ;;  %s1006_s4 = inlined_call_operand.vmem [shape: f32[2,1,16], index: 4, kind: input, shape index: {}]   ;;  %s1007_s5 = inlined_call_operand.vmem [shape: bf16[2,16,16], index: 5, kind: input, shape index: {}]   ;;  %s1008_s6 = inlined_call_operand.vmem [shape: bf16[2,16,16], index: 6, kind: input, shape index: {}]   ;;  %s1009_s7 = inlined_call_operand.vmem [shape: f32[1,16], index: 7, kind: input, shape index: {}]   ;;  %s1010_s8 = inlined_call_operand.vmem [shape: bf16[16,32], index: 8, kind: output, shape index: {}]  }
   0x1 LB: > { %s734_s28 = sadd.s32 4294967295, %s853_s27   ;;  %p738_p0 = scmp.ge.s32.totalorder %s853_s27, 1  ;;  %s853_s27 = sphi %s901_s27, %s18_s27  }
   0x2   : > { %p261_p1 = scmp.lt.s32.totalorder %s853_s27, 3 }
   0x4   : > { %p262_p2 = pnand %p738_p0, %p261_p1 }
   0x5   : > { %p293_p3 = scmp.lt.s32.totalorder (!%p262_p2), %s734_s28, 1  ;;  %s855_s9 = smov (!%p262_p2), 16  }
   0x6   : > { %265 = sbr.rel (%p262_p2) target bundleno = 838 (0x346), region = 52 }
   0xb   : > { %v822_v0 = vld [vmem:[%s1003_s1 + $0x8] sm:$0xff]  ;;  %v821_v1 = vld [vmem:[%s1003_s1] sm:$0xff]  ;;  %v823_v2 = vld [vmem:[%s1003_s1 + $0x10] sm:$0xff]  ;;  %s1012_s28 = smov (!%p293_p3, %s734_s28), 1  ;;  %v304_v3 = vlaneseq  ;;  %vm326_vm0 = vcmask 130048   ;;  %vm672_vm5 = vcmask 125952  }
   0xc   : > { %337 = vmatpush.bf16.msra.mxu0 %v822_v0  ;;  %365 = vmatpush.bf16.msra.mxu1 %v821_v1  ;;  %s739_s13 = sshll.u32 %s1012_s28, 2  ;;  %v824_v15 = vld [vmem:[%s1005_s3] sm:$0xff]  ;;  %v827_v16 = vld [vmem:[%s1003_s1 + $0x28] sm:$0xff]  ;;  %v825_v30 = vld [vmem:[%s1003_s1 + $0x18] sm:$0xff]  ;;  %vm679_vm6 = vcmask 257152  }
   0xd   : > { %394 = vmatpush.bf16.msra.mxu2 %v823_v2  ;;  %s296_s16 = scalar_lea.vmem %s1002_s0, %s739_s13  ;;  %v926_v5 = vshrl.u32 %v304_v3, 7  ;;  %421 = vmatpush.bf16.msra.mxu3 %v824_v15  ;;  %v826_v17 = vld [vmem:[%s1003_s1 + $0x20] sm:$0xff]  ;;  %v828_v44 = vld [vmem:[%s1005_s3 + $0x8] sm:$0xff]  ;;  %s300_s30 = scalar_lea.vmem %s1010_s8, %s739_s13 }
   0xe   : > { %v302_v4 = vld [vmem:[%s296_s16] sm:$0xf]  ;;  %v832_v45 = vld [vmem:[%s1008_s6 + $0x8] sm:$0xff] }
   0xf   : > { %v303_v6 = vunpack.c.l.bf16 %v302_v4  ;;  %vm344_vm1 = vcmp.ge.s32.totalorder %v926_v5, 3  ;;  %vm373_vm2 = vcmp.lt.s32.totalorder %v926_v5, 5  ;;  %v842_v18 = vld [vmem:[%s1004_s2] ss:$0 sm:$0xff]  ;;  %vm472_vm3 = vcmp.ge.s32.totalorder %v926_v5, 1  ;;  %v830_v59 = vld [vmem:[%s1007_s5 + $0x8] sm:$0xff] }
  0x10   : > { %465 = vmatpush.bf16.msrb.mxu0 %v826_v17  ;;  %493 = vmatpush.bf16.msrb.mxu1 %v825_v30  ;;  %v843_v31 = vld [vmem:[%s1006_s4] ss:$0 sm:$0xff]  ;;  %vm501_vm4 = vcmp.lt.s32.totalorder %v926_v5, 7  ;;  %v844_v47 = vld [vmem:[%s1004_s2 + $0x1] ss:$0 sm:$0xff] }
  0x11   : > { %v306_v7 = vmax.f32 %v303_v6, 0.0  ;;  %522 = vmatpush.bf16.msrb.mxu2 %v827_v16  ;;  %550 = vmatpush.bf16.msrb.mxu3 %v828_v44  ;;  %v831_v46 = vld [vmem:[%s1008_s6] sm:$0xff] }
  0x12   : > { %v829_v60 = vld [vmem:[%s1007_s5] sm:$0xff] }
  0x13   : > { %v307_v8 = vpack.c.bf16 %v306_v7, %v306_v7  ;;  %v343_v9 = vrot.slane %v306_v7, 5  ;;  %v372_v10 = vrot.slane %v306_v7, 3  ;;  %v845_v61 = vld [vmem:[%s1006_s4 + $0x1] ss:$0 sm:$0xff] }
  0x15   : > { %749 = vmatmul.msk.bf16.vlgmr.msra.gmra.mxu0 %vm326_vm0, %v307_v8  ;;  %v347_v11 = vsel %vm344_vm1, %v343_v9, 0.0  ;;  %v376_v12 = vsel %vm373_vm2, %v372_v10, 0.0 }
  0x16   : > { %v348_v13 = vpack.c.bf16 %v347_v11, %v347_v11  ;;  %v377_v14 = vpack.c.bf16 %v376_v12, %v376_v12  ;;  %592 = vmatpush.bf16.msra.mxu0 %v830_v59  ;;  %v846_v11 = vld [vmem:[%s1009_s7] ss:$0 sm:$0xff] }
  0x18   : > { %754 = vmatmul.msk.bf16.vlgmr.msra.gmra.mxu1 %vm326_vm0, %v348_v13  ;;  %759 = vmatmul.msk.bf16.vlgmr.msra.gmra.mxu2 %vm326_vm0, %v377_v14 }
  0x19   : > { %645 = vmatpush.bf16.msra.mxu2 %v832_v45  ;;  %614 = vmatpush.bf16.msra.mxu1 %v829_v60 }
  0x92   : > { %v339_v19 = vpop.f32.mrf.mxu0 }
  0x93   : > { %v340_v20 = vadd.f32 %v842_v18, %v339_v19 }
  0x95   : > { %v367_v21 = vpop.f32.mrf.mxu1 }
  0x96   : > { %v371_v22 = vadd.f32 %v367_v21, %v340_v20 }
  0x9a   : > { %v341_v23 = vpop.f32.mrf.mxu0 }
  0x9b   : > { %v396_v24 = vpop.f32.mrf.mxu2 }
  0x9c   : > { %v400_v25 = vadd.f32 %v396_v24, %v371_v22 }
  0x9d   : > { %v369_v26 = vpop.f32.mrf.mxu1 }
  0x9e   : > { %v401_v27 = vmax.f32 %v400_v25, 0.0 }
  0xa0   : > { %v402_v28 = vpack.c.bf16 %v401_v27, %v401_v27 }
  0xa2   : > { %764 = vmatmul.msk.bf16.vlgmr.msra.gmra.mxu3 %vm326_vm0, %v402_v28 }
  0xa3   : > { %v398_v29 = vpop.f32.mrf.mxu2  ;;  %664 = vmatpush.bf16.msra.mxu3 %v831_v46 }
 0x125   : > { %v423_v32 = vpop.f32.mrf.mxu3 }
 0x126   : > { %v427_v33 = vadd.f32 %v423_v32, %v303_v6 }
 0x128   : > { %v432_v34 = vadd.f32 %v843_v31, %v427_v33 }
 0x12a   : > { %v433_v35 = vmax.f32 %v432_v34, 0.0 }
 0x12c   : > { %v471_v36 = vrot.slane %v433_v35, 7  ;;  %v500_v37 = vrot.slane %v433_v35, 1  ;;  %v434_v38 = vpack.c.bf16 %v433_v35, %v433_v35 }
 0x12d   : > { %v425_v39 = vpop.f32.mrf.mxu3 }
 0x12e   : > { %776 = vmatmul.msk.bf16.vlgmr.msrb.gmra.mxu0 %vm326_vm0, %v434_v38  ;;  %v475_v40 = vsel %vm472_vm3, %v471_v36, 0.0  ;;  %v504_v41 = vsel %vm501_vm4, %v500_v37, 0.0 }
 0x12f   : > { %v476_v42 = vpack.c.bf16 %v475_v40, %v475_v40  ;;  %v505_v43 = vpack.c.bf16 %v504_v41, %v504_v41 }
 0x131   : > { %781 = vmatmul.msk.bf16.vlgmr.msrb.gmra.mxu1 %vm326_vm0, %v476_v42  ;;  %786 = vmatmul.msk.bf16.vlgmr.msrb.gmra.mxu2 %vm326_vm0, %v505_v43 }
 0x1ab   : > { %v467_v48 = vpop.f32.mrf.mxu0 }
 0x1ac   : > { %v468_v50 = vadd.f32 %v844_v47, %v467_v48 }
 0x1ae   : > { %v495_v49 = vpop.f32.mrf.mxu1 }
 0x1af   : > { %v499_v51 = vadd.f32 %v495_v49, %v468_v50 }
 0x1b3   : > { %v469_v52 = vpop.f32.mrf.mxu0 }
 0x1b4   : > { %v524_v53 = vpop.f32.mrf.mxu2 }
 0x1b5   : > { %v528_v54 = vadd.f32 %v524_v53, %v499_v51 }
 0x1b6   : > { %v497_v55 = vpop.f32.mrf.mxu1 }
 0x1b7   : > { %v529_v56 = vmax.f32 %v528_v54, 0.0 }
 0x1b9   : > { %v530_v57 = vpack.c.bf16 %v529_v56, %v529_v56 }
 0x1bb   : > { %793 = vmatmul.msk.bf16.vlgmr.msrb.gmra.mxu3 %vm326_vm0, %v530_v57 }
 0x1bc   : > { %v526_v58 = vpop.f32.mrf.mxu2 }
 0x23e   : > { %v552_v62 = vpop.f32.mrf.mxu3 }
 0x23f   : > { %v556_v63 = vadd.f32 %v552_v62, %v432_v34 }
 0x241   : > { %v562_v0 = vadd.f32 %v845_v61, %v556_v63 }
 0x243   : > { %v563_v1 = vpack.c.bf16 %v562_v0, %v562_v0  ;;  %v564_v2 = vrot.slane %v562_v0, 7  ;;  %v567_v3 = vrot.slane %v562_v0, 1 }
 0x245   : > { %v565_v4 = vsel %vm472_vm3, %v564_v2, 0.0  ;;  %v568_v6 = vsel %vm501_vm4, %v567_v3, 0.0  ;;  %801 = vmatmul.msk.bf16.vlgmr.msra.gmra.mxu0 %vm326_vm0, %v563_v1  ;;  %818 = vmatmul.msk.bf16.vlgmr.msra.gmra.mxu3 %vm326_vm0, %v563_v1 }
 0x246   : > { %v566_v7 = vpack.c.bf16 %v565_v4, %v565_v4  ;;  %v569_v8 = vpack.c.bf16 %v568_v6, %v568_v6  ;;  %v554_v9 = vpop.f32.mrf.mxu3 }
 0x248   : > { %806 = vmatmul.msk.bf16.vlgmr.msra.gmra.mxu1 %vm326_vm0, %v566_v7  ;;  %813 = vmatmul.msk.bf16.vlgmr.msra.gmra.mxu2 %vm326_vm0, %v569_v8 }
 0x2c2   : > { %v594_v10 = vpop.f32.mrf.mxu0 }
 0x2c5   : > { %v616_v12 = vpop.f32.mrf.mxu1 }
 0x2c6   : > { %v617_v13 = vadd.f32 %v616_v12, %v594_v10 }
 0x2c8   : > { %v623_v5 = vadd.f32 %v846_v11, %v617_v13  ;;  %v666_v14 = vpop.f32.mrf.mxu3 }
 0x2ca   : > { %v671_v15 = vpack.c.bf16 %v623_v5, %v623_v5  ;;  %v596_v16 = vpop.f32.mrf.mxu0 }
 0x2cb   : > { %v647_v17 = vpop.f32.mrf.mxu2 }
 0x2cc   : > { %v667_v18 = vadd.f32 %v666_v14, %v647_v17  ;;  %673 = vst.msk [vmem:[%s300_s30] sm:$0xf] %vm672_vm5, %v671_v15 }
 0x2cd   : > { %v618_v19 = vpop.f32.mrf.mxu1 }
 0x2ce   : > { %v670_v20 = vadd.f32 %v846_v11, %v667_v18 }
 0x2d0   : > { %v668_v21 = vpop.f32.mrf.mxu3  ;;  %v674_v22 = vpack.c.bf16 %v670_v20, %v670_v20 }
 0x2d2   : > { %676 = vrot.lane.b32.xlu0 %v674_v22, %s855_s9 }
 0x2d3   : > { %v649_v23 = vpop.f32.mrf.mxu2 }
 0x344   : > { %v677_v24 = vpop.permute.xlu0 %676 }
 0x345   : > { %680 = vst.msk [vmem:[%s300_s30] sm:$0xf] %vm679_vm6, %v677_v24 }
 0x346 PF: > { %s18_s27 = sadd.s32 1, %s853_s27  }
 0x347   : > { %p15_p4 = scmp.ge.s32.totalorder %s18_s27, 4  }
 0x349   :  { %17 = sbr.rel (!%p15_p4) target bundleno = 1 (0x1), region = 92 }

</bundles_post_ra>
